<compile_context>
chip_gen: v7x
topology: tpu7x:2x2x1
jax: 0.10.0
libtpu: 0.0.40
codegen_flags: <defaults>
</compile_context>

<pallas_src>
import functools
import math

import jax
import jax.numpy as jnp
import numpy as np
from jax.experimental import pallas as pl
from jax.experimental.pallas import tpu as pltpu

SQRT_HALF = 0.5 ** 0.5


# ----------------------------- shared math helpers -----------------------------
def _layer_norm(x, w, b, eps=1e-5):
    mean = jnp.mean(x, axis=-1, keepdims=True)
    var = jnp.mean((x - mean) ** 2, axis=-1, keepdims=True)
    return (x - mean) * jax.lax.rsqrt(var + eps) * w + b


def _gelu_exact(x):
    # torch.nn.GELU default (approximate='none'): 0.5*x*(1+erf(x/sqrt(2)))
    return 0.5 * x * (1.0 + jax.lax.erf(x * jnp.float32(1.0 / math.sqrt(2.0))))


def _softmax_kernel(x):
    # in-kernel softmax: EUP exp + approx reciprocal (no VPU divide)
    x = x - jnp.max(x, axis=-1, keepdims=True)
    e = jnp.exp(x)
    return e * pl.reciprocal(jnp.sum(e, axis=-1, keepdims=True), approx=True)


def _softmax_ref(x):
    x = x - jnp.max(x, axis=-1, keepdims=True)
    e = jnp.exp(x)
    return e / jnp.sum(e, axis=-1, keepdims=True)


def _mm_t(x_bf16, w_bf16):
    # (M, in) x (out, in) -> (M, out) f32; torch.nn.Linear semantics (y = x W^T).
    # bf16 operands at the MXU, f32 accumulation.
    return jax.lax.dot_general(
        x_bf16, w_bf16, (((1,), (1,)), ((), ())),
        preferred_element_type=jnp.float32)


# ------------------------------- Pallas kernel ---------------------------------
def _transformer_kernel(
    x_ref, mask_ref,
    ln1w_ref, ln1b_ref, wqkv_ref, wout_ref,
    ln2w_ref, ln2b_ref, w1_ref, b1_ref, w2_ref, b2_ref,
    o_ref,
    *, hidden, num_heads, block_centers, seq,
):
    layer = pl.program_id(1)

    # o_ref is the carried layer state: its block index is constant along the
    # sequential (innermost) layer grid axis, so it stays resident in VMEM
    # across layers and is only written back to HBM when the center block
    # changes.  Requires grid == (batch_blocks, num_layers) in that order.
    @pl.when(layer == 0)
    def _():
        o_ref[...] = x_ref[...]

    head_dim = hidden // num_heads
    rows = block_centers * seq
    bf16 = jnp.bfloat16

    x = o_ref[...].reshape(rows, hidden)        # (Bt*S, H) current layer input
    mask = mask_ref[...].reshape(rows, 1)       # radial mask, broadcast over H

    # ---------------- AttentionBlock (pre-LN) ----------------
    xn = _layer_norm(x, ln1w_ref[0, 0], ln1b_ref[0, 0]).astype(bf16)

    # Per-head projection weights (prepared host-side), so each head's q/k/v is
    # produced directly by the MXU (no non-aligned lane slices) and each head's
    # output is folded straight into the out-projection accumulation (no
    # lane-dim concatenate).  The 1/sqrt(head_dim) scale is already folded
    # into the q weights.
    attn_out = jnp.zeros((rows, hidden), jnp.float32)
    for h in range(num_heads):                                  # static unroll
        qh = _mm_t(xn, wqkv_ref[0, 0 * num_heads + h])          # (rows, hd)
        kh = _mm_t(xn, wqkv_ref[0, 1 * num_heads + h])
        vh = _mm_t(xn, wqkv_ref[0, 2 * num_heads + h]) * mask   # mask on values
        q3 = qh.reshape(block_centers, seq, head_dim).astype(bf16)
        k3 = kh.reshape(block_centers, seq, head_dim).astype(bf16)
        v3 = vh.reshape(block_centers, seq, head_dim).astype(bf16)
        s = jnp.einsum("bqd,bkd->bqk", q3, k3,
                       preferred_element_type=jnp.float32)      # (Bt, S, S)
        p = _softmax_kernel(s).astype(bf16)
        oh = jnp.einsum("bqk,bkd->bqd", p, v3,
                        preferred_element_type=jnp.float32)     # (Bt, S, hd)
        # out-projection contribution of this head: (rows,hd) x (H,hd)^T
        attn_out = attn_out + _mm_t(
            oh.reshape(rows, head_dim).astype(bf16), wout_ref[0, h])

    x = (attn_out + x) * SQRT_HALF                       # residual, nanopet scaling

    # ---------------- FeedForwardBlock (pre-LN) ----------------
    xn2 = _layer_norm(x, ln2w_ref[0, 0], ln2b_ref[0, 0]).astype(bf16)
    hmid = _gelu_exact(_mm_t(xn2, w1_ref[0]) + b1_ref[0, 0])
    ff = _mm_t(hmid.astype(bf16), w2_ref[0]) + b2_ref[0, 0]
    x = (ff + x) * SQRT_HALF

    # TODO(synk): dropout / attention-dropout are identity in eval mode; RNG-based
    # training dropout is not implemented.

    o_ref[...] = x.reshape(block_centers, seq, hidden)


# ------------------------- parameter preparation (one-time) ---------------------
def prepare_params(params, num_heads):
    """One-time host/XLA-level parameter prep (outside the kernel):
      * reshape the fused q/k/v projection to per-head (hd, H) slabs,
      * fold the 1/sqrt(head_dim) attention scale into the q weights,
      * reshape the out-projection per head to (NH, H, hd),
      * store all matmul weights in bf16 (they hit the MXU in bf16 anyway)."""
    L, _, H = params["wqkv"].shape
    hd = H // num_heads
    scale = 1.0 / math.sqrt(hd)
    wqkv = params["wqkv"].astype(jnp.float32).reshape(L, 3, num_heads, hd, H)
    wqkv = wqkv.at[:, 0].multiply(scale)                 # fold scale into q
    wqkv = wqkv.reshape(L, 3 * num_heads, hd, H)
    wout = params["wout"].astype(jnp.float32).reshape(L, H, num_heads, hd)
    wout = jnp.transpose(wout, (0, 2, 1, 3))             # (L, NH, H, hd)
    return {
        "ln1_w": params["ln1_w"].astype(jnp.float32),
        "ln1_b": params["ln1_b"].astype(jnp.float32),
        "wqkv": wqkv.astype(jnp.bfloat16),
        "wout": wout.astype(jnp.bfloat16),
        "ln2_w": params["ln2_w"].astype(jnp.float32),
        "ln2_b": params["ln2_b"].astype(jnp.float32),
        "w1": params["w1"].astype(jnp.bfloat16),
        "b1": params["b1"].astype(jnp.float32),
        "w2": params["w2"].astype(jnp.bfloat16),
        "b2": params["b2"].astype(jnp.float32),
    }


# --------------------------------- wrapper --------------------------------------
def _vmem_working_set_bytes(Bt, S, H, I, NH):
    """Rough VMEM working-set estimate for one grid step (double-buffered)."""
    rows = Bt * S
    w_bytes = (3 * H * H + H * H + I * H + H * I) * 2      # bf16 matmul weights / layer
    small = (4 * H + I + H) * 4                            # LN params + biases (f32)
    io = 2 * rows * H * 4 + rows * 4                       # x block + o block + mask
    buffered = 2 * (w_bytes + small + io)                  # pipeline double-buffering
    acts = rows * (6 * H + 2 * I) * 4 + 2 * Bt * S * S * 4 # qkv/mlp/softmax temporaries
    return buffered + acts


def _pick_block_centers(B, S, H, I, NH, vmem_budget_bytes):
    """Largest divisor of B whose working set fits the VMEM budget.
    (On single-TC chips more batch blocks only multiply per-layer weight
    re-DMA, so maximize Bt; pass block_centers explicitly if you want >=2
    blocks for v7x's two TensorCores.)"""
    divs = [d for d in range(1, B + 1) if B % d == 0]
    fitting = [d for d in divs
               if _vmem_working_set_bytes(d, S, H, I, NH) <= vmem_budget_bytes]
    return max(fitting) if fitting else 1


def transformer_pallas(x, radial_mask, prepared, num_heads, block_centers=None,
                       vmem_budget_bytes=40 << 20):
    B, S, H = x.shape
    L = prepared["wqkv"].shape[0]
    I = prepared["w1"].shape[1]

    if block_centers is None:
        block_centers = _pick_block_centers(B, S, H, I, num_heads, vmem_budget_bytes)
    Bt = block_centers
    assert B % Bt == 0

    kernel = functools.partial(
        _transformer_kernel, hidden=H, num_heads=num_heads,
        block_centers=Bt, seq=S)

    batch_map3 = lambda b, l: (b, 0, 0)     # arrays indexed by center block (data)
    layer_map3 = lambda b, l: (l, 0, 0)     # arrays indexed by layer (weights)
    layer_map4 = lambda b, l: (l, 0, 0, 0)

    in_specs = [
        pl.BlockSpec((Bt, S, H), batch_map3),                  # inputs
        pl.BlockSpec((Bt, S, 1), batch_map3),                  # radial_mask (B, S, 1)
        pl.BlockSpec((1, 1, H), layer_map3),                   # ln1 weight
        pl.BlockSpec((1, 1, H), layer_map3),                   # ln1 bias
        pl.BlockSpec((1, 3 * num_heads, H // num_heads, H), layer_map4),  # qkv (bf16)
        pl.BlockSpec((1, num_heads, H, H // num_heads), layer_map4),      # out proj (bf16)
        pl.BlockSpec((1, 1, H), layer_map3),                   # ln2 weight
        pl.BlockSpec((1, 1, H), layer_map3),                   # ln2 bias
        pl.BlockSpec((1, I, H), layer_map3),                   # mlp linear1 weight (bf16)
        pl.BlockSpec((1, 1, I), layer_map3),                   # mlp linear1 bias
        pl.BlockSpec((1, H, I), layer_map3),                   # mlp linear2 weight (bf16)
        pl.BlockSpec((1, 1, H), layer_map3),                   # mlp linear2 bias
    ]
    out_specs = pl.BlockSpec((Bt, S, H), batch_map3)

    ws = _vmem_working_set_bytes(Bt, S, H, I, num_heads)
    vmem_limit = int(min(64 << 20, max(32 << 20, 1.5 * ws + (2 << 20))))

    return pl.pallas_call(
        kernel,
        out_shape=jax.ShapeDtypeStruct((B, S, H), jnp.float32),
        grid_spec=pltpu.PrefetchScalarGridSpec(
            num_scalar_prefetch=0,
            grid=(B // Bt, L),           # center blocks parallel, layers sequential
            in_specs=in_specs,
            out_specs=out_specs,
        ),
        compiler_params=pltpu.CompilerParams(
            dimension_semantics=("parallel", "arbitrary"),
            vmem_limit_bytes=vmem_limit),
    )(
        x, radial_mask.reshape(B, S, 1),
        prepared["ln1_w"], prepared["ln1_b"], prepared["wqkv"], prepared["wout"],
        prepared["ln2_w"], prepared["ln2_b"], prepared["w1"], prepared["b1"],
        prepared["w2"], prepared["b2"],
    )


# ------------------------------ pure-JAX reference -------------------------------
def transformer_ref(x, mask, params, num_heads):
    B, S, H = x.shape
    L = params["wqkv"].shape[0]
    hd = H // num_heads
    scale = 1.0 / math.sqrt(hd)
    out = x
    for l in range(L):
        x_in = out
        xn = _layer_norm(x_in, params["ln1_w"][l, 0], params["ln1_b"][l, 0])
        qkv = jnp.einsum("bsh,oh->bso", xn, params["wqkv"][l])
        q, k, v = jnp.split(qkv, 3, axis=-1)
        v = v * mask[:, :, None]
        sh = lambda t: t.reshape(B, S, num_heads, hd).transpose(0, 2, 1, 3)
        q, k, v = sh(q), sh(k), sh(v)
        s = jnp.einsum("bnqd,bnkd->bnqk", q, k) * scale
        p = _softmax_ref(s)
        a = jnp.einsum("bnqk,bnkd->bnqd", p, v).transpose(0, 2, 1, 3).reshape(B, S, H)
        attn_out = jnp.einsum("bsh,oh->bso", a, params["wout"][l])
        x_mid = (attn_out + x_in) * SQRT_HALF
        xn2 = _layer_norm(x_mid, params["ln2_w"][l, 0], params["ln2_b"][l, 0])
        hmid = _gelu_exact(
            jnp.einsum("bsh,ih->bsi", xn2, params["w1"][l]) + params["b1"][l, 0])
        ff = jnp.einsum("bsi,hi->bsh", hmid, params["w2"][l]) + params["b2"][l, 0]
        out = (ff + x_mid) * SQRT_HALF
    return out


# -------------------------------- parameter init ---------------------------------
def init_params(key, hidden, intermediate, num_layers):
    ks = jax.random.split(key, 10)
    nrm = lambda k, shape, s: (s * jax.random.normal(k, shape)).astype(jnp.float32)
    hs = 1.0 / math.sqrt(hidden)
    is_ = 1.0 / math.sqrt(intermediate)
    return {
        "ln1_w": 1.0 + nrm(ks[0], (num_layers, 1, hidden), 0.05),
        "ln1_b": nrm(ks[1], (num_layers, 1, hidden), 0.05),
        "wqkv": nrm(ks[2], (num_layers, 3 * hidden, hidden), hs),
        "wout": nrm(ks[3], (num_layers, hidden, hidden), hs),
        "ln2_w": 1.0 + nrm(ks[4], (num_layers, 1, hidden), 0.05),
        "ln2_b": nrm(ks[5], (num_layers, 1, hidden), 0.05),
        "w1": nrm(ks[6], (num_layers, intermediate, hidden), hs),
        "b1": nrm(ks[7], (num_layers, 1, intermediate), 0.05),
        "w2": nrm(ks[8], (num_layers, hidden, intermediate), is_),
        "b2": nrm(ks[9], (num_layers, 1, hidden), 0.05),
    }


if __name__ == "__main__":
    # centers, neighbors, hidden, intermediate, heads, layers
    B, S, H, I, NH, L = 8, 8, 32, 64, 4, 2
    key = jax.random.PRNGKey(0)
    k_x, k_m, k_p = jax.random.split(key, 3)
    x = jax.random.normal(k_x, (B, S, H), dtype=jnp.float32)
    radial_mask = jax.random.uniform(k_m, (B, S), dtype=jnp.float32,
                                     minval=0.1, maxval=1.0)
    params = init_params(k_p, H, I, L)
    prepared = prepare_params(params, NH)     # one-time: bf16 weights + folded scale

    out = transformer_pallas(x, radial_mask, prepared, NH)
    out = jax.block_until_ready(out)

    ref = transformer_ref(x, radial_mask, params, NH)
    # bf16 MXU operands (weights stored bf16) + approx reciprocal in the kernel
    # vs the f32 reference: accumulation stays f32, so drift is small but nonzero.
    np.testing.assert_allclose(np.asarray(out), np.asarray(ref), rtol=3e-2, atol=3e-2)
    print("KERNEL_OK")
</pallas_src>

<mosaic_0001>
module attributes {stable_mosaic.version = 11 : i64} {
  func.func @_transformer_kernel(%arg0: i32, %arg1: i32, %arg2: memref<8x8x32xf32, #tpu.memory_space<vmem>>, %arg3: memref<8x8x1xf32, #tpu.memory_space<vmem>>, %arg4: memref<1x1x32xf32, #tpu.memory_space<vmem>>, %arg5: memref<1x1x32xf32, #tpu.memory_space<vmem>>, %arg6: memref<1x12x8x32xbf16, #tpu.memory_space<vmem>>, %arg7: memref<1x4x32x8xbf16, #tpu.memory_space<vmem>>, %arg8: memref<1x1x32xf32, #tpu.memory_space<vmem>>, %arg9: memref<1x1x32xf32, #tpu.memory_space<vmem>>, %arg10: memref<1x64x32xbf16, #tpu.memory_space<vmem>>, %arg11: memref<1x1x64xf32, #tpu.memory_space<vmem>>, %arg12: memref<1x32x64xbf16, #tpu.memory_space<vmem>>, %arg13: memref<1x1x32xf32, #tpu.memory_space<vmem>>, %arg14: memref<8x8x32xf32, #tpu.memory_space<vmem>>) attributes {dimension_semantics = [#tpu.dimension_semantics<parallel>, #tpu.dimension_semantics<arbitrary>], iteration_bounds = array<i64: 1, 2>, scalar_prefetch = 0 : i64, scratch_operands = 0 : i64, tpu.core_type = #tpu.core_type<tc>, window_params = [{transform_indices = @transform_0, window_bounds = array<i64: 8, 8, 32>}, {transform_indices = @transform_1, window_bounds = array<i64: 8, 8, 1>}, {transform_indices = @transform_2, window_bounds = array<i64: 1, 1, 32>}, {transform_indices = @transform_3, window_bounds = array<i64: 1, 1, 32>}, {transform_indices = @transform_4, window_bounds = array<i64: 1, 12, 8, 32>}, {transform_indices = @transform_5, window_bounds = array<i64: 1, 4, 32, 8>}, {transform_indices = @transform_6, window_bounds = array<i64: 1, 1, 32>}, {transform_indices = @transform_7, window_bounds = array<i64: 1, 1, 32>}, {transform_indices = @transform_8, window_bounds = array<i64: 1, 64, 32>}, {transform_indices = @transform_9, window_bounds = array<i64: 1, 1, 64>}, {transform_indices = @transform_10, window_bounds = array<i64: 1, 32, 64>}, {transform_indices = @transform_11, window_bounds = array<i64: 1, 1, 32>}, {transform_indices = @transform_12, window_bounds = array<i64: 8, 8, 32>}]} {
    %c0_i32 = arith.constant 0 : i32
    %0 = arith.cmpi eq, %arg1, %c0_i32 : i32
    %1 = arith.extui %0 : i1 to i32
    %c0_i32_0 = arith.constant 0 : i32
    %2 = arith.cmpi ne, %1, %c0_i32_0 : i32
    scf.if %2 {
      %c0_135 = arith.constant 0 : index
      %c0_136 = arith.constant 0 : index
      %c0_137 = arith.constant 0 : index
      %243 = vector.load %arg2[%c0_135, %c0_136, %c0_137] : memref<8x8x32xf32, #tpu.memory_space<vmem>>, vector<8x8x32xf32>
      %c0_138 = arith.constant 0 : index
      %c0_139 = arith.constant 0 : index
      %c0_140 = arith.constant 0 : index
      %244 = vector.load %arg14[%c0_138, %c0_139, %c0_140] : memref<8x8x32xf32, #tpu.memory_space<vmem>>, vector<8x8x32xf32>
      tpu.vector_store %arg14[%c0_138, %c0_139, %c0_140], %243 {strides = array<i32>} : memref<8x8x32xf32, #tpu.memory_space<vmem>>, vector<8x8x32xf32>,
    } else {
    }
    %c0 = arith.constant 0 : index
    %c0_1 = arith.constant 0 : index
    %c0_2 = arith.constant 0 : index
    %3 = vector.load %arg14[%c0, %c0_1, %c0_2] : memref<8x8x32xf32, #tpu.memory_space<vmem>>, vector<8x8x32xf32>
    %4 = vector.shape_cast %3 : vector<8x8x32xf32> to vector<64x32xf32>
    %c0_3 = arith.constant 0 : index
    %c0_4 = arith.constant 0 : index
    %c0_5 = arith.constant 0 : index
    %5 = vector.load %arg3[%c0_3, %c0_4, %c0_5] : memref<8x8x1xf32, #tpu.memory_space<vmem>>, vector<8x8x1xf32>
    %6 = vector.shape_cast %5 : vector<8x8x1xf32> to vector<64x1xf32>
    %c0_6 = arith.constant 0 : index
    %c0_7 = arith.constant 0 : index
    %c0_8 = arith.constant 0 : index
    %7 = vector.load %arg4[%c0_6, %c0_7, %c0_8] : memref<1x1x32xf32, #tpu.memory_space<vmem>>, vector<1x1x32xf32>
    %8 = vector.shape_cast %7 : vector<1x1x32xf32> to vector<32xf32>
    %c0_9 = arith.constant 0 : index
    %c0_10 = arith.constant 0 : index
    %c0_11 = arith.constant 0 : index
    %9 = vector.load %arg5[%c0_9, %c0_10, %c0_11] : memref<1x1x32xf32, #tpu.memory_space<vmem>>, vector<1x1x32xf32>
    %10 = vector.shape_cast %9 : vector<1x1x32xf32> to vector<32xf32>
    %cst = arith.constant dense<0.000000e+00> : vector<64xf32>
    %11 = vector.multi_reduction <add>, %4, %cst [1] : vector<64x32xf32> to vector<64xf32>
    %12 = vector.shape_cast %11 : vector<64xf32> to vector<64x1xf32>
    %cst_12 = arith.constant 3.200000e+01 : f32
    %13 = vector.broadcast %cst_12 : f32 to vector<64x1xf32>
    %14 = arith.divf %12, %13 : vector<64x1xf32>
    %15 = vector.broadcast %14 : vector<64x1xf32> to vector<64x32xf32>
    %16 = arith.subf %4, %15 : vector<64x32xf32>
    %17 = arith.mulf %16, %16 : vector<64x32xf32>
    %cst_13 = arith.constant dense<0.000000e+00> : vector<64xf32>
    %18 = vector.multi_reduction <add>, %17, %cst_13 [1] : vector<64x32xf32> to vector<64xf32>
    %19 = vector.shape_cast %18 : vector<64xf32> to vector<64x1xf32>
    %cst_14 = arith.constant 3.200000e+01 : f32
    %20 = vector.broadcast %cst_14 : f32 to vector<64x1xf32>
    %21 = arith.divf %19, %20 : vector<64x1xf32>
    %22 = vector.broadcast %14 : vector<64x1xf32> to vector<64x32xf32>
    %23 = arith.subf %4, %22 : vector<64x32xf32>
    %cst_15 = arith.constant 9.99999974E-6 : f32
    %24 = vector.broadcast %cst_15 : f32 to vector<64x1xf32>
    %25 = arith.addf %21, %24 : vector<64x1xf32>
    %26 = math.rsqrt %25 : vector<64x1xf32>
    %27 = vector.broadcast %26 : vector<64x1xf32> to vector<64x32xf32>
    %28 = arith.mulf %23, %27 : vector<64x32xf32>
    %29 = vector.shape_cast %8 : vector<32xf32> to vector<1x32xf32>
    %30 = vector.broadcast %29 : vector<1x32xf32> to vector<64x32xf32>
    %31 = arith.mulf %28, %30 : vector<64x32xf32>
    %32 = vector.shape_cast %10 : vector<32xf32> to vector<1x32xf32>
    %33 = vector.broadcast %32 : vector<1x32xf32> to vector<64x32xf32>
    %34 = arith.addf %31, %33 : vector<64x32xf32>
    %35 = arith.truncf %34 : vector<64x32xf32> to vector<64x32xbf16>
    %cst_16 = arith.constant 0.000000e+00 : f32
    %36 = vector.broadcast %cst_16 : f32 to vector<64x32xf32>
    %c0_17 = arith.constant 0 : index
    %c0_18 = arith.constant 0 : index
    %c0_19 = arith.constant 0 : index
    %c0_20 = arith.constant 0 : index
    %37 = vector.load %arg6[%c0_17, %c0_18, %c0_19, %c0_20] : memref<1x12x8x32xbf16, #tpu.memory_space<vmem>>, vector<1x1x8x32xbf16>
    %38 = vector.shape_cast %37 : vector<1x1x8x32xbf16> to vector<8x32xbf16>
    %cst_21 = arith.constant dense<0.000000e+00> : vector<64x8xf32>
    %39 = tpu.matmul %35, %38, %cst_21 {dimension_numbers = #tpu.dot_dimension_numbers<[1], [1], [0], [0], [0, 0, 1, 0], [], []>} : vector<64x32xbf16>, vector<8x32xbf16>, vector<64x8xf32> -> vector<64x8xf32>
    %c0_22 = arith.constant 0 : index
    %c4 = arith.constant 4 : index
    %c0_23 = arith.constant 0 : index
    %c0_24 = arith.constant 0 : index
    %40 = vector.load %arg6[%c0_22, %c4, %c0_23, %c0_24] : memref<1x12x8x32xbf16, #tpu.memory_space<vmem>>, vector<1x1x8x32xbf16>
    %41 = vector.shape_cast %40 : vector<1x1x8x32xbf16> to vector<8x32xbf16>
    %cst_25 = arith.constant dense<0.000000e+00> : vector<64x8xf32>
    %42 = tpu.matmul %35, %41, %cst_25 {dimension_numbers = #tpu.dot_dimension_numbers<[1], [1], [0], [0], [0, 0, 1, 0], [], []>} : vector<64x32xbf16>, vector<8x32xbf16>, vector<64x8xf32> -> vector<64x8xf32>
    %c0_26 = arith.constant 0 : index
    %c8 = arith.constant 8 : index
    %c0_27 = arith.constant 0 : index
    %c0_28 = arith.constant 0 : index
    %43 = vector.load %arg6[%c0_26, %c8, %c0_27, %c0_28] : memref<1x12x8x32xbf16, #tpu.memory_space<vmem>>, vector<1x1x8x32xbf16>
    %44 = vector.shape_cast %43 : vector<1x1x8x32xbf16> to vector<8x32xbf16>
    %cst_29 = arith.constant dense<0.000000e+00> : vector<64x8xf32>
    %45 = tpu.matmul %35, %44, %cst_29 {dimension_numbers = #tpu.dot_dimension_numbers<[1], [1], [0], [0], [0, 0, 1, 0], [], []>} : vector<64x32xbf16>, vector<8x32xbf16>, vector<64x8xf32> -> vector<64x8xf32>
    %46 = vector.broadcast %6 : vector<64x1xf32> to vector<64x8xf32>
    %47 = arith.mulf %45, %46 : vector<64x8xf32>
    %48 = vector.shape_cast %39 : vector<64x8xf32> to vector<8x8x8xf32>
    %49 = arith.truncf %48 : vector<8x8x8xf32> to vector<8x8x8xbf16>
    %50 = vector.shape_cast %42 : vector<64x8xf32> to vector<8x8x8xf32>
    %51 = arith.truncf %50 : vector<8x8x8xf32> to vector<8x8x8xbf16>
    %52 = vector.shape_cast %47 : vector<64x8xf32> to vector<8x8x8xf32>
    %53 = arith.truncf %52 : vector<8x8x8xf32> to vector<8x8x8xbf16>
    "tpu.trace_start"() <{level = 10 : i32, message = "bqd,bkd->bqk"}> : () -> ()
    %cst_30 = arith.constant dense<0.000000e+00> : vector<8x8x8xf32>
    %54 = tpu.matmul %49, %51, %cst_30 {dimension_numbers = #tpu.dot_dimension_numbers<[2], [2], [1], [1], [0, 0, 0, 1, 1, 1], [0], [0]>} : vector<8x8x8xbf16>, vector<8x8x8xbf16>, vector<8x8x8xf32> -> vector<8x8x8xf32>
    "tpu.trace_stop"() : () -> ()
    %cst_31 = arith.constant dense<0xFF800000> : vector<8x8xf32>
    %55 = vector.multi_reduction <maximumf>, %54, %cst_31 [2] : vector<8x8x8xf32> to vector<8x8xf32>
    %56 = vector.shape_cast %55 : vector<8x8xf32> to vector<8x8x1xf32>
    %57 = vector.broadcast %56 : vector<8x8x1xf32> to vector<8x8x8xf32>
    %58 = arith.subf %54, %57 : vector<8x8x8xf32>
    %59 = math.exp %58 : vector<8x8x8xf32>
    %cst_32 = arith.constant dense<0.000000e+00> : vector<8x8xf32>
    %60 = vector.multi_reduction <add>, %59, %cst_32 [2] : vector<8x8x8xf32> to vector<8x8xf32>
    %61 = vector.shape_cast %60 : vector<8x8xf32> to vector<8x8x1xf32>
    %62 = tpu.reciprocal %61 {approx = true} : vector<8x8x1xf32> -> vector<8x8x1xf32>
    %63 = vector.broadcast %62 : vector<8x8x1xf32> to vector<8x8x8xf32>
    %64 = arith.mulf %59, %63 : vector<8x8x8xf32>
    %65 = arith.truncf %64 : vector<8x8x8xf32> to vector<8x8x8xbf16>
    "tpu.trace_start"() <{level = 10 : i32, message = "bqk,bkd->bqd"}> : () -> ()
    %cst_33 = arith.constant dense<0.000000e+00> : vector<8x8x8xf32>
    %66 = tpu.matmul %65, %53, %cst_33 {dimension_numbers = #tpu.dot_dimension_numbers<[2], [1], [1], [2], [0, 0, 0, 1, 1, 2], [0], [0]>} : vector<8x8x8xbf16>, vector<8x8x8xbf16>, vector<8x8x8xf32> -> vector<8x8x8xf32>
    "tpu.trace_stop"() : () -> ()
    %67 = vector.shape_cast %66 : vector<8x8x8xf32> to vector<64x8xf32>
    %68 = arith.truncf %67 : vector<64x8xf32> to vector<64x8xbf16>
    %c0_34 = arith.constant 0 : index
    %c0_35 = arith.constant 0 : index
    %c0_36 = arith.constant 0 : index
    %c0_37 = arith.constant 0 : index
    %69 = vector.load %arg7[%c0_34, %c0_35, %c0_36, %c0_37] : memref<1x4x32x8xbf16, #tpu.memory_space<vmem>>, vector<1x1x32x8xbf16>
    %70 = vector.shape_cast %69 : vector<1x1x32x8xbf16> to vector<32x8xbf16>
    %cst_38 = arith.constant dense<0.000000e+00> : vector<64x32xf32>
    %71 = tpu.matmul %68, %70, %cst_38 {dimension_numbers = #tpu.dot_dimension_numbers<[1], [1], [0], [0], [0, 0, 1, 0], [], []>} : vector<64x8xbf16>, vector<32x8xbf16>, vector<64x32xf32> -> vector<64x32xf32>
    %72 = arith.addf %36, %71 : vector<64x32xf32>
    %c0_39 = arith.constant 0 : index
    %c1 = arith.constant 1 : index
    %c0_40 = arith.constant 0 : index
    %c0_41 = arith.constant 0 : index
    %73 = vector.load %arg6[%c0_39, %c1, %c0_40, %c0_41] : memref<1x12x8x32xbf16, #tpu.memory_space<vmem>>, vector<1x1x8x32xbf16>
    %74 = vector.shape_cast %73 : vector<1x1x8x32xbf16> to vector<8x32xbf16>
    %cst_42 = arith.constant dense<0.000000e+00> : vector<64x8xf32>
    %75 = tpu.matmul %35, %74, %cst_42 {dimension_numbers = #tpu.dot_dimension_numbers<[1], [1], [0], [0], [0, 0, 1, 0], [], []>} : vector<64x32xbf16>, vector<8x32xbf16>, vector<64x8xf32> -> vector<64x8xf32>
    %c0_43 = arith.constant 0 : index
    %c5 = arith.constant 5 : index
    %c0_44 = arith.constant 0 : index
    %c0_45 = arith.constant 0 : index
    %76 = vector.load %arg6[%c0_43, %c5, %c0_44, %c0_45] : memref<1x12x8x32xbf16, #tpu.memory_space<vmem>>, vector<1x1x8x32xbf16>
    %77 = vector.shape_cast %76 : vector<1x1x8x32xbf16> to vector<8x32xbf16>
    %cst_46 = arith.constant dense<0.000000e+00> : vector<64x8xf32>
    %78 = tpu.matmul %35, %77, %cst_46 {dimension_numbers = #tpu.dot_dimension_numbers<[1], [1], [0], [0], [0, 0, 1, 0], [], []>} : vector<64x32xbf16>, vector<8x32xbf16>, vector<64x8xf32> -> vector<64x8xf32>
    %c0_47 = arith.constant 0 : index
    %c9 = arith.constant 9 : index
    %c0_48 = arith.constant 0 : index
    %c0_49 = arith.constant 0 : index
    %79 = vector.load %arg6[%c0_47, %c9, %c0_48, %c0_49] : memref<1x12x8x32xbf16, #tpu.memory_space<vmem>>, vector<1x1x8x32xbf16>
    %80 = vector.shape_cast %79 : vector<1x1x8x32xbf16> to vector<8x32xbf16>
    %cst_50 = arith.constant dense<0.000000e+00> : vector<64x8xf32>
    %81 = tpu.matmul %35, %80, %cst_50 {dimension_numbers = #tpu.dot_dimension_numbers<[1], [1], [0], [0], [0, 0, 1, 0], [], []>} : vector<64x32xbf16>, vector<8x32xbf16>, vector<64x8xf32> -> vector<64x8xf32>
    %82 = vector.broadcast %6 : vector<64x1xf32> to vector<64x8xf32>
    %83 = arith.mulf %81, %82 : vector<64x8xf32>
    %84 = vector.shape_cast %75 : vector<64x8xf32> to vector<8x8x8xf32>
    %85 = arith.truncf %84 : vector<8x8x8xf32> to vector<8x8x8xbf16>
    %86 = vector.shape_cast %78 : vector<64x8xf32> to vector<8x8x8xf32>
    %87 = arith.truncf %86 : vector<8x8x8xf32> to vector<8x8x8xbf16>
    %88 = vector.shape_cast %83 : vector<64x8xf32> to vector<8x8x8xf32>
    %89 = arith.truncf %88 : vector<8x8x8xf32> to vector<8x8x8xbf16>
    "tpu.trace_start"() <{level = 10 : i32, message = "bqd,bkd->bqk"}> : () -> ()
    %cst_51 = arith.constant dense<0.000000e+00> : vector<8x8x8xf32>
    %90 = tpu.matmul %85, %87, %cst_51 {dimension_numbers = #tpu.dot_dimension_numbers<[2], [2], [1], [1], [0, 0, 0, 1, 1, 1], [0], [0]>} : vector<8x8x8xbf16>, vector<8x8x8xbf16>, vector<8x8x8xf32> -> vector<8x8x8xf32>
    "tpu.trace_stop"() : () -> ()
    %cst_52 = arith.constant dense<0xFF800000> : vector<8x8xf32>
    %91 = vector.multi_reduction <maximumf>, %90, %cst_52 [2] : vector<8x8x8xf32> to vector<8x8xf32>
    %92 = vector.shape_cast %91 : vector<8x8xf32> to vector<8x8x1xf32>
    %93 = vector.broadcast %92 : vector<8x8x1xf32> to vector<8x8x8xf32>
    %94 = arith.subf %90, %93 : vector<8x8x8xf32>
    %95 = math.exp %94 : vector<8x8x8xf32>
    %cst_53 = arith.constant dense<0.000000e+00> : vector<8x8xf32>
    %96 = vector.multi_reduction <add>, %95, %cst_53 [2] : vector<8x8x8xf32> to vector<8x8xf32>
    %97 = vector.shape_cast %96 : vector<8x8xf32> to vector<8x8x1xf32>
    %98 = tpu.reciprocal %97 {approx = true} : vector<8x8x1xf32> -> vector<8x8x1xf32>
    %99 = vector.broadcast %98 : vector<8x8x1xf32> to vector<8x8x8xf32>
    %100 = arith.mulf %95, %99 : vector<8x8x8xf32>
    %101 = arith.truncf %100 : vector<8x8x8xf32> to vector<8x8x8xbf16>
    "tpu.trace_start"() <{level = 10 : i32, message = "bqk,bkd->bqd"}> : () -> ()
    %cst_54 = arith.constant dense<0.000000e+00> : vector<8x8x8xf32>
    %102 = tpu.matmul %101, %89, %cst_54 {dimension_numbers = #tpu.dot_dimension_numbers<[2], [1], [1], [2], [0, 0, 0, 1, 1, 2], [0], [0]>} : vector<8x8x8xbf16>, vector<8x8x8xbf16>, vector<8x8x8xf32> -> vector<8x8x8xf32>
    "tpu.trace_stop"() : () -> ()
    %103 = vector.shape_cast %102 : vector<8x8x8xf32> to vector<64x8xf32>
    %104 = arith.truncf %103 : vector<64x8xf32> to vector<64x8xbf16>
    %c0_55 = arith.constant 0 : index
    %c1_56 = arith.constant 1 : index
    %c0_57 = arith.constant 0 : index
    %c0_58 = arith.constant 0 : index
    %105 = vector.load %arg7[%c0_55, %c1_56, %c0_57, %c0_58] : memref<1x4x32x8xbf16, #tpu.memory_space<vmem>>, vector<1x1x32x8xbf16>
    %106 = vector.shape_cast %105 : vector<1x1x32x8xbf16> to vector<32x8xbf16>
    %cst_59 = arith.constant dense<0.000000e+00> : vector<64x32xf32>
    %107 = tpu.matmul %104, %106, %cst_59 {dimension_numbers = #tpu.dot_dimension_numbers<[1], [1], [0], [0], [0, 0, 1, 0], [], []>} : vector<64x8xbf16>, vector<32x8xbf16>, vector<64x32xf32> -> vector<64x32xf32>
    %108 = arith.addf %72, %107 : vector<64x32xf32>
    %c0_60 = arith.constant 0 : index
    %c2 = arith.constant 2 : index
    %c0_61 = arith.constant 0 : index
    %c0_62 = arith.constant 0 : index
    %109 = vector.load %arg6[%c0_60, %c2, %c0_61, %c0_62] : memref<1x12x8x32xbf16, #tpu.memory_space<vmem>>, vector<1x1x8x32xbf16>
    %110 = vector.shape_cast %109 : vector<1x1x8x32xbf16> to vector<8x32xbf16>
    %cst_63 = arith.constant dense<0.000000e+00> : vector<64x8xf32>
    %111 = tpu.matmul %35, %110, %cst_63 {dimension_numbers = #tpu.dot_dimension_numbers<[1], [1], [0], [0], [0, 0, 1, 0], [], []>} : vector<64x32xbf16>, vector<8x32xbf16>, vector<64x8xf32> -> vector<64x8xf32>
    %c0_64 = arith.constant 0 : index
    %c6 = arith.constant 6 : index
    %c0_65 = arith.constant 0 : index
    %c0_66 = arith.constant 0 : index
    %112 = vector.load %arg6[%c0_64, %c6, %c0_65, %c0_66] : memref<1x12x8x32xbf16, #tpu.memory_space<vmem>>, vector<1x1x8x32xbf16>
    %113 = vector.shape_cast %112 : vector<1x1x8x32xbf16> to vector<8x32xbf16>
    %cst_67 = arith.constant dense<0.000000e+00> : vector<64x8xf32>
    %114 = tpu.matmul %35, %113, %cst_67 {dimension_numbers = #tpu.dot_dimension_numbers<[1], [1], [0], [0], [0, 0, 1, 0], [], []>} : vector<64x32xbf16>, vector<8x32xbf16>, vector<64x8xf32> -> vector<64x8xf32>
    %c0_68 = arith.constant 0 : index
    %c10 = arith.constant 10 : index
    %c0_69 = arith.constant 0 : index
    %c0_70 = arith.constant 0 : index
    %115 = vector.load %arg6[%c0_68, %c10, %c0_69, %c0_70] : memref<1x12x8x32xbf16, #tpu.memory_space<vmem>>, vector<1x1x8x32xbf16>
    %116 = vector.shape_cast %115 : vector<1x1x8x32xbf16> to vector<8x32xbf16>
    %cst_71 = arith.constant dense<0.000000e+00> : vector<64x8xf32>
    %117 = tpu.matmul %35, %116, %cst_71 {dimension_numbers = #tpu.dot_dimension_numbers<[1], [1], [0], [0], [0, 0, 1, 0], [], []>} : vector<64x32xbf16>, vector<8x32xbf16>, vector<64x8xf32> -> vector<64x8xf32>
    %118 = vector.broadcast %6 : vector<64x1xf32> to vector<64x8xf32>
    %119 = arith.mulf %117, %118 : vector<64x8xf32>
    %120 = vector.shape_cast %111 : vector<64x8xf32> to vector<8x8x8xf32>
    %121 = arith.truncf %120 : vector<8x8x8xf32> to vector<8x8x8xbf16>
    %122 = vector.shape_cast %114 : vector<64x8xf32> to vector<8x8x8xf32>
    %123 = arith.truncf %122 : vector<8x8x8xf32> to vector<8x8x8xbf16>
    %124 = vector.shape_cast %119 : vector<64x8xf32> to vector<8x8x8xf32>
    %125 = arith.truncf %124 : vector<8x8x8xf32> to vector<8x8x8xbf16>
    "tpu.trace_start"() <{level = 10 : i32, message = "bqd,bkd->bqk"}> : () -> ()
    %cst_72 = arith.constant dense<0.000000e+00> : vector<8x8x8xf32>
    %126 = tpu.matmul %121, %123, %cst_72 {dimension_numbers = #tpu.dot_dimension_numbers<[2], [2], [1], [1], [0, 0, 0, 1, 1, 1], [0], [0]>} : vector<8x8x8xbf16>, vector<8x8x8xbf16>, vector<8x8x8xf32> -> vector<8x8x8xf32>
    "tpu.trace_stop"() : () -> ()
    %cst_73 = arith.constant dense<0xFF800000> : vector<8x8xf32>
    %127 = vector.multi_reduction <maximumf>, %126, %cst_73 [2] : vector<8x8x8xf32> to vector<8x8xf32>
    %128 = vector.shape_cast %127 : vector<8x8xf32> to vector<8x8x1xf32>
    %129 = vector.broadcast %128 : vector<8x8x1xf32> to vector<8x8x8xf32>
    %130 = arith.subf %126, %129 : vector<8x8x8xf32>
    %131 = math.exp %130 : vector<8x8x8xf32>
    %cst_74 = arith.constant dense<0.000000e+00> : vector<8x8xf32>
    %132 = vector.multi_reduction <add>, %131, %cst_74 [2] : vector<8x8x8xf32> to vector<8x8xf32>
    %133 = vector.shape_cast %132 : vector<8x8xf32> to vector<8x8x1xf32>
    %134 = tpu.reciprocal %133 {approx = true} : vector<8x8x1xf32> -> vector<8x8x1xf32>
    %135 = vector.broadcast %134 : vector<8x8x1xf32> to vector<8x8x8xf32>
    %136 = arith.mulf %131, %135 : vector<8x8x8xf32>
    %137 = arith.truncf %136 : vector<8x8x8xf32> to vector<8x8x8xbf16>
    "tpu.trace_start"() <{level = 10 : i32, message = "bqk,bkd->bqd"}> : () -> ()
    %cst_75 = arith.constant dense<0.000000e+00> : vector<8x8x8xf32>
    %138 = tpu.matmul %137, %125, %cst_75 {dimension_numbers = #tpu.dot_dimension_numbers<[2], [1], [1], [2], [0, 0, 0, 1, 1, 2], [0], [0]>} : vector<8x8x8xbf16>, vector<8x8x8xbf16>, vector<8x8x8xf32> -> vector<8x8x8xf32>
    "tpu.trace_stop"() : () -> ()
    %139 = vector.shape_cast %138 : vector<8x8x8xf32> to vector<64x8xf32>
    %140 = arith.truncf %139 : vector<64x8xf32> to vector<64x8xbf16>
    %c0_76 = arith.constant 0 : index
    %c2_77 = arith.constant 2 : index
    %c0_78 = arith.constant 0 : index
    %c0_79 = arith.constant 0 : index
    %141 = vector.load %arg7[%c0_76, %c2_77, %c0_78, %c0_79] : memref<1x4x32x8xbf16, #tpu.memory_space<vmem>>, vector<1x1x32x8xbf16>
    %142 = vector.shape_cast %141 : vector<1x1x32x8xbf16> to vector<32x8xbf16>
    %cst_80 = arith.constant dense<0.000000e+00> : vector<64x32xf32>
    %143 = tpu.matmul %140, %142, %cst_80 {dimension_numbers = #tpu.dot_dimension_numbers<[1], [1], [0], [0], [0, 0, 1, 0], [], []>} : vector<64x8xbf16>, vector<32x8xbf16>, vector<64x32xf32> -> vector<64x32xf32>
    %144 = arith.addf %108, %143 : vector<64x32xf32>
    %c0_81 = arith.constant 0 : index
    %c3 = arith.constant 3 : index
    %c0_82 = arith.constant 0 : index
    %c0_83 = arith.constant 0 : index
    %145 = vector.load %arg6[%c0_81, %c3, %c0_82, %c0_83] : memref<1x12x8x32xbf16, #tpu.memory_space<vmem>>, vector<1x1x8x32xbf16>
    %146 = vector.shape_cast %145 : vector<1x1x8x32xbf16> to vector<8x32xbf16>
    %cst_84 = arith.constant dense<0.000000e+00> : vector<64x8xf32>
    %147 = tpu.matmul %35, %146, %cst_84 {dimension_numbers = #tpu.dot_dimension_numbers<[1], [1], [0], [0], [0, 0, 1, 0], [], []>} : vector<64x32xbf16>, vector<8x32xbf16>, vector<64x8xf32> -> vector<64x8xf32>
    %c0_85 = arith.constant 0 : index
    %c7 = arith.constant 7 : index
    %c0_86 = arith.constant 0 : index
    %c0_87 = arith.constant 0 : index
    %148 = vector.load %arg6[%c0_85, %c7, %c0_86, %c0_87] : memref<1x12x8x32xbf16, #tpu.memory_space<vmem>>, vector<1x1x8x32xbf16>
    %149 = vector.shape_cast %148 : vector<1x1x8x32xbf16> to vector<8x32xbf16>
    %cst_88 = arith.constant dense<0.000000e+00> : vector<64x8xf32>
    %150 = tpu.matmul %35, %149, %cst_88 {dimension_numbers = #tpu.dot_dimension_numbers<[1], [1], [0], [0], [0, 0, 1, 0], [], []>} : vector<64x32xbf16>, vector<8x32xbf16>, vector<64x8xf32> -> vector<64x8xf32>
    %c0_89 = arith.constant 0 : index
    %c11 = arith.constant 11 : index
    %c0_90 = arith.constant 0 : index
    %c0_91 = arith.constant 0 : index
    %151 = vector.load %arg6[%c0_89, %c11, %c0_90, %c0_91] : memref<1x12x8x32xbf16, #tpu.memory_space<vmem>>, vector<1x1x8x32xbf16>
    %152 = vector.shape_cast %151 : vector<1x1x8x32xbf16> to vector<8x32xbf16>
    %cst_92 = arith.constant dense<0.000000e+00> : vector<64x8xf32>
    %153 = tpu.matmul %35, %152, %cst_92 {dimension_numbers = #tpu.dot_dimension_numbers<[1], [1], [0], [0], [0, 0, 1, 0], [], []>} : vector<64x32xbf16>, vector<8x32xbf16>, vector<64x8xf32> -> vector<64x8xf32>
    %154 = vector.broadcast %6 : vector<64x1xf32> to vector<64x8xf32>
    %155 = arith.mulf %153, %154 : vector<64x8xf32>
    %156 = vector.shape_cast %147 : vector<64x8xf32> to vector<8x8x8xf32>
    %157 = arith.truncf %156 : vector<8x8x8xf32> to vector<8x8x8xbf16>
    %158 = vector.shape_cast %150 : vector<64x8xf32> to vector<8x8x8xf32>
    %159 = arith.truncf %158 : vector<8x8x8xf32> to vector<8x8x8xbf16>
    %160 = vector.shape_cast %155 : vector<64x8xf32> to vector<8x8x8xf32>
    %161 = arith.truncf %160 : vector<8x8x8xf32> to vector<8x8x8xbf16>
    "tpu.trace_start"() <{level = 10 : i32, message = "bqd,bkd->bqk"}> : () -> ()
    %cst_93 = arith.constant dense<0.000000e+00> : vector<8x8x8xf32>
    %162 = tpu.matmul %157, %159, %cst_93 {dimension_numbers = #tpu.dot_dimension_numbers<[2], [2], [1], [1], [0, 0, 0, 1, 1, 1], [0], [0]>} : vector<8x8x8xbf16>, vector<8x8x8xbf16>, vector<8x8x8xf32> -> vector<8x8x8xf32>
    "tpu.trace_stop"() : () -> ()
    %cst_94 = arith.constant dense<0xFF800000> : vector<8x8xf32>
    %163 = vector.multi_reduction <maximumf>, %162, %cst_94 [2] : vector<8x8x8xf32> to vector<8x8xf32>
    %164 = vector.shape_cast %163 : vector<8x8xf32> to vector<8x8x1xf32>
    %165 = vector.broadcast %164 : vector<8x8x1xf32> to vector<8x8x8xf32>
    %166 = arith.subf %162, %165 : vector<8x8x8xf32>
    %167 = math.exp %166 : vector<8x8x8xf32>
    %cst_95 = arith.constant dense<0.000000e+00> : vector<8x8xf32>
    %168 = vector.multi_reduction <add>, %167, %cst_95 [2] : vector<8x8x8xf32> to vector<8x8xf32>
    %169 = vector.shape_cast %168 : vector<8x8xf32> to vector<8x8x1xf32>
    %170 = tpu.reciprocal %169 {approx = true} : vector<8x8x1xf32> -> vector<8x8x1xf32>
    %171 = vector.broadcast %170 : vector<8x8x1xf32> to vector<8x8x8xf32>
    %172 = arith.mulf %167, %171 : vector<8x8x8xf32>
    %173 = arith.truncf %172 : vector<8x8x8xf32> to vector<8x8x8xbf16>
    "tpu.trace_start"() <{level = 10 : i32, message = "bqk,bkd->bqd"}> : () -> ()
    %cst_96 = arith.constant dense<0.000000e+00> : vector<8x8x8xf32>
    %174 = tpu.matmul %173, %161, %cst_96 {dimension_numbers = #tpu.dot_dimension_numbers<[2], [1], [1], [2], [0, 0, 0, 1, 1, 2], [0], [0]>} : vector<8x8x8xbf16>, vector<8x8x8xbf16>, vector<8x8x8xf32> -> vector<8x8x8xf32>
    "tpu.trace_stop"() : () -> ()
    %175 = vector.shape_cast %174 : vector<8x8x8xf32> to vector<64x8xf32>
    %176 = arith.truncf %175 : vector<64x8xf32> to vector<64x8xbf16>
    %c0_97 = arith.constant 0 : index
    %c3_98 = arith.constant 3 : index
    %c0_99 = arith.constant 0 : index
    %c0_100 = arith.constant 0 : index
    %177 = vector.load %arg7[%c0_97, %c3_98, %c0_99, %c0_100] : memref<1x4x32x8xbf16, #tpu.memory_space<vmem>>, vector<1x1x32x8xbf16>
    %178 = vector.shape_cast %177 : vector<1x1x32x8xbf16> to vector<32x8xbf16>
    %cst_101 = arith.constant dense<0.000000e+00> : vector<64x32xf32>
    %179 = tpu.matmul %176, %178, %cst_101 {dimension_numbers = #tpu.dot_dimension_numbers<[1], [1], [0], [0], [0, 0, 1, 0], [], []>} : vector<64x8xbf16>, vector<32x8xbf16>, vector<64x32xf32> -> vector<64x32xf32>
    %180 = arith.addf %144, %179 : vector<64x32xf32>
    %181 = arith.addf %180, %4 : vector<64x32xf32>
    %cst_102 = arith.constant 0.707106769 : f32
    %182 = vector.broadcast %cst_102 : f32 to vector<64x32xf32>
    %183 = arith.mulf %181, %182 : vector<64x32xf32>
    %c0_103 = arith.constant 0 : index
    %c0_104 = arith.constant 0 : index
    %c0_105 = arith.constant 0 : index
    %184 = vector.load %arg8[%c0_103, %c0_104, %c0_105] : memref<1x1x32xf32, #tpu.memory_space<vmem>>, vector<1x1x32xf32>
    %185 = vector.shape_cast %184 : vector<1x1x32xf32> to vector<32xf32>
    %c0_106 = arith.constant 0 : index
    %c0_107 = arith.constant 0 : index
    %c0_108 = arith.constant 0 : index
    %186 = vector.load %arg9[%c0_106, %c0_107, %c0_108] : memref<1x1x32xf32, #tpu.memory_space<vmem>>, vector<1x1x32xf32>
    %187 = vector.shape_cast %186 : vector<1x1x32xf32> to vector<32xf32>
    %cst_109 = arith.constant dense<0.000000e+00> : vector<64xf32>
    %188 = vector.multi_reduction <add>, %183, %cst_109 [1] : vector<64x32xf32> to vector<64xf32>
    %189 = vector.shape_cast %188 : vector<64xf32> to vector<64x1xf32>
    %cst_110 = arith.constant 3.200000e+01 : f32
    %190 = vector.broadcast %cst_110 : f32 to vector<64x1xf32>
    %191 = arith.divf %189, %190 : vector<64x1xf32>
    %192 = vector.broadcast %191 : vector<64x1xf32> to vector<64x32xf32>
    %193 = arith.subf %183, %192 : vector<64x32xf32>
    %194 = arith.mulf %193, %193 : vector<64x32xf32>
    %cst_111 = arith.constant dense<0.000000e+00> : vector<64xf32>
    %195 = vector.multi_reduction <add>, %194, %cst_111 [1] : vector<64x32xf32> to vector<64xf32>
    %196 = vector.shape_cast %195 : vector<64xf32> to vector<64x1xf32>
    %cst_112 = arith.constant 3.200000e+01 : f32
    %197 = vector.broadcast %cst_112 : f32 to vector<64x1xf32>
    %198 = arith.divf %196, %197 : vector<64x1xf32>
    %199 = vector.broadcast %191 : vector<64x1xf32> to vector<64x32xf32>
    %200 = arith.subf %183, %199 : vector<64x32xf32>
    %cst_113 = arith.constant 9.99999974E-6 : f32
    %201 = vector.broadcast %cst_113 : f32 to vector<64x1xf32>
    %202 = arith.addf %198, %201 : vector<64x1xf32>
    %203 = math.rsqrt %202 : vector<64x1xf32>
    %204 = vector.broadcast %203 : vector<64x1xf32> to vector<64x32xf32>
    %205 = arith.mulf %200, %204 : vector<64x32xf32>
    %206 = vector.shape_cast %185 : vector<32xf32> to vector<1x32xf32>
    %207 = vector.broadcast %206 : vector<1x32xf32> to vector<64x32xf32>
    %208 = arith.mulf %205, %207 : vector<64x32xf32>
    %209 = vector.shape_cast %187 : vector<32xf32> to vector<1x32xf32>
    %210 = vector.broadcast %209 : vector<1x32xf32> to vector<64x32xf32>
    %211 = arith.addf %208, %210 : vector<64x32xf32>
    %212 = arith.truncf %211 : vector<64x32xf32> to vector<64x32xbf16>
    %c0_114 = arith.constant 0 : index
    %c0_115 = arith.constant 0 : index
    %c0_116 = arith.constant 0 : index
    %213 = vector.load %arg10[%c0_114, %c0_115, %c0_116] : memref<1x64x32xbf16, #tpu.memory_space<vmem>>, vector<1x64x32xbf16>
    %214 = vector.shape_cast %213 : vector<1x64x32xbf16> to vector<64x32xbf16>
    %cst_117 = arith.constant dense<0.000000e+00> : vector<64x64xf32>
    %215 = tpu.matmul %212, %214, %cst_117 {dimension_numbers = #tpu.dot_dimension_numbers<[1], [1], [0], [0], [0, 0, 1, 0], [], []>} : vector<64x32xbf16>, vector<64x32xbf16>, vector<64x64xf32> -> vector<64x64xf32>
    %c0_118 = arith.constant 0 : index
    %c0_119 = arith.constant 0 : index
    %c0_120 = arith.constant 0 : index
    %216 = vector.load %arg11[%c0_118, %c0_119, %c0_120] : memref<1x1x64xf32, #tpu.memory_space<vmem>>, vector<1x1x64xf32>
    %217 = vector.shape_cast %216 : vector<1x1x64xf32> to vector<64xf32>
    %218 = vector.shape_cast %217 : vector<64xf32> to vector<1x64xf32>
    %219 = vector.broadcast %218 : vector<1x64xf32> to vector<64x64xf32>
    %220 = arith.addf %215, %219 : vector<64x64xf32>
    %cst_121 = arith.constant 5.000000e-01 : f32
    %221 = vector.broadcast %cst_121 : f32 to vector<64x64xf32>
    %222 = arith.mulf %221, %220 : vector<64x64xf32>
    %cst_122 = arith.constant 0.707106769 : f32
    %223 = vector.broadcast %cst_122 : f32 to vector<64x64xf32>
    %224 = arith.mulf %220, %223 : vector<64x64xf32>
    %225 = math.erf %224 : vector<64x64xf32>
    %cst_123 = arith.constant 1.000000e+00 : f32
    %226 = vector.broadcast %cst_123 : f32 to vector<64x64xf32>
    %227 = arith.addf %226, %225 : vector<64x64xf32>
    %228 = arith.mulf %222, %227 : vector<64x64xf32>
    %229 = arith.truncf %228 : vector<64x64xf32> to vector<64x64xbf16>
    %c0_124 = arith.constant 0 : index
    %c0_125 = arith.constant 0 : index
    %c0_126 = arith.constant 0 : index
    %230 = vector.load %arg12[%c0_124, %c0_125, %c0_126] : memref<1x32x64xbf16, #tpu.memory_space<vmem>>, vector<1x32x64xbf16>
    %231 = vector.shape_cast %230 : vector<1x32x64xbf16> to vector<32x64xbf16>
    %cst_127 = arith.constant dense<0.000000e+00> : vector<64x32xf32>
    %232 = tpu.matmul %229, %231, %cst_127 {dimension_numbers = #tpu.dot_dimension_numbers<[1], [1], [0], [0], [0, 0, 1, 0], [], []>} : vector<64x64xbf16>, vector<32x64xbf16>, vector<64x32xf32> -> vector<64x32xf32>
    %c0_128 = arith.constant 0 : index
    %c0_129 = arith.constant 0 : index
    %c0_130 = arith.constant 0 : index
    %233 = vector.load %arg13[%c0_128, %c0_129, %c0_130] : memref<1x1x32xf32, #tpu.memory_space<vmem>>, vector<1x1x32xf32>
    %234 = vector.shape_cast %233 : vector<1x1x32xf32> to vector<32xf32>
    %235 = vector.shape_cast %234 : vector<32xf32> to vector<1x32xf32>
    %236 = vector.broadcast %235 : vector<1x32xf32> to vector<64x32xf32>
    %237 = arith.addf %232, %236 : vector<64x32xf32>
    %238 = arith.addf %237, %183 : vector<64x32xf32>
    %cst_131 = arith.constant 0.707106769 : f32
    %239 = vector.broadcast %cst_131 : f32 to vector<64x32xf32>
    %240 = arith.mulf %238, %239 : vector<64x32xf32>
    %241 = vector.shape_cast %240 : vector<64x32xf32> to vector<8x8x32xf32>
    %c0_132 = arith.constant 0 : index
    %c0_133 = arith.constant 0 : index
    %c0_134 = arith.constant 0 : index
    %242 = vector.load %arg14[%c0_132, %c0_133, %c0_134] : memref<8x8x32xf32, #tpu.memory_space<vmem>>, vector<8x8x32xf32>
    tpu.vector_store %arg14[%c0_132, %c0_133, %c0_134], %241 {strides = array<i32>} : memref<8x8x32xf32, #tpu.memory_space<vmem>>, vector<8x8x32xf32>,
    return
  }
  func.func @transform_0(%arg0: i32, %arg1: i32) -> (i32, i32, i32) {
    %c0_i32 = arith.constant 0 : i32
    %c0_i32_0 = arith.constant 0 : i32
    %c0_i32_1 = arith.constant 0 : i32
    return %arg0, %c0_i32, %c0_i32_0 : i32, i32, i32
  }
  func.func @transform_1(%arg0: i32, %arg1: i32) -> (i32, i32, i32) {
    %c0_i32 = arith.constant 0 : i32
    %c0_i32_0 = arith.constant 0 : i32
    %c0_i32_1 = arith.constant 0 : i32
    return %arg0, %c0_i32, %c0_i32_0 : i32, i32, i32
  }
  func.func @transform_2(%arg0: i32, %arg1: i32) -> (i32, i32, i32) {
    %c0_i32 = arith.constant 0 : i32
    %c0_i32_0 = arith.constant 0 : i32
    %c0_i32_1 = arith.constant 0 : i32
    return %arg1, %c0_i32, %c0_i32_0 : i32, i32, i32
  }
  func.func @transform_3(%arg0: i32, %arg1: i32) -> (i32, i32, i32) {
    %c0_i32 = arith.constant 0 : i32
    %c0_i32_0 = arith.constant 0 : i32
    %c0_i32_1 = arith.constant 0 : i32
    return %arg1, %c0_i32, %c0_i32_0 : i32, i32, i32
  }
  func.func @transform_4(%arg0: i32, %arg1: i32) -> (i32, i32, i32, i32) {
    %c0_i32 = arith.constant 0 : i32
    %c0_i32_0 = arith.constant 0 : i32
    %c0_i32_1 = arith.constant 0 : i32
    %c0_i32_2 = arith.constant 0 : i32
    return %arg1, %c0_i32, %c0_i32_0, %c0_i32_1 : i32, i32, i32, i32
  }
  func.func @transform_5(%arg0: i32, %arg1: i32) -> (i32, i32, i32, i32) {
    %c0_i32 = arith.constant 0 : i32
    %c0_i32_0 = arith.constant 0 : i32
    %c0_i32_1 = arith.constant 0 : i32
    %c0_i32_2 = arith.constant 0 : i32
    return %arg1, %c0_i32, %c0_i32_0, %c0_i32_1 : i32, i32, i32, i32
  }
  func.func @transform_6(%arg0: i32, %arg1: i32) -> (i32, i32, i32) {
    %c0_i32 = arith.constant 0 : i32
    %c0_i32_0 = arith.constant 0 : i32
    %c0_i32_1 = arith.constant 0 : i32
    return %arg1, %c0_i32, %c0_i32_0 : i32, i32, i32
  }
  func.func @transform_7(%arg0: i32, %arg1: i32) -> (i32, i32, i32) {
    %c0_i32 = arith.constant 0 : i32
    %c0_i32_0 = arith.constant 0 : i32
    %c0_i32_1 = arith.constant 0 : i32
    return %arg1, %c0_i32, %c0_i32_0 : i32, i32, i32
  }
  func.func @transform_8(%arg0: i32, %arg1: i32) -> (i32, i32, i32) {
    %c0_i32 = arith.constant 0 : i32
    %c0_i32_0 = arith.constant 0 : i32
    %c0_i32_1 = arith.constant 0 : i32
    return %arg1, %c0_i32, %c0_i32_0 : i32, i32, i32
  }
  func.func @transform_9(%arg0: i32, %arg1: i32) -> (i32, i32, i32) {
    %c0_i32 = arith.constant 0 : i32
    %c0_i32_0 = arith.constant 0 : i32
    %c0_i32_1 = arith.constant 0 : i32
    return %arg1, %c0_i32, %c0_i32_0 : i32, i32, i32
  }
  func.func @transform_10(%arg0: i32, %arg1: i32) -> (i32, i32, i32) {
    %c0_i32 = arith.constant 0 : i32
    %c0_i32_0 = arith.constant 0 : i32
    %c0_i32_1 = arith.constant 0 : i32
    return %arg1, %c0_i32, %c0_i32_0 : i32, i32, i32
  }
  func.func @transform_11(%arg0: i32, %arg1: i32) -> (i32, i32, i32) {
    %c0_i32 = arith.constant 0 : i32
    %c0_i32_0 = arith.constant 0 : i32
    %c0_i32_1 = arith.constant 0 : i32
    return %arg1, %c0_i32, %c0_i32_0 : i32, i32, i32
  }
  func.func @transform_12(%arg0: i32, %arg1: i32) -> (i32, i32, i32) {
    %c0_i32 = arith.constant 0 : i32
    %c0_i32_0 = arith.constant 0 : i32
    %c0_i32_1 = arith.constant 0 : i32
    return %arg0, %c0_i32, %c0_i32_0 : i32, i32, i32
  }
}

</mosaic_0001>

<bundles_post_ra>
// kernel: tpu_custom_call.1
= control target key start
LH: loop header
LB: loop body
LE: loop exit
PB: predicated region body
PF: predicated region fallthrough
CT: control target
= control target key end

     0   :  { %s8848_s0 = inlined_call_operand.vmem [shape: f32[8,8,32], index: 0, kind: input, shape index: {}]   ;;  %s8849_s1 = inlined_call_operand.vmem [shape: f32[8,8,1], index: 1, kind: input, shape index: {}]   ;;  %s8850_s2 = inlined_call_operand.vmem [shape: f32[2,1,32], index: 2, kind: input, shape index: {}]   ;;  %s8851_s3 = inlined_call_operand.vmem [shape: f32[2,1,32], index: 3, kind: input, shape index: {}]   ;;  %s8852_s4 = inlined_call_operand.vmem [shape: bf16[2,12,8,32], index: 4, kind: input, shape index: {}]   ;;  %s8853_s5 = inlined_call_operand.vmem [shape: bf16[2,4,32,8], index: 5, kind: input, shape index: {}]   ;;  %s8854_s6 = inlined_call_operand.vmem [shape: f32[2,1,32], index: 6, kind: input, shape index: {}]   ;;  %s8855_s7 = inlined_call_operand.vmem [shape: f32[2,1,32], index: 7, kind: input, shape index: {}]   ;;  %s8856_s8 = inlined_call_operand.vmem [shape: bf16[2,64,32], index: 8, kind: input, shape index: {}]   ;;  %s8857_s9 = inlined_call_operand.vmem [shape: f32[2,1,64], index: 9, kind: input, shape index: {}]   ;;  %s8858_s10 = inlined_call_operand.vmem [shape: bf16[2,32,64], index: 10, kind: input, shape index: {}]   ;;  %s8859_s11 = inlined_call_operand.vmem [shape: f32[2,1,32], index: 11, kind: input, shape index: {}]   ;;  %s8860_s12 = inlined_call_operand.hbm [shape: f32[8,8,32], index: 12, kind: output, shape index: {}]  }
   0x1   :  { %8864 = sst [smem:[#allocation8_spill]] %s8853_s5 }
   0x2   :  { %8865 = sst [smem:[#allocation9_spill]] %s8860_s12 }
   0x3   :  { %17 = vsyncpa [#allocation3], 0  ;;  %s7607_s21 = smov 0   ;;  %s7609_s22 = smov 0  }
   0x4   :  { %s7611_s23 = smov 0  }
   0x5 LB: > { %8866 = sst [smem:[#allocation5_spill]] %s7530_s22  ;;  %s32_s25 = sadd.s32 1, %s7530_s22  ;;  %s7534_s23 = sphi %s7611_s23, %s23_s23   ;;  %s7530_s22 = sphi %s7609_s22, %s8879_s22   ;;  %s7526_s21 = sphi %s7607_s21, %s8878_s21  }
   0x6   : > { %8867 = sst [smem:[#allocation6_spill]] %s7534_s23  ;;  %p33_p0 = scmp.ge.s32.totalorder %s32_s25, 2 }
   0x7   : > { %p6194_p1 = scmp.ge.s32.totalorder %s7534_s23, 1  ;;  %p475_p2 = scmp.lt.s32.totalorder %s7534_s23, 3 }
   0x8   : > { %s8881_s25 = smov (%p33_p0, %s32_s25), 0 }
   0x9   : > { %8868 = sst [smem:[#allocation7_spill]] %s8881_s25  ;;  %p476_p3 = pnand %p6194_p1, %p475_p2 }
   0xa   : > { %p567_p4 = scmp.lt.s32.totalorder (!%p476_p3), %s7526_s21, 1  ;;  %s8869_s5 = sld [smem:[#allocation8_spill]] (!%p476_p3) }
   0xb   : > { %479 = sbr.rel (%p476_p3) target bundleno = 4817 (0x12d1), region = 68  ;;  %p6202_p5 = scmp.ne.s32.totalorder (!%p476_p3), %s7526_s21, 0 }
  0x12   : > { %s7626_s26 = scalar_select %p567_p4, %s7526_s21, 1 }
  0x13   : > { %610 = sbr.rel (%p6202_p5) target bundleno = 26 (0x1a), region = 72  ;;  %v611_v0 = vld [vmem:[%s8848_s0] sm:$0xff] (!%p6202_p5)  ;;  %vm619_vm0 = vcmask (!%p6202_p5), 261120   ;;  %v612_v1 = vld [vmem:[%s8848_s0 + $0x8] sm:$0xff] (!%p6202_p5)  ;;  %v613_v2 = vld [vmem:[%s8848_s0 + $0x10] sm:$0xff] (!%p6202_p5) }
  0x14   : > { %s7245_s15 = smul.u32 48, %s7626_s26  ;;  %s6386_s16 = sshll.u32 %s7626_s26, 6  ;;  %620 = vst.msk [vmem:[#allocation2] sm:$0xff] (!%p6202_p5), %vm619_vm0, %v611_v0  ;;  %621 = vst.msk [vmem:[#allocation2 + $0x8] sm:$0xff] (!%p6202_p5), %vm619_vm0, %v612_v1  ;;  %v614_v3 = vld [vmem:[%s8848_s0 + $0x18] sm:$0xff] (!%p6202_p5)  ;;  %v615_v4 = vld [vmem:[%s8848_s0 + $0x20] sm:$0xff] (!%p6202_p5) }
  0x15   : > { %s7641_s19 = scalar_lea.vmem %s8869_s5, %s6386_s16  ;;  %s588_s30 = scalar_lea.vmem %s8855_s7, %s7626_s26  ;;  %622 = vst.msk [vmem:[#allocation2 + $0x10] sm:$0xff] (!%p6202_p5), %vm619_vm0, %v613_v2  ;;  %v616_v5 = vld [vmem:[%s8848_s0 + $0x28] sm:$0xff] (!%p6202_p5)  ;;  %623 = vst.msk [vmem:[#allocation2 + $0x18] sm:$0xff] (!%p6202_p5), %vm619_vm0, %v614_v3  ;;  %v617_v6 = vld [vmem:[%s8848_s0 + $0x30] sm:$0xff] (!%p6202_p5) }
  0x16   : > { %s7650_s22 = scalar_lea.vmem %s8852_s4, %s7245_s15  ;;  %s6387_s13 = sshll.u32 %s7626_s26, 5  ;;  %624 = vst.msk [vmem:[#allocation2 + $0x20] sm:$0xff] (!%p6202_p5), %vm619_vm0, %v615_v4  ;;  %625 = vst.msk [vmem:[#allocation2 + $0x28] sm:$0xff] (!%p6202_p5), %vm619_vm0, %v616_v5  ;;  %v618_v7 = vld [vmem:[%s8848_s0 + $0x38] sm:$0xff] (!%p6202_p5) }
  0x17   : > { %s596_s17 = scalar_lea.vmem %s8857_s9, %s7626_s26  ;;  %s7664_s5 = scalar_lea.vmem %s8856_s8, %s6387_s13  ;;  %626 = vst.msk [vmem:[#allocation2 + $0x30] sm:$0xff] (!%p6202_p5), %vm619_vm0, %v617_v6  ;;  %627 = vst.msk [vmem:[#allocation2 + $0x38] sm:$0xff] (!%p6202_p5), %vm619_vm0, %v618_v7 }
  0x18   : > { %s6388_s20 = sshll.u32 %s7626_s26, 4  ;;  %s604_s12 = scalar_lea.vmem %s8859_s11, %s7626_s26 }
  0x19   : > { %s7670_s24 = scalar_lea.vmem %s8858_s10, %s6388_s20 }
  0x1a PF: > { %vm646_vm1 = vcmask 261120   ;;  %v784_v0 = vld [vmem:[%s7650_s22] sm:$0xf]  ;;  %v6209_v1 = vld [vmem:[%s7650_s22 + $0x10] sm:$0xf]  ;;  %v637_v5 = vld [vmem:[%s8849_s1 + $0x8] sm:$0xff]  ;;  %s8870_s21 = scalar_lea.vmem %s8850_s2, %s7626_s26  ;;  %s8871_s15 = scalar_lea.vmem %s8851_s3, %s7626_s26 }
  0x1b   : > { %v628_v8 = vld [vmem:[#allocation2] sm:$0xff]  ;;  %v629_v10 = vld [vmem:[#allocation2 + $0x8] sm:$0xff]  ;;  %7219 = vmatprep.subr.msk.bf16.mxu0 %vm646_vm1, %v784_v0  ;;  %7220 = vmatprep.subr.msk.bf16.mxu1 %vm646_vm1, %v6209_v1  ;;  %v798_v2 = vsel %vm646_vm1, %v784_v0, 0  ;;  %v868_v3 = vsel %vm646_vm1, %v6209_v1, 0  ;;  %v7536_v6 = vmov 0   ;;  %vm7538_vm2 = vmmov 0  }
  0x1c   : > { %v630_v9 = vld [vmem:[#allocation2 + $0x10] sm:$0xff]  ;;  %v647_v11 = vsel %vm646_vm1, %v628_v8, 0.0  ;;  %v631_v13 = vld [vmem:[#allocation2 + $0x18] sm:$0xff]  ;;  %v650_v16 = vsel %vm646_vm1, %v629_v10, 0.0  ;;  %6616 = vmatpush3.bf16.xpose.msra.mxu0 %v798_v2  ;;  %6626 = vmatpush3.bf16.xpose.msra.mxu1 %v868_v3  ;;  %v7755_v4 = vld [vmem:[%s7650_s22 + $0x20] sm:$0xf] }
  0x1d   : > { %v653_v12 = vsel %vm646_vm1, %v630_v9, 0.0  ;;  %v632_v14 = vld [vmem:[#allocation2 + $0x20] sm:$0xff]  ;;  %v633_v15 = vld [vmem:[#allocation2 + $0x28] sm:$0xff]  ;;  %648 = vadd.xlane.f32.xlu0 %v647_v11  ;;  %v656_v17 = vsel %vm646_vm1, %v631_v13, 0.0  ;;  %7221 = vmatprep.subr.msk.bf16.mxu0 %vm646_vm1, %v7755_v4  ;;  %vm1077_vm3 = vcmask 64512   ;;  %vm1545_vm4 = vcmask 1043456  }
  0x1e   : > { %654 = vadd.xlane.f32.xlu1 %v653_v12  ;;  %v659_v18 = vsel %vm646_vm1, %v632_v14, 0.0  ;;  %v662_v19 = vsel %vm646_vm1, %v633_v15, 0.0  ;;  %v634_v20 = vld [vmem:[#allocation2 + $0x30] sm:$0xff]  ;;  %v635_v21 = vld [vmem:[#allocation2 + $0x38] sm:$0xff]  ;;  %7283 = vset.pattern.permute.xlu0 %v7536_v6  ;;  %vm5899_vm5 = vcmask 523264  }
  0x1f   : > { %v665_v22 = vsel %vm646_vm1, %v634_v20, 0.0  ;;  %v668_v23 = vsel %vm646_vm1, %v635_v21, 0.0  ;;  %7282 = vset.pattern.permute.xlu1 %v7536_v6 }
  0x21   : > { %651 = vadd.xlane.f32.xlu0 %v650_v16 }
  0x22   : > { %657 = vadd.xlane.f32.xlu1 %v656_v17 }
  0x25   : > { %660 = vadd.xlane.f32.xlu0 %v659_v18 }
  0x26   : > { %663 = vadd.xlane.f32.xlu1 %v662_v19 }
  0x29   : > { %666 = vadd.xlane.f32.xlu0 %v665_v22 }
  0x2a   : > { %669 = vadd.xlane.f32.xlu1 %v668_v23 }
  0xaa   : > { %v649_v24 = vpop.xlane.xlu0 %648 }
  0xab   : > { %v655_v25 = vpop.xlane.xlu1 %654  ;;  %v672_v26 = vmul.f32 0.03125, %v649_v24 }
  0xac   : > { %v674_v27 = vmul.f32 0.03125, %v655_v25 }
  0xad   : > { %v7708_v28 = vsub.f32 %v628_v8, %v672_v26 }
  0xae   : > { %v7710_v29 = vsub.f32 %v630_v9, %v674_v27  ;;  %v652_v30 = vpop.xlane.xlu0 %651 }
  0xaf   : > { %v658_v31 = vpop.xlane.xlu1 %657  ;;  %v673_v32 = vmul.f32 0.03125, %v652_v30  ;;  %v688_v34 = vmul.f32 %v7708_v28, %v7708_v28 }
  0xb0   : > { %v675_v33 = vmul.f32 0.03125, %v658_v31  ;;  %v690_v35 = vmul.f32 %v7710_v29, %v7710_v29 }
  0xb1   : > { %v7716_v36 = vsub.f32 %v629_v10, %v673_v32  ;;  %v696_v38 = vsel %vm646_vm1, %v688_v34, 0.0 }
  0xb2   : > { %v7718_v37 = vsub.f32 %v631_v13, %v675_v33  ;;  %697 = vadd.xlane.f32.xlu0 %v696_v38  ;;  %v661_v39 = vpop.xlane.xlu0 %660  ;;  %v702_v41 = vsel %vm646_vm1, %v690_v35, 0.0  ;;  %v6203_v33 = vld [vmem:[%s8870_s21] ss:$0 sm:$0xff] }
  0xb3   : > { %v664_v40 = vpop.xlane.xlu1 %663  ;;  %v676_v42 = vmul.f32 0.03125, %v661_v39  ;;  %v689_v44 = vmul.f32 %v7716_v36, %v7716_v36 }
  0xb4   : > { %v677_v43 = vmul.f32 0.03125, %v664_v40  ;;  %v691_v45 = vmul.f32 %v7718_v37, %v7718_v37 }
  0xb5   : > { %v7726_v46 = vsub.f32 %v632_v14, %v676_v42  ;;  %v699_v48 = vsel %vm646_vm1, %v689_v44, 0.0 }
  0xb6   : > { %v7728_v47 = vsub.f32 %v633_v15, %v677_v43  ;;  %703 = vadd.xlane.f32.xlu0 %v702_v41  ;;  %700 = vadd.xlane.f32.xlu1 %v699_v48  ;;  %v667_v49 = vpop.xlane.xlu0 %666  ;;  %v705_v51 = vsel %vm646_vm1, %v691_v45, 0.0 }
  0xb7   : > { %v670_v50 = vpop.xlane.xlu1 %669  ;;  %v678_v52 = vmul.f32 0.03125, %v667_v49  ;;  %v692_v54 = vmul.f32 %v7726_v46, %v7726_v46 }
  0xb8   : > { %v679_v53 = vmul.f32 0.03125, %v670_v50  ;;  %v693_v55 = vmul.f32 %v7728_v47, %v7728_v47 }
  0xb9   : > { %v7736_v56 = vsub.f32 %v634_v20, %v678_v52  ;;  %v708_v58 = vsel %vm646_vm1, %v692_v54, 0.0 }
  0xba   : > { %v7738_v57 = vsub.f32 %v635_v21, %v679_v53  ;;  %706 = vadd.xlane.f32.xlu1 %v705_v51  ;;  %709 = vadd.xlane.f32.xlu0 %v708_v58  ;;  %v711_v59 = vsel %vm646_vm1, %v693_v55, 0.0 }
  0xbb   : > { %v694_v60 = vmul.f32 %v7736_v56, %v7736_v56 }
  0xbc   : > { %v695_v61 = vmul.f32 %v7738_v57, %v7738_v57 }
  0xbd   : > { %v714_v62 = vsel %vm646_vm1, %v694_v60, 0.0 }
  0xbe   : > { %712 = vadd.xlane.f32.xlu1 %v711_v59  ;;  %715 = vadd.xlane.f32.xlu0 %v714_v62  ;;  %v717_v63 = vsel %vm646_vm1, %v695_v61, 0.0  ;;  %v938_v62 = vsel %vm646_vm1, %v7755_v4, 0 }
  0xc2   : > { %718 = vadd.xlane.f32.xlu1 %v717_v63 }
  0xd3   : > { %1012 = vperm.xlu1 %7282, %v637_v5  }
 0x13f   : > { %v698_v7 = vpop.xlane.xlu0 %697 }
 0x140   : > { %v720_v8 = vmul.f32 0.03125, %v698_v7 }
 0x142   : > { %v728_v9 = vadd.f32 1e-05, %v720_v8 }
 0x143   : > { %v701_v10 = vpop.xlane.xlu1 %700  ;;  %v704_v11 = vpop.xlane.xlu0 %703 }
 0x144   : > { %7298 = vrsqrt.f32 %v728_v9  ;;  %v721_v12 = vmul.f32 0.03125, %v701_v10  ;;  %v722_v13 = vmul.f32 0.03125, %v704_v11 }
 0x146   : > { %v729_v14 = vadd.f32 1e-05, %v721_v12  ;;  %v730_v15 = vadd.f32 1e-05, %v722_v13 }
 0x147   : > { %v707_v16 = vpop.xlane.xlu1 %706  ;;  %v710_v17 = vpop.xlane.xlu0 %709 }
 0x148   : > { %7300 = vrsqrt.f32 %v729_v14  ;;  %v723_v18 = vmul.f32 0.03125, %v707_v16  ;;  %v724_v19 = vmul.f32 0.03125, %v710_v17 }
 0x149   : > { %7302 = vrsqrt.f32 %v730_v15 }
 0x14a   : > { %v731_v20 = vadd.f32 1e-05, %v723_v18  ;;  %v732_v21 = vadd.f32 1e-05, %v724_v19 }
 0x14b   : > { %v713_v22 = vpop.xlane.xlu1 %712  ;;  %v716_v23 = vpop.xlane.xlu0 %715 }
 0x14c   : > { %7304 = vrsqrt.f32 %v731_v20  ;;  %v725_v24 = vmul.f32 0.03125, %v713_v22  ;;  %v726_v25 = vmul.f32 0.03125, %v716_v23 }
 0x14d   : > { %7306 = vrsqrt.f32 %v732_v21 }
 0x14e   : > { %v7299_v26 = vpop.eup %7298  ;;  %v733_v27 = vadd.f32 1e-05, %v725_v24  ;;  %v734_v30 = vadd.f32 1e-05, %v726_v25 }
 0x14f   : > { %v744_v31 = vmul.f32 %v7299_v26, %v7708_v28  ;;  %v719_v32 = vpop.xlane.xlu1 %718  ;;  %v6204_v28 = vld [vmem:[%s8871_s15] ss:$0 sm:$0xff] }
 0x150   : > { %7308 = vrsqrt.f32 %v733_v27  ;;  %v727_v34 = vmul.f32 0.03125, %v719_v32 }
 0x151   : > { %7310 = vrsqrt.f32 %v734_v30  ;;  %v758_v40 = vmul.f32 %v6203_v33, %v744_v31 }
 0x152   : > { %v7301_v35 = vpop.eup %7300  ;;  %v735_v38 = vadd.f32 1e-05, %v727_v34 }
 0x153   : > { %v7303_v39 = vpop.eup %7302  ;;  %v745_v41 = vmul.f32 %v7301_v35, %v7716_v36  ;;  %v772_v48 = vadd.f32 %v6204_v28, %v758_v40 }
 0x154   : > { %v746_v42 = vmul.f32 %v7303_v39, %v7710_v29  ;;  %7312 = vrsqrt.f32 %v735_v38 }
 0x155   : > { %v759_v43 = vmul.f32 %v6203_v33, %v745_v41 }
 0x156   : > { %v7305_v44 = vpop.eup %7304  ;;  %v760_v50 = vmul.f32 %v6203_v33, %v746_v42 }
 0x157   : > { %v7307_v45 = vpop.eup %7306  ;;  %v773_v49 = vadd.f32 %v6204_v28, %v759_v43  ;;  %v747_v51 = vmul.f32 %v7305_v44, %v7718_v37 }
 0x158   : > { %v748_v52 = vmul.f32 %v7307_v45, %v7726_v46  ;;  %v774_v59 = vadd.f32 %v6204_v28, %v760_v50 }
 0x159   : > { %v7777_v53 = vpack.c.bf16 %v773_v49, %v772_v48  ;;  %v761_v36 = vmul.f32 %v6203_v33, %v747_v51 }
 0x15a   : > { %v7309_v54 = vpop.eup %7308  ;;  %v762_v55 = vmul.f32 %v6203_v33, %v748_v52 }
 0x15b   : > { %v7311_v58 = vpop.eup %7310  ;;  %v775_v60 = vadd.f32 %v6204_v28, %v761_v36  ;;  %v749_v29 = vmul.f32 %v7309_v54, %v7728_v47  ;;  %6617 = vmatprep.mubr.msk.bf16.mxu0 %vm646_vm1, %v7777_v53  ;;  %6627 = vmatprep.mubr.msk.bf16.mxu1 %vm646_vm1, %v7777_v53 }
 0x15c   : > { %v750_v37 = vmul.f32 %v7311_v58, %v7736_v56  ;;  %v776_v0 = vadd.f32 %v6204_v28, %v762_v55 }
 0x15d   : > { %v7785_v61 = vpack.c.bf16 %v775_v60, %v774_v59  ;;  %v763_v46 = vmul.f32 %v6203_v33, %v749_v29  ;;  %v7866_v59 = vpop.permute.xlu1 %1012 }
 0x15e   : > { %v7313_v63 = vpop.eup %7312  ;;  %v764_v2 = vmul.f32 %v6203_v33, %v750_v37 }
 0x15f   : > { %v777_v1 = vadd.f32 %v6204_v28, %v763_v46  ;;  %v751_v47 = vmul.f32 %v7313_v63, %v7738_v57  ;;  %6618 = vmatmul.mubr.msk.bf16.vlgmr.msra.gmra.mrb[0].mxu0 %vm646_vm1, %v7785_v61  ;;  %6628 = vmatmul.mubr.msk.bf16.vlgmr.msra.gmra.mrb[0].mxu1 %vm646_vm1, %v7785_v61  ;;  %v7537_v57 = vmov 0.0  }
 0x160   : > { %6636 = vmatpush3.bf16.xpose.msra.mxu0 %v938_v62  ;;  %v778_v5 = vadd.f32 %v6204_v28, %v764_v2  ;;  %6645 = vmatprep.subr.bf16.mxu1 %v7537_v57 }
 0x161   : > { %v7794_v56 = vpack.c.bf16 %v777_v1, %v776_v0  ;;  %v765_v3 = vmul.f32 %v6203_v33, %v751_v47  ;;  %6657 = vmatprep.subr.bf16.mxu0 %v7537_v57 }
 0x163   : > { %v779_v6 = vadd.f32 %v6204_v28, %v765_v3  ;;  %6621 = vmatprep.mubr.msk.bf16.mxu0 %vm646_vm1, %v7794_v56  ;;  %6631 = vmatprep.mubr.msk.bf16.mxu1 %vm646_vm1, %v7794_v56 }
 0x165   : > { %v7800_v4 = vpack.c.bf16 %v779_v6, %v778_v5 }
 0x167   : > { %6622 = vmatmul.mubr.msk.bf16.gmra.mrb[4].mxu0 %vm646_vm1, %v7800_v4  ;;  %6632 = vmatmul.mubr.msk.bf16.gmra.mrb[4].mxu1 %vm646_vm1, %v7800_v4 }
 0x168   : > { %6637 = vmatprep.mubr.msk.bf16.mxu0 %vm646_vm1, %v7777_v53  ;;  %6647 = vmatprep.mubr.msk.bf16.mxu1 %vm7538_vm2, %v7537_v57 }
 0x16f   : > { %6638 = vmatmul.mubr.msk.bf16.vlgmr.msra.gmra.mrb[8].mxu0 %vm646_vm1, %v7785_v61 }
 0x170   : > { %6641 = vmatprep.mubr.msk.bf16.mxu0 %vm646_vm1, %v7794_v56 }
 0x177   : > { %6642 = vmatmul.mubr.msk.bf16.gmra.mrb[12].mxu0 %vm646_vm1, %v7800_v4 }
 0x178   : > { %6659 = vmatprep.mubr.msk.bf16.mxu0 %vm7538_vm2, %v7537_v57 }
 0x232   : > { %v6619_v7 = vpop.f32.mrb[0].mxu0  ;;  %v6629_v8 = vpop.f32.mrb[0].mxu1 }
 0x233   : > { %v1063_v9 = vpack.c.bf16 %v6629_v8, %v6629_v8  ;;  %v834_v10 = vpop.f32.mrb[1].mxu0  ;;  %v904_v11 = vpop.f32.mrb[1].mxu1  ;;  %v1055_v22 = vpack.c.bf16 %v6619_v7, %v6619_v7 }
 0x234   : > { %v1061_v12 = vpack.c.bf16 %v904_v11, %v904_v11  ;;  %v6620_v13 = vpop.f32.mrb[2].mxu0  ;;  %v6630_v14 = vpop.f32.mrb[2].mxu1  ;;  %v1053_v25 = vpack.c.bf16 %v834_v10, %v834_v10 }
 0x235   : > { %v1174_v15 = vsel %vm1077_vm3, %v1063_v9, 0  ;;  %v837_v16 = vpop.f32.mrb[3].mxu0  ;;  %v907_v17 = vpop.f32.mrb[3].mxu1  ;;  %v1064_v35 = vpack.c.bf16 %v6630_v14, %v6630_v14  ;;  %v1056_v51 = vpack.c.bf16 %v6620_v13, %v6620_v13 }
 0x236   : > { %v1082_v18 = vsel %vm1077_vm3, %v1061_v12, 0  ;;  %6658 = vmatpush3.bf16.xpose.msra.mxu0 %v1174_v15  ;;  %v1062_v19 = vpack.c.bf16 %v907_v17, %v907_v17  ;;  %v1054_v41 = vpack.c.bf16 %v837_v16, %v837_v16 }
 0x237   : > { %6646 = vmatpush3.bf16.xpose.msra.mxu1 %v1082_v18  ;;  %6669 = vmatprep.subr.bf16.mxu0 %v7537_v57  ;;  %v1220_v44 = vsel %vm1077_vm3, %v1064_v35, 0 }
 0x238   : > { %6651 = vmatprep.subr.bf16.mxu1 %v7537_v57  ;;  %v1128_v33 = vsel %vm1077_vm3, %v1062_v19, 0 }
 0x23a   : > { %v6623_v20 = vpop.f32.mrb[4].mxu0  ;;  %v6633_v21 = vpop.f32.mrb[4].mxu1 }
 0x23b   : > { %v850_v23 = vpop.f32.mrb[5].mxu0  ;;  %v920_v24 = vpop.f32.mrb[5].mxu1  ;;  %v1067_v38 = vpack.c.bf16 %v6633_v21, %v6633_v21  ;;  %v1059_v52 = vpack.c.bf16 %v6623_v20, %v6623_v20 }
 0x23c   : > { %v1065_v26 = vpack.c.bf16 %v920_v24, %v920_v24  ;;  %v6624_v27 = vpop.f32.mrb[6].mxu0  ;;  %v6634_v30 = vpop.f32.mrb[6].mxu1  ;;  %v1057_v28 = vpack.c.bf16 %v850_v23, %v850_v23 }
 0x23d   : > { %v853_v31 = vpop.f32.mrb[7].mxu0  ;;  %v923_v32 = vpop.f32.mrb[7].mxu1  ;;  %6660 = vmatmul.mubr.msk.bf16.vlgmr.msra.gmra.mrb[16].mxu0 %vm1077_vm3, %v1055_v22  ;;  %v1358_v45 = vsel %vm1077_vm3, %v1067_v38, 0  ;;  %v1068_v58 = vpack.c.bf16 %v6634_v30, %v6634_v30  ;;  %v1060_v62 = vpack.c.bf16 %v6624_v27, %v6624_v27 }
 0x23e   : > { %v1266_v34 = vsel %vm1077_vm3, %v1065_v26, 0  ;;  %6648 = vmatmul.mubr.msk.bf16.vlgmr.msra.gmra.mrb[8].mxu1 %vm1077_vm3, %v1053_v25  ;;  %6671 = vmatprep.mubr.msk.bf16.mxu0 %vm7538_vm2, %v7537_v57  ;;  %v1066_v48 = vpack.c.bf16 %v923_v32, %v923_v32  ;;  %v1058_v60 = vpack.c.bf16 %v853_v31, %v853_v31 }
 0x23f   : > { %6652 = vmatpush3.bf16.xpose.msra.mxu1 %v1128_v33  ;;  %6670 = vmatpush3.bf16.xpose.msra.mxu0 %v1266_v34  ;;  %v1404_v29 = vsel %vm1077_vm3, %v1068_v58, 0 }
 0x240   : > { %6653 = vmatprep.mubr.msk.bf16.mxu1 %vm7538_vm2, %v7537_v57  ;;  %6663 = vmatprep.subr.bf16.mxu1 %v7537_v57  ;;  %v1312_v55 = vsel %vm1077_vm3, %v1066_v48, 0 }
 0x241   : > { %6681 = vmatprep.subr.bf16.mxu0 %v7537_v57 }
 0x242   : > { %v7834_v39 = vpop.f32.mrb[8].mxu0 }
 0x243   : > { %v7836_v40 = vpop.f32.mrb[9].mxu0 }
 0x244   : > { %v7838_v42 = vpop.f32.mrb[10].mxu0 }
 0x245   : > { %v977_v43 = vpop.f32.mrb[11].mxu0 }
 0x246   : > { %6654 = vmatmul.mubr.msk.bf16.vlgmr.msra.gmra.mrb[12].mxu1 %vm1077_vm3, %v1054_v41  ;;  %6672 = vmatmul.mubr.msk.bf16.vlgmr.msra.gmra.mrb[20].mxu0 %vm1077_vm3, %v1057_v28  ;;  %v1046_v37 = vmul.f32 %v7866_v59, %v977_v43  ;;  %v639_v28 = vld [vmem:[%s8849_s1 + $0x18] sm:$0xff] }
 0x247   : > { %6664 = vmatpush3.bf16.xpose.msra.mxu1 %v1220_v44  ;;  %6682 = vmatpush3.bf16.xpose.msra.mxu0 %v1358_v45 }
 0x248   : > { %6665 = vmatprep.mubr.msk.bf16.mxu1 %vm7538_vm2, %v7537_v57  ;;  %6683 = vmatprep.mubr.msk.bf16.mxu0 %vm7538_vm2, %v7537_v57  ;;  %v1070_v46 = vpack.c.bf16 %v1046_v37, %v1046_v37 }
 0x249   : > { %6675 = vmatprep.subr.bf16.mxu1 %v7537_v57  ;;  %6693 = vmatprep.subr.bf16.mxu0 %v7537_v57 }
 0x24a   : > { %v7850_v49 = vpop.f32.mrb[12].mxu0  ;;  %v1593_v63 = vsel %vm1545_vm4, %v1070_v46, 0 }
 0x24b   : > { %v7852_v50 = vpop.f32.mrb[13].mxu0 }
 0x24c   : > { %v7854_v36 = vpop.f32.mrb[14].mxu0 }
 0x24d   : > { %v7856_v54 = vpop.f32.mrb[15].mxu0 }
 0x24e   : > { %6666 = vmatmul.mubr.msk.bf16.vlgmr.msra.gmra.mrb[16].mxu1 %vm1077_vm3, %v1056_v51  ;;  %6684 = vmatmul.mubr.msk.bf16.vlgmr.msra.gmra.mrb[24].mxu0 %vm1077_vm3, %v1059_v52  ;;  %v641_v51 = vld [vmem:[%s8849_s1 + $0x28] sm:$0xff]  ;;  %v636_v52 = vld [vmem:[%s8849_s1] sm:$0xff] }
 0x24f   : > { %6676 = vmatpush3.bf16.xpose.msra.mxu1 %v1312_v55  ;;  %6677 = vmatprep.mubr.msk.bf16.mxu1 %vm7538_vm2, %v7537_v57 }
 0x250   : > { %6687 = vmatprep.subr.bf16.mxu1 %v7537_v57  ;;  %6695 = vmatprep.mubr.msk.bf16.mxu0 %vm7538_vm2, %v7537_v57 }
 0x256   : > { %6678 = vmatmul.mubr.msk.bf16.vlgmr.msra.gmra.mrb[20].mxu1 %vm1077_vm3, %v1058_v60 }
 0x257   : > { %6688 = vmatpush3.bf16.xpose.msra.mxu1 %v1404_v29  ;;  %6689 = vmatprep.mubr.msk.bf16.mxu1 %vm7538_vm2, %v7537_v57 }
 0x258   : > { %6699 = vmatprep.subr.bf16.mxu1 %v7537_v57 }
 0x25e   : > { %6690 = vmatmul.mubr.msk.bf16.vlgmr.msra.gmra.mrb[24].mxu1 %vm1077_vm3, %v1060_v62 }
 0x25f   : > { %6700 = vmatpush3.bf16.msra.mxu1 %v1593_v63  ;;  %6701 = vmatprep.mubr.msk.bf16.mxu1 %vm7538_vm2, %v7537_v57 }
 0x260   : > { %6711 = vmatprep.subr.bf16.mxu1 %v7537_v57 }
 0x310   : > { %v1210_v0 = vpop.f32.mrb[16].mxu0 }
 0x311   : > { %v1118_v1 = vpop.f32.mrb[8].mxu1  ;;  %v6661_v2 = vpop.f32.mrb[17].mxu0  ;;  %v1452_v47 = vsel %vm1077_vm3, %v1210_v0, -inf }
 0x312   : > { %v6649_v3 = vpop.f32.mrb[9].mxu1  ;;  %1453 = vmax.xlane.f32.xlu1 %v1452_v47  ;;  %v1213_v5 = vpop.f32.mrb[18].mxu0  ;;  %v1446_v9 = vsel %vm1077_vm3, %v1118_v1, -inf }
 0x313   : > { %v1121_v6 = vpop.f32.mrb[10].mxu1  ;;  %v6662_v7 = vpop.f32.mrb[19].mxu0 }
 0x314   : > { %v6650_v8 = vpop.f32.mrb[11].mxu1 }
 0x316   : > { %1447 = vmax.xlane.f32.xlu1 %v1446_v9 }
 0x319   : > { %v1164_v10 = vpop.f32.mrb[12].mxu1  ;;  %v1302_v11 = vpop.f32.mrb[20].mxu0 }
 0x31a   : > { %v6655_v12 = vpop.f32.mrb[13].mxu1  ;;  %v6673_v13 = vpop.f32.mrb[21].mxu0  ;;  %v1449_v14 = vsel %vm1077_vm3, %v1164_v10, -inf  ;;  %v1458_v15 = vsel %vm1077_vm3, %v1302_v11, -inf }
 0x31b   : > { %1450 = vmax.xlane.f32.xlu0 %v1449_v14  ;;  %v1167_v16 = vpop.f32.mrb[14].mxu1  ;;  %1459 = vmax.xlane.f32.xlu1 %v1458_v15  ;;  %v1305_v17 = vpop.f32.mrb[22].mxu0 }
 0x31c   : > { %v6656_v18 = vpop.f32.mrb[15].mxu1  ;;  %v6674_v19 = vpop.f32.mrb[23].mxu0 }
 0x321   : > { %v1256_v20 = vpop.f32.mrb[16].mxu1  ;;  %v7883_v21 = vpop.f32.mrb[24].mxu0 }
 0x322   : > { %v6667_v22 = vpop.f32.mrb[17].mxu1  ;;  %v6685_v23 = vpop.f32.mrb[25].mxu0  ;;  %v1455_v24 = vsel %vm1077_vm3, %v1256_v20, -inf  ;;  %v1464_v25 = vsel %vm1077_vm3, %v7883_v21, -inf }
 0x323   : > { %1456 = vmax.xlane.f32.xlu0 %v1455_v24  ;;  %v1259_v26 = vpop.f32.mrb[18].mxu1  ;;  %1465 = vmax.xlane.f32.xlu1 %v1464_v25  ;;  %v1397_v27 = vpop.f32.mrb[26].mxu0  ;;  %v643_v25 = vld [vmem:[%s8849_s1 + $0x38] sm:$0xff] }
 0x324   : > { %v6668_v30 = vpop.f32.mrb[19].mxu1  ;;  %v6686_v31 = vpop.f32.mrb[27].mxu0  ;;  %v640_v27 = vld [vmem:[%s8849_s1 + $0x20] sm:$0xff] }
 0x329   : > { %v7888_v32 = vpop.f32.mrb[20].mxu1 }
 0x32a   : > { %v6679_v33 = vpop.f32.mrb[21].mxu1  ;;  %v1461_v34 = vsel %vm1077_vm3, %v7888_v32, -inf }
 0x32b   : > { %1462 = vmax.xlane.f32.xlu0 %v1461_v34  ;;  %v1351_v35 = vpop.f32.mrb[22].mxu1 }
 0x32c   : > { %v6680_v38 = vpop.f32.mrb[23].mxu1 }
 0x331   : > { %v7892_v41 = vpop.f32.mrb[24].mxu1 }
 0x332   : > { %v6691_v43 = vpop.f32.mrb[25].mxu1  ;;  %v1467_v44 = vsel %vm1077_vm3, %v7892_v41, -inf }
 0x333   : > { %1468 = vmax.xlane.f32.xlu0 %v1467_v44  ;;  %v1443_v45 = vpop.f32.mrb[26].mxu1 }
 0x334   : > { %v6692_v48 = vpop.f32.mrb[27].mxu1  ;;  %1022 = vperm.xlu1 %7282, %v639_v28  }
 0x338   : > { %1032 = vperm.xlu1 %7282, %v641_v51  }
 0x349   : > { %1007 = vperm.xlu0 %7283, %v636_v52  }
 0x39f   : > { %v1454_v55 = vpop.xlane.xlu1 %1453 }
 0x3a0   : > { %v1472_v58 = vsub.f32 %v1210_v0, %v1454_v55 }
 0x3a2   : > { %v1482_v60 = vmul.f32 1.442695, %v1472_v58 }
 0x3a3   : > { %v1448_v29 = vpop.xlane.xlu1 %1447 }
 0x3a4   : > { %7314 = vpow2.f32 %v1482_v60  ;;  %v1470_v37 = vsub.f32 %v1118_v1, %v1448_v29 }
 0x3a6   : > { %v1478_v46 = vmul.f32 1.442695, %v1470_v37 }
 0x3a8   : > { %7316 = vpow2.f32 %v1478_v46  ;;  %v1451_v62 = vpop.xlane.xlu0 %1450  ;;  %v1460_v63 = vpop.xlane.xlu1 %1459 }
 0x3a9   : > { %v1471_v2 = vsub.f32 %v1164_v10, %v1451_v62  ;;  %v1474_v47 = vsub.f32 %v1302_v11, %v1460_v63 }
 0x3ab   : > { %v1480_v3 = vmul.f32 1.442695, %v1471_v2  ;;  %v1486_v5 = vmul.f32 1.442695, %v1474_v47 }
 0x3ad   : > { %7318 = vpow2.f32 %v1480_v3 }
 0x3ae   : > { %v7905_v6 = vpop.eup %7314  ;;  %7320 = vpow2.f32 %v1486_v5 }
 0x3af   : > { %v1500_v7 = vsel %vm1077_vm3, %v7905_v6, 0.0 }
 0x3b0   : > { %v1457_v0 = vpop.xlane.xlu0 %1456  ;;  %1501 = vadd.xlane.f32.xlu0 %v1500_v7  ;;  %v1466_v26 = vpop.xlane.xlu1 %1465 }
 0x3b1   : > { %v1473_v8 = vsub.f32 %v1256_v20, %v1457_v0  ;;  %v638_v20 = vld [vmem:[%s8849_s1 + $0x10] sm:$0xff]  ;;  %v1476_v30 = vsub.f32 %v7883_v21, %v1466_v26 }
 0x3b2   : > { %v7317_v9 = vpop.eup %7316 }
 0x3b3   : > { %v1484_v1 = vmul.f32 1.442695, %v1473_v8  ;;  %v1494_v12 = vsel %vm1077_vm3, %v7317_v9, 0.0 }
 0x3b4   : > { %1495 = vadd.xlane.f32.xlu1 %v1494_v12  ;;  %v7955_v45 = vpop.permute.xlu1 %1022 }
 0x3b5   : > { %7322 = vpow2.f32 %v1484_v1  ;;  %v1048_v62 = vmul.f32 %v7838_v42, %v7955_v45 }
 0x3b7   : > { %v7910_v10 = vpop.eup %7318  ;;  %v1072_v8 = vpack.c.bf16 %v1048_v62, %v1048_v62 }
 0x3b8   : > { %v7912_v11 = vpop.eup %7320  ;;  %v1497_v13 = vsel %vm1077_vm3, %v7910_v10, 0.0  ;;  %v1463_v16 = vpop.xlane.xlu0 %1462 }
 0x3b9   : > { %1498 = vadd.xlane.f32.xlu0 %v1497_v13  ;;  %v1506_v14 = vsel %vm1077_vm3, %v7912_v11, 0.0  ;;  %v1475_v31 = vsub.f32 %v7888_v32, %v1463_v16  ;;  %v7957_v48 = vpop.permute.xlu1 %1032  ;;  %v1685_v12 = vsel %vm1545_vm4, %v1072_v8, 0 }
 0x3ba   : > { %1507 = vadd.xlane.f32.xlu1 %v1506_v14 }
 0x3bb   : > { %v1488_v33 = vmul.f32 1.442695, %v1475_v31 }
 0x3bf   : > { %v7918_v15 = vpop.eup %7322 }
 0x3c0   : > { %v1503_v17 = vsel %vm1077_vm3, %v7918_v15, 0.0  ;;  %v1469_v18 = vpop.xlane.xlu0 %1468 }
 0x3c1   : > { %1504 = vadd.xlane.f32.xlu0 %v1503_v17  ;;  %v1477_v34 = vsub.f32 %v7892_v41, %v1469_v18  ;;  %v642_v41 = vld [vmem:[%s8849_s1 + $0x30] sm:$0xff] }
 0x3c3   : > { %v1492_v38 = vmul.f32 1.442695, %v1477_v34 }
 0x3c8   : > { %v7922_v19 = vpop.permute.xlu0 %1007 }
 0x3c9   : > { %v1045_v22 = vmul.f32 %v7922_v19, %v7836_v40  ;;  %v1490_v40 = vmul.f32 1.442695, %v1476_v30 }
 0x3cb   : > { %1017 = vperm.xlu1 %7282, %v638_v20   ;;  %v1069_v23 = vpack.c.bf16 %v1045_v22, %v1045_v22  ;;  %7324 = vpow2.f32 %v1490_v40 }
 0x3cc   : > { %7326 = vpow2.f32 %v1488_v33 }
 0x3cd   : > { %v1547_v24 = vsel %vm1545_vm4, %v1069_v23, 0  ;;  %7328 = vpow2.f32 %v1492_v38 }
 0x3ce   : > { %6694 = vmatpush3.bf16.msra.mxu0 %v1547_v24 }
 0x3cf   : > { %6705 = vmatprep.subr.bf16.mxu0 %v7537_v57 }
 0x3d5   : > { %v7940_v35 = vpop.eup %7324 }
 0x3d6   : > { %v1512_v28 = vsel %vm1077_vm3, %v7940_v35, 0.0  ;;  %v7944_v43 = vpop.eup %7326 }
 0x3d7   : > { %1042 = vperm.xlu0 %7283, %v643_v25   ;;  %v1509_v21 = vsel %vm1077_vm3, %v7944_v43, 0.0  ;;  %v7948_v44 = vpop.eup %7328 }
 0x3d8   : > { %v1515_v32 = vsel %vm1077_vm3, %v7948_v44, 0.0 }
 0x3db   : > { %1027 = vperm.xlu0 %7283, %v640_v27  }
 0x3ef   : > { %1513 = vadd.xlane.f32.xlu1 %v1512_v28 }
 0x3fa   : > { %1510 = vadd.xlane.f32.xlu0 %v1509_v21 }
 0x3fe   : > { %1516 = vadd.xlane.f32.xlu0 %v1515_v32 }
 0x414   : > { %1037 = vperm.xlu0 %7283, %v642_v41   ;;  %v6240_v41 = vld [vmem:[%s7650_s22 + $0x14] sm:$0xf] }
 0x43d   : > { %v1502_v52 = vpop.xlane.xlu0 %1501 }
 0x441   : > { %v1496_v51 = vpop.xlane.xlu1 %1495 }
 0x442   : > { %7330 = vrcp.f32 %v1496_v51  ;;  %v6235_v51 = vld [vmem:[%s7650_s22 + $0x4] sm:$0xf] }
 0x443   : > { %7332 = vrcp.f32 %v1502_v52 }
 0x446   : > { %v1499_v55 = vpop.xlane.xlu0 %1498 }
 0x447   : > { %7334 = vrcp.f32 %v1499_v55  ;;  %v1508_v58 = vpop.xlane.xlu1 %1507  ;;  %v1992_v55 = vsel %vm646_vm1, %v6240_v41, 0 }
 0x44b   : > { %v7959_v60 = vpop.permute.xlu1 %1017 }
 0x44c   : > { %v7331_v29 = vpop.eup %7330  ;;  %v1047_v37 = vmul.f32 %v7834_v39, %v7959_v60 }
 0x44d   : > { %v1526_v46 = vmul.f32 %v7331_v29, %v7317_v9  ;;  %v7333_v3 = vpop.eup %7332  ;;  %v1050_v9 = vmul.f32 %v7957_v48, %v7856_v54 }
 0x44e   : > { %v1505_v63 = vpop.xlane.xlu0 %1504  ;;  %v1071_v2 = vpack.c.bf16 %v1047_v37, %v1047_v37  ;;  %v1528_v39 = vmul.f32 %v7333_v3, %v7905_v6 }
 0x44f   : > { %7336 = vrcp.f32 %v1505_v63  ;;  %v1534_v47 = vpack.c.bf16 %v1526_v46, %v1526_v46  ;;  %v1074_v16 = vpack.c.bf16 %v1050_v9, %v1050_v9 }
 0x450   : > { %7338 = vrcp.f32 %v1508_v58  ;;  %v1639_v5 = vsel %vm1545_vm4, %v1071_v2, 0  ;;  %v1922_v58 = vsel %vm646_vm1, %v6235_v51, 0 }
 0x451   : > { %v7335_v7 = vpop.eup %7334  ;;  %6696 = vmatmul.mubr.msk.bf16.vlgmr.msra.gmra.mrb[28].mxu0 %vm1077_vm3, %v1534_v47  ;;  %v1777_v23 = vsel %vm1545_vm4, %v1074_v16, 0 }
 0x452   : > { %v1527_v0 = vmul.f32 %v7335_v7, %v7910_v10  ;;  %6706 = vmatpush3.bf16.msra.mxu0 %v1639_v5  ;;  %6707 = vmatprep.mubr.msk.bf16.mxu0 %vm7538_vm2, %v7537_v57  ;;  %v1536_v10 = vpack.c.bf16 %v1528_v39, %v1528_v39 }
 0x453   : > { %6717 = vmatprep.subr.bf16.mxu0 %v7537_v57 }
 0x454   : > { %v1535_v42 = vpack.c.bf16 %v1527_v0, %v1527_v0 }
 0x456   : > { %6702 = vmatmul.mubr.msk.bf16.vlgmr.msra.gmra.mrb[28].mxu1 %vm1077_vm3, %v1535_v42  ;;  %v7975_v1 = vpop.permute.xlu0 %1042 }
 0x457   : > { %6712 = vmatpush3.bf16.msra.mxu1 %v1685_v12  ;;  %6713 = vmatprep.mubr.msk.bf16.mxu1 %vm7538_vm2, %v7537_v57  ;;  %v1052_v26 = vmul.f32 %v7854_v36, %v7975_v1 }
 0x458   : > { %6723 = vmatprep.subr.bf16.mxu1 %v7537_v57 }
 0x459   : > { %v7337_v6 = vpop.eup %7336  ;;  %6708 = vmatmul.mubr.msk.bf16.vlgmr.msra.gmra.mrb[32].mxu0 %vm1077_vm3, %v1536_v10  ;;  %v1076_v33 = vpack.c.bf16 %v1052_v26, %v1052_v26 }
 0x45a   : > { %v7339_v13 = vpop.eup %7338  ;;  %v1529_v14 = vmul.f32 %v7337_v6, %v7918_v15  ;;  %v7983_v54 = vpop.permute.xlu0 %1027  ;;  %6719 = vmatprep.mubr.msk.bf16.mxu0 %vm7538_vm2, %v7537_v57 }
 0x45b   : > { %v1049_v17 = vmul.f32 %v7983_v54, %v7852_v50  ;;  %v1530_v20 = vmul.f32 %v7339_v13, %v7912_v11  ;;  %v1869_v36 = vsel %vm1545_vm4, %v1076_v33, 0 }
 0x45c   : > { %v1537_v18 = vpack.c.bf16 %v1529_v14, %v1529_v14 }
 0x45d   : > { %v1073_v22 = vpack.c.bf16 %v1049_v17, %v1049_v17  ;;  %v1538_v24 = vpack.c.bf16 %v1530_v20, %v1530_v20 }
 0x45e   : > { %6714 = vmatmul.mubr.msk.bf16.vlgmr.msra.gmra.mrb[32].mxu1 %vm1077_vm3, %v1537_v18 }
 0x45f   : > { %6724 = vmatpush3.bf16.msra.mxu1 %v1777_v23  ;;  %v1731_v15 = vsel %vm1545_vm4, %v1073_v22, 0  ;;  %6725 = vmatprep.mubr.msk.bf16.mxu1 %vm7538_vm2, %v7537_v57 }
 0x460   : > { %6718 = vmatpush3.bf16.msra.mxu0 %v1731_v15  ;;  %6735 = vmatprep.subr.bf16.mxu1 %v7537_v57 }
 0x461   : > { %6729 = vmatprep.subr.bf16.mxu0 %v7537_v57 }
 0x463   : > { %6720 = vmatmul.mubr.msk.bf16.vlgmr.msra.gmra.mrb[36].mxu0 %vm1077_vm3, %v1538_v24 }
 0x464   : > { %6731 = vmatprep.mubr.msk.bf16.mxu0 %vm7538_vm2, %v7537_v57 }
 0x47c   : > { %v1514_v50 = vpop.xlane.xlu1 %1513 }
 0x487   : > { %v1511_v11 = vpop.xlane.xlu0 %1510 }
 0x488   : > { %7340 = vrcp.f32 %v1511_v11 }
 0x489   : > { %7342 = vrcp.f32 %v1514_v50 }
 0x48b   : > { %v1517_v25 = vpop.xlane.xlu0 %1516 }
 0x48c   : > { %7344 = vrcp.f32 %v1517_v25 }
 0x492   : > { %v7341_v27 = vpop.eup %7340 }
 0x493   : > { %v7343_v30 = vpop.eup %7342  ;;  %v1531_v40 = vmul.f32 %v7341_v27, %v7944_v43  ;;  %v8003_v31 = vpop.permute.xlu0 %1037 }
 0x494   : > { %v1051_v34 = vmul.f32 %v7850_v49, %v8003_v31  ;;  %v1532_v21 = vmul.f32 %v7343_v30, %v7940_v35 }
 0x495   : > { %v1539_v38 = vpack.c.bf16 %v1531_v40, %v1531_v40 }
 0x496   : > { %v7345_v28 = vpop.eup %7344  ;;  %v1075_v32 = vpack.c.bf16 %v1051_v34, %v1051_v34  ;;  %v1540_v35 = vpack.c.bf16 %v1532_v21, %v1532_v21 }
 0x497   : > { %6726 = vmatmul.mubr.msk.bf16.vlgmr.msra.gmra.mrb[36].mxu1 %vm1077_vm3, %v1539_v38  ;;  %v1533_v49 = vmul.f32 %v7345_v28, %v7948_v44  ;;  %v6245_v44 = vld [vmem:[%s7650_s22 + $0x24] sm:$0xf] }
 0x498   : > { %6736 = vmatpush3.bf16.msra.mxu1 %v1869_v36  ;;  %v1823_v43 = vsel %vm1545_vm4, %v1075_v32, 0  ;;  %6737 = vmatprep.mubr.msk.bf16.mxu1 %vm7538_vm2, %v7537_v57  ;;  %v2062_v29 = vsel %vm646_vm1, %v6245_v44, 0 }
 0x499   : > { %6730 = vmatpush3.bf16.msra.mxu0 %v1823_v43  ;;  %7223 = vmatprep.subr.msk.bf16.mxu1 %vm646_vm1, %v6240_v41  ;;  %v1541_v52 = vpack.c.bf16 %v1533_v49, %v1533_v49 }
 0x49a   : > { %7222 = vmatprep.subr.msk.bf16.mxu0 %vm646_vm1, %v6235_v51 }
 0x49c   : > { %6732 = vmatmul.mubr.msk.bf16.vlgmr.msra.gmra.mrb[40].mxu0 %vm1077_vm3, %v1540_v35 }
 0x49d   : > { %6743 = vmatprep.mubr.msk.bf16.mxu0 %vm646_vm1, %v7777_v53 }
 0x49f   : > { %6738 = vmatmul.mubr.msk.bf16.vlgmr.msra.gmra.mrb[40].mxu1 %vm1077_vm3, %v1541_v52 }
 0x4a0   : > { %6753 = vmatprep.mubr.msk.bf16.mxu1 %vm646_vm1, %v7777_v53 }
 0x4a1   : > { %6752 = vmatpush3.bf16.xpose.msra.mxu1 %v1992_v55 }
 0x4a2   : > { %6742 = vmatpush3.bf16.xpose.msra.mxu0 %v1922_v58  ;;  %6771 = vmatprep.subr.bf16.mxu1 %v7537_v57 }
 0x4a3   : > { %7224 = vmatprep.subr.msk.bf16.mxu0 %vm646_vm1, %v6245_v44 }
 0x4a8   : > { %6754 = vmatmul.mubr.msk.bf16.vlgmr.msra.gmra.mrb[44].mxu1 %vm646_vm1, %v7785_v61 }
 0x4a9   : > { %6757 = vmatprep.mubr.msk.bf16.mxu1 %vm646_vm1, %v7794_v56  ;;  %6744 = vmatmul.mubr.msk.bf16.vlgmr.msra.gmra.mrb[44].mxu0 %vm646_vm1, %v7785_v61 }
 0x4aa   : > { %6747 = vmatprep.mubr.msk.bf16.mxu0 %vm646_vm1, %v7794_v56  ;;  %6762 = vmatpush3.bf16.xpose.msra.mxu0 %v2062_v29 }
 0x4ab   : > { %6783 = vmatprep.subr.bf16.mxu0 %v7537_v57 }
 0x4b0   : > { %6758 = vmatmul.mubr.msk.bf16.gmra.mrb[48].mxu1 %vm646_vm1, %v7800_v4 }
 0x4b1   : > { %6748 = vmatmul.mubr.msk.bf16.gmra.mrb[48].mxu0 %vm646_vm1, %v7800_v4  ;;  %6773 = vmatprep.mubr.msk.bf16.mxu1 %vm7538_vm2, %v7537_v57 }
 0x4b2   : > { %6763 = vmatprep.mubr.msk.bf16.mxu0 %vm646_vm1, %v7777_v53 }
 0x4b9   : > { %6764 = vmatmul.mubr.msk.bf16.vlgmr.msra.gmra.mrb[52].mxu0 %vm646_vm1, %v7785_v61 }
 0x4ba   : > { %6767 = vmatprep.mubr.msk.bf16.mxu0 %vm646_vm1, %v7794_v56 }
 0x4c1   : > { %6768 = vmatmul.mubr.msk.bf16.gmra.mrb[56].mxu0 %vm646_vm1, %v7800_v4 }
 0x4c2   : > { %6785 = vmatprep.mubr.msk.bf16.mxu0 %vm7538_vm2, %v7537_v57 }
 0x524   : > { %v8055_v37 = vpop.f32.mrb[28].mxu0 }
 0x525   : > { %v6697_v46 = vpop.f32.mrb[29].mxu0 }
 0x526   : > { %v1586_v62 = vpop.f32.mrb[30].mxu0 }
 0x527   : > { %v6698_v63 = vpop.f32.mrb[31].mxu0 }
 0x529   : > { %v8057_v2 = vpop.f32.mrb[28].mxu1 }
 0x52a   : > { %v1911_v47 = vpack.c.bf16 %v8057_v2, %v8055_v37  ;;  %v6703_v3 = vpop.f32.mrb[29].mxu1 }
 0x52b   : > { %v1632_v5 = vpop.f32.mrb[30].mxu1 }
 0x52c   : > { %v6704_v7 = vpop.f32.mrb[31].mxu1  ;;  %v8061_v0 = vpop.f32.mrb[32].mxu0 }
 0x52d   : > { %v6709_v8 = vpop.f32.mrb[33].mxu0 }
 0x52e   : > { %v1678_v39 = vpop.f32.mrb[34].mxu0 }
 0x52f   : > { %v6710_v42 = vpop.f32.mrb[35].mxu0 }
 0x531   : > { %v8063_v9 = vpop.f32.mrb[32].mxu1 }
 0x532   : > { %v1912_v12 = vpack.c.bf16 %v8063_v9, %v8061_v0  ;;  %v6715_v10 = vpop.f32.mrb[33].mxu1 }
 0x533   : > { %v1724_v6 = vpop.f32.mrb[34].mxu1 }
 0x534   : > { %v6716_v13 = vpop.f32.mrb[35].mxu1 }
 0x536   : > { %v8067_v14 = vpop.f32.mrb[36].mxu0 }
 0x537   : > { %v6721_v16 = vpop.f32.mrb[37].mxu0 }
 0x538   : > { %v1770_v17 = vpop.f32.mrb[38].mxu0 }
 0x539   : > { %v6722_v18 = vpop.f32.mrb[39].mxu0 }
 0x56a   : > { %v8069_v20 = vpop.f32.mrb[36].mxu1 }
 0x56b   : > { %v1913_v22 = vpack.c.bf16 %v8069_v20, %v8067_v14  ;;  %v6727_v23 = vpop.f32.mrb[37].mxu1 }
 0x56c   : > { %v1816_v15 = vpop.f32.mrb[38].mxu1 }
 0x56d   : > { %v6728_v24 = vpop.f32.mrb[39].mxu1 }
 0x56f   : > { %v8073_v50 = vpop.f32.mrb[40].mxu0 }
 0x570   : > { %v6733_v11 = vpop.f32.mrb[41].mxu0 }
 0x571   : > { %v1862_v25 = vpop.f32.mrb[42].mxu0 }
 0x572   : > { %v6734_v26 = vpop.f32.mrb[43].mxu0  ;;  %v8075_v27 = vpop.f32.mrb[40].mxu1 }
 0x573   : > { %v1914_v30 = vpack.c.bf16 %v8075_v27, %v8073_v50  ;;  %v6739_v40 = vpop.f32.mrb[41].mxu1 }
 0x574   : > { %v1908_v33 = vpop.f32.mrb[42].mxu1 }
 0x575   : > { %v6740_v34 = vpop.f32.mrb[43].mxu1 }
 0x57b   : > { %v6755_v38 = vpop.f32.mrb[44].mxu1 }
 0x57c   : > { %v2147_v28 = vpack.c.bf16 %v6755_v38, %v6755_v38  ;;  %v2028_v21 = vpop.f32.mrb[45].mxu1  ;;  %v6745_v32 = vpop.f32.mrb[44].mxu0 }
 0x57d   : > { %v2145_v41 = vpack.c.bf16 %v2028_v21, %v2028_v21  ;;  %v6756_v36 = vpop.f32.mrb[46].mxu1  ;;  %v1958_v51 = vpop.f32.mrb[45].mxu0  ;;  %v2139_v29 = vpack.c.bf16 %v6745_v32, %v6745_v32 }
 0x57e   : > { %v2257_v43 = vsel %vm1077_vm3, %v2147_v28, 0  ;;  %v2031_v49 = vpop.f32.mrb[47].mxu1  ;;  %v6746_v35 = vpop.f32.mrb[46].mxu0  ;;  %v2137_v63 = vpack.c.bf16 %v1958_v51, %v1958_v51  ;;  %v2148_v13 = vpack.c.bf16 %v6756_v36, %v6756_v36 }
 0x57f   : > { %v2165_v52 = vsel %vm1077_vm3, %v2145_v41, 0  ;;  %6784 = vmatpush3.bf16.xpose.msra.mxu0 %v2257_v43  ;;  %v1961_v55 = vpop.f32.mrb[47].mxu0  ;;  %v2146_v58 = vpack.c.bf16 %v2031_v49, %v2031_v49  ;;  %v2140_v28 = vpack.c.bf16 %v6746_v35, %v6746_v35 }
 0x580   : > { %6772 = vmatpush3.bf16.xpose.msra.mxu1 %v2165_v52  ;;  %6795 = vmatprep.subr.bf16.mxu0 %v7537_v57  ;;  %v2138_v18 = vpack.c.bf16 %v1961_v55, %v1961_v55  ;;  %v2303_v11 = vsel %vm1077_vm3, %v2148_v13, 0 }
 0x581   : > { %6777 = vmatprep.subr.bf16.mxu1 %v7537_v57  ;;  %v2211_v42 = vsel %vm1077_vm3, %v2146_v58, 0 }
 0x583   : > { %v6759_v44 = vpop.f32.mrb[48].mxu1 }
 0x584   : > { %v2044_v46 = vpop.f32.mrb[49].mxu1  ;;  %v6749_v62 = vpop.f32.mrb[48].mxu0  ;;  %v2151_v16 = vpack.c.bf16 %v6759_v44, %v6759_v44 }
 0x585   : > { %v2149_v3 = vpack.c.bf16 %v2044_v46, %v2044_v46  ;;  %v6760_v5 = vpop.f32.mrb[50].mxu1  ;;  %v1974_v7 = vpop.f32.mrb[49].mxu0  ;;  %v2143_v21 = vpack.c.bf16 %v6749_v62, %v6749_v62 }
 0x586   : > { %v2047_v8 = vpop.f32.mrb[51].mxu1  ;;  %6786 = vmatmul.mubr.msk.bf16.vlgmr.msra.gmra.mrb[60].mxu0 %vm1077_vm3, %v2139_v29  ;;  %v6750_v39 = vpop.f32.mrb[50].mxu0  ;;  %v2141_v23 = vpack.c.bf16 %v1974_v7, %v1974_v7  ;;  %v2441_v25 = vsel %vm1077_vm3, %v2151_v16, 0  ;;  %v2152_v49 = vpack.c.bf16 %v6760_v5, %v6760_v5 }
 0x587   : > { %v2349_v10 = vsel %vm1077_vm3, %v2149_v3, 0  ;;  %6774 = vmatmul.mubr.msk.bf16.vlgmr.msra.gmra.mrb[52].mxu1 %vm1077_vm3, %v2137_v63  ;;  %v1977_v6 = vpop.f32.mrb[51].mxu0  ;;  %6797 = vmatprep.mubr.msk.bf16.mxu0 %vm7538_vm2, %v7537_v57  ;;  %v2150_v33 = vpack.c.bf16 %v2047_v8, %v2047_v8  ;;  %v2144_v44 = vpack.c.bf16 %v6750_v39, %v6750_v39 }
 0x588   : > { %6778 = vmatpush3.bf16.xpose.msra.mxu1 %v2211_v42  ;;  %6796 = vmatpush3.bf16.xpose.msra.mxu0 %v2349_v10  ;;  %v2142_v35 = vpack.c.bf16 %v1977_v6, %v1977_v6  ;;  %v2487_v52 = vsel %vm1077_vm3, %v2152_v49, 0 }
 0x589   : > { %6779 = vmatprep.mubr.msk.bf16.mxu1 %vm7538_vm2, %v7537_v57  ;;  %6789 = vmatprep.subr.bf16.mxu1 %v7537_v57  ;;  %v2395_v36 = vsel %vm1077_vm3, %v2150_v33, 0 }
 0x58a   : > { %6807 = vmatprep.subr.bf16.mxu0 %v7537_v57 }
 0x58c   : > { %v8093_v17 = vpop.f32.mrb[52].mxu0 }
 0x58d   : > { %v2098_v15 = vpop.f32.mrb[53].mxu0 }
 0x58e   : > { %v8095_v24 = vpop.f32.mrb[54].mxu0  ;;  %v2129_v26 = vmul.f32 %v2098_v15, %v7922_v19 }
 0x58f   : > { %6780 = vmatmul.mubr.msk.bf16.vlgmr.msra.gmra.mrb[56].mxu1 %vm1077_vm3, %v2138_v18  ;;  %6798 = vmatmul.mubr.msk.bf16.vlgmr.msra.gmra.mrb[64].mxu0 %vm1077_vm3, %v2141_v23  ;;  %v2101_v40 = vpop.f32.mrb[55].mxu0 }
 0x590   : > { %6790 = vmatpush3.bf16.xpose.msra.mxu1 %v2303_v11  ;;  %6808 = vmatpush3.bf16.xpose.msra.mxu0 %v2441_v25  ;;  %v2153_v34 = vpack.c.bf16 %v2129_v26, %v2129_v26  ;;  %v2130_v55 = vmul.f32 %v2101_v40, %v7866_v59 }
 0x591   : > { %6791 = vmatprep.mubr.msk.bf16.mxu1 %vm7538_vm2, %v7537_v57  ;;  %6809 = vmatprep.mubr.msk.bf16.mxu0 %vm7538_vm2, %v7537_v57 }
 0x592   : > { %6801 = vmatprep.subr.bf16.mxu1 %v7537_v57  ;;  %6819 = vmatprep.subr.bf16.mxu0 %v7537_v57  ;;  %v2629_v51 = vsel %vm1545_vm4, %v2153_v34, 0  ;;  %v2154_v58 = vpack.c.bf16 %v2130_v55, %v2130_v55 }
 0x594   : > { %v8108_v38 = vpop.f32.mrb[56].mxu0  ;;  %v2675_v29 = vsel %vm1545_vm4, %v2154_v58, 0 }
 0x595   : > { %v8110_v32 = vpop.f32.mrb[57].mxu0 }
 0x596   : > { %v8112_v41 = vpop.f32.mrb[58].mxu0 }
 0x597   : > { %6792 = vmatmul.mubr.msk.bf16.vlgmr.msra.gmra.mrb[60].mxu1 %vm1077_vm3, %v2140_v28  ;;  %6810 = vmatmul.mubr.msk.bf16.vlgmr.msra.gmra.mrb[68].mxu0 %vm1077_vm3, %v2143_v21  ;;  %v8118_v43 = vpop.f32.mrb[59].mxu0 }
 0x598   : > { %6802 = vmatpush3.bf16.xpose.msra.mxu1 %v2395_v36  ;;  %6820 = vmatpush3.bf16.msra.mxu0 %v2629_v51 }
 0x599   : > { %6803 = vmatprep.mubr.msk.bf16.mxu1 %vm7538_vm2, %v7537_v57  ;;  %6813 = vmatprep.subr.bf16.mxu1 %v7537_v57 }
 0x59a   : > { %6821 = vmatprep.mubr.msk.bf16.mxu0 %vm7538_vm2, %v7537_v57  ;;  %6831 = vmatprep.subr.bf16.mxu0 %v7537_v57 }
 0x59f   : > { %6804 = vmatmul.mubr.msk.bf16.vlgmr.msra.gmra.mrb[64].mxu1 %vm1077_vm3, %v2142_v35 }
 0x5a0   : > { %6814 = vmatpush3.bf16.xpose.msra.mxu1 %v2487_v52  ;;  %6815 = vmatprep.mubr.msk.bf16.mxu1 %vm7538_vm2, %v7537_v57 }
 0x5a1   : > { %6825 = vmatprep.subr.bf16.mxu1 %v7537_v57 }
 0x5a7   : > { %6816 = vmatmul.mubr.msk.bf16.vlgmr.msra.gmra.mrb[68].mxu1 %vm1077_vm3, %v2144_v44 }
 0x5a8   : > { %6826 = vmatpush3.bf16.msra.mxu1 %v2675_v29  ;;  %6827 = vmatprep.mubr.msk.bf16.mxu1 %vm7538_vm2, %v7537_v57 }
 0x5a9   : > { %6837 = vmatprep.subr.bf16.mxu1 %v7537_v57 }
 0x659   : > { %v8137_v46 = vpop.f32.mrb[60].mxu0 }
 0x65a   : > { %v2201_v62 = vpop.f32.mrb[52].mxu1  ;;  %v6787_v63 = vpop.f32.mrb[61].mxu0  ;;  %v2535_v29 = vsel %vm1077_vm3, %v8137_v46, -inf }
 0x65b   : > { %v6775_v3 = vpop.f32.mrb[53].mxu1  ;;  %v2296_v5 = vpop.f32.mrb[62].mxu0  ;;  %v2529_v25 = vsel %vm1077_vm3, %v2201_v62, -inf }
 0x65c   : > { %v2204_v7 = vpop.f32.mrb[54].mxu1  ;;  %v6788_v8 = vpop.f32.mrb[63].mxu0 }
 0x65d   : > { %v6776_v42 = vpop.f32.mrb[55].mxu1 }
 0x662   : > { %v2247_v39 = vpop.f32.mrb[56].mxu1  ;;  %v8139_v10 = vpop.f32.mrb[64].mxu0 }
 0x663   : > { %v6781_v6 = vpop.f32.mrb[57].mxu1  ;;  %v6799_v13 = vpop.f32.mrb[65].mxu0  ;;  %v2532_v16 = vsel %vm1077_vm3, %v2247_v39, -inf  ;;  %v2541_v42 = vsel %vm1077_vm3, %v8139_v10, -inf }
 0x664   : > { %2533 = vmax.xlane.f32.xlu1 %v2532_v16  ;;  %v2250_v18 = vpop.f32.mrb[58].mxu1  ;;  %v2388_v23 = vpop.f32.mrb[66].mxu0 }
 0x665   : > { %v6782_v15 = vpop.f32.mrb[59].mxu1  ;;  %v6800_v11 = vpop.f32.mrb[67].mxu0 }
 0x668   : > { %2530 = vmax.xlane.f32.xlu1 %v2529_v25 }
 0x66a   : > { %v2339_v26 = vpop.f32.mrb[60].mxu1  ;;  %v8143_v40 = vpop.f32.mrb[68].mxu0 }
 0x66b   : > { %v6793_v33 = vpop.f32.mrb[61].mxu1  ;;  %v6811_v34 = vpop.f32.mrb[69].mxu0  ;;  %v2538_v28 = vsel %vm1077_vm3, %v2339_v26, -inf  ;;  %v2547_v6 = vsel %vm1077_vm3, %v8143_v40, -inf }
 0x66c   : > { %2539 = vmax.xlane.f32.xlu0 %v2538_v28  ;;  %v2342_v21 = vpop.f32.mrb[62].mxu1  ;;  %v2480_v36 = vpop.f32.mrb[70].mxu0 }
 0x66d   : > { %v6794_v51 = vpop.f32.mrb[63].mxu1  ;;  %v6812_v49 = vpop.f32.mrb[71].mxu0 }
 0x672   : > { %v2431_v35 = vpop.f32.mrb[64].mxu1 }
 0x673   : > { %v6805_v52 = vpop.f32.mrb[65].mxu1  ;;  %v2544_v55 = vsel %vm1077_vm3, %v2431_v35, -inf }
 0x674   : > { %2545 = vmax.xlane.f32.xlu1 %v2544_v55  ;;  %v2434_v58 = vpop.f32.mrb[66].mxu1 }
 0x675   : > { %v6806_v44 = vpop.f32.mrb[67].mxu1 }
 0x678   : > { %2536 = vmax.xlane.f32.xlu1 %v2535_v29 }
 0x67a   : > { %v2523_v63 = vpop.f32.mrb[68].mxu1 }
 0x67b   : > { %v6817_v3 = vpop.f32.mrb[69].mxu1  ;;  %v2550_v5 = vsel %vm1077_vm3, %v2523_v63, -inf }
 0x67c   : > { %v2526_v7 = vpop.f32.mrb[70].mxu1  ;;  %2551 = vmax.xlane.f32.xlu1 %v2550_v5 }
 0x67d   : > { %v6818_v8 = vpop.f32.mrb[71].mxu1 }
 0x680   : > { %2542 = vmax.xlane.f32.xlu1 %v2541_v42 }
 0x684   : > { %2548 = vmax.xlane.f32.xlu1 %v2547_v6 }
 0x6f1   : > { %v2534_v13 = vpop.xlane.xlu1 %2533 }
 0x6f2   : > { %v2554_v16 = vsub.f32 %v2247_v39, %v2534_v13 }
 0x6f4   : > { %v2563_v18 = vmul.f32 1.442695, %v2554_v16 }
 0x6f5   : > { %v2531_v23 = vpop.xlane.xlu1 %2530 }
 0x6f6   : > { %7346 = vpow2.f32 %v2563_v18  ;;  %v2553_v15 = vsub.f32 %v2201_v62, %v2531_v23 }
 0x6f8   : > { %v2561_v11 = vmul.f32 1.442695, %v2553_v15 }
 0x6f9   : > { %v2540_v25 = vpop.xlane.xlu0 %2539 }
 0x6fa   : > { %7348 = vpow2.f32 %v2561_v11  ;;  %v2556_v33 = vsub.f32 %v2339_v26, %v2540_v25 }
 0x6fc   : > { %v2567_v34 = vmul.f32 1.442695, %v2556_v33 }
 0x6fe   : > { %7350 = vpow2.f32 %v2567_v34 }
 0x700   : > { %v7347_v28 = vpop.eup %7346 }
 0x701   : > { %v2546_v21 = vpop.xlane.xlu1 %2545  ;;  %v2580_v36 = vsel %vm1077_vm3, %v7347_v28, 0.0 }
 0x702   : > { %v2558_v51 = vsub.f32 %v2431_v35, %v2546_v21  ;;  %2581 = vadd.xlane.f32.xlu1 %v2580_v36  ;;  %v2132_v21 = vmul.f32 %v8095_v24, %v7955_v45 }
 0x704   : > { %v7349_v49 = vpop.eup %7348  ;;  %v2571_v52 = vmul.f32 1.442695, %v2558_v51 }
 0x705   : > { %v2537_v55 = vpop.xlane.xlu1 %2536  ;;  %v2577_v39 = vsel %vm1077_vm3, %v7349_v49, 0.0 }
 0x706   : > { %7352 = vpow2.f32 %v2571_v52  ;;  %v2555_v62 = vsub.f32 %v8137_v46, %v2537_v55  ;;  %2578 = vadd.xlane.f32.xlu0 %v2577_v39  ;;  %v2131_v52 = vmul.f32 %v8093_v17, %v7959_v60  ;;  %v2156_v55 = vpack.c.bf16 %v2132_v21, %v2132_v21 }
 0x708   : > { %v7351_v58 = vpop.eup %7350  ;;  %v2565_v44 = vmul.f32 1.442695, %v2555_v62 }
 0x709   : > { %v2552_v26 = vpop.xlane.xlu1 %2551  ;;  %v2586_v29 = vsel %vm1077_vm3, %v7351_v58, 0.0 }
 0x70a   : > { %7354 = vpow2.f32 %v2565_v44  ;;  %v2560_v3 = vsub.f32 %v2523_v63, %v2552_v26  ;;  %2587 = vadd.xlane.f32.xlu1 %v2586_v29  ;;  %v2155_v26 = vpack.c.bf16 %v2131_v52, %v2131_v52  ;;  %v2767_v29 = vsel %vm1545_vm4, %v2156_v55, 0 }
 0x70b   : > { %v2135_v52 = vmul.f32 %v8108_v38, %v8003_v31 }
 0x70c   : > { %v2575_v5 = vmul.f32 1.442695, %v2560_v3  ;;  %v2134_v3 = vmul.f32 %v8118_v43, %v7957_v48 }
 0x70d   : > { %v2543_v35 = vpop.xlane.xlu1 %2542 }
 0x70e   : > { %7356 = vpow2.f32 %v2575_v5  ;;  %v2557_v7 = vsub.f32 %v8139_v10, %v2543_v35  ;;  %v2721_v35 = vsel %vm1545_vm4, %v2155_v26, 0  ;;  %v2159_v26 = vpack.c.bf16 %v2135_v52, %v2135_v52 }
 0x710   : > { %v8159_v8 = vpop.eup %7352  ;;  %v2569_v42 = vmul.f32 1.442695, %v2557_v7  ;;  %v2158_v7 = vpack.c.bf16 %v2134_v3, %v2134_v3 }
 0x711   : > { %v2549_v6 = vpop.xlane.xlu1 %2548  ;;  %v2592_v46 = vsel %vm1077_vm3, %v8159_v8, 0.0 }
 0x712   : > { %7358 = vpow2.f32 %v2569_v42  ;;  %v2559_v13 = vsub.f32 %v8143_v40, %v2549_v6  ;;  %2593 = vadd.xlane.f32.xlu1 %v2592_v46  ;;  %v2136_v6 = vmul.f32 %v8112_v41, %v7975_v1  ;;  %v2859_v46 = vsel %vm1545_vm4, %v2158_v7, 0 }
 0x714   : > { %v8164_v16 = vpop.eup %7354  ;;  %v2573_v63 = vmul.f32 1.442695, %v2559_v13 }
 0x715   : > { %v2583_v18 = vsel %vm1077_vm3, %v8164_v16, 0.0 }
 0x716   : > { %7360 = vpow2.f32 %v2573_v63  ;;  %2584 = vadd.xlane.f32.xlu0 %v2583_v18  ;;  %v2133_v63 = vmul.f32 %v8110_v32, %v7983_v54  ;;  %v2160_v18 = vpack.c.bf16 %v2136_v6, %v2136_v6 }
 0x718   : > { %v8168_v10 = vpop.eup %7356  ;;  %v2951_v21 = vsel %vm1545_vm4, %v2160_v18, 0 }
 0x719   : > { %v2598_v23 = vsel %vm1077_vm3, %v8168_v10, 0.0 }
 0x71a   : > { %2599 = vadd.xlane.f32.xlu1 %v2598_v23 }
 0x71c   : > { %v8172_v15 = vpop.eup %7358 }
 0x71d   : > { %v2589_v40 = vsel %vm1077_vm3, %v8172_v15, 0.0 }
 0x71e   : > { %2590 = vadd.xlane.f32.xlu0 %v2589_v40 }
 0x720   : > { %v8176_v11 = vpop.eup %7360 }
 0x721   : > { %v2595_v25 = vsel %vm1077_vm3, %v8176_v11, 0.0 }
 0x722   : > { %2596 = vadd.xlane.f32.xlu1 %v2595_v25 }
 0x78f   : > { %v2582_v33 = vpop.xlane.xlu1 %2581 }
 0x790   : > { %7362 = vrcp.f32 %v2582_v33  ;;  %v6282_v33 = vld [vmem:[%s7650_s22 + $0x8] sm:$0xf] }
 0x793   : > { %v2579_v34 = vpop.xlane.xlu0 %2578 }
 0x794   : > { %7364 = vrcp.f32 %v2579_v34  ;;  %v2157_v34 = vpack.c.bf16 %v2133_v63, %v2133_v63 }
 0x796   : > { %v2813_v55 = vsel %vm1545_vm4, %v2157_v34, 0 }
 0x797   : > { %v2588_v36 = vpop.xlane.xlu1 %2587 }
 0x798   : > { %7366 = vrcp.f32 %v2588_v36 }
 0x79a   : > { %v7363_v51 = vpop.eup %7362 }
 0x79b   : > { %v2610_v39 = vmul.f32 %v7363_v51, %v7347_v28 }
 0x79d   : > { %v2618_v62 = vpack.c.bf16 %v2610_v39, %v2610_v39 }
 0x79e   : > { %v7365_v44 = vpop.eup %7364 }
 0x79f   : > { %v2609_v5 = vmul.f32 %v7365_v44, %v7349_v49  ;;  %6828 = vmatmul.mubr.msk.bf16.vlgmr.msra.gmra.mrb[72].mxu1 %vm1077_vm3, %v2618_v62  ;;  %v2594_v24 = vpop.xlane.xlu1 %2593  ;;  %v3191_v44 = vsel %vm646_vm1, %v6282_v33, 0 }
 0x7a0   : > { %6838 = vmatpush3.bf16.msra.mxu1 %v2767_v29  ;;  %7368 = vrcp.f32 %v2594_v24  ;;  %6839 = vmatprep.mubr.msk.bf16.mxu1 %vm7538_vm2, %v7537_v57  ;;  %v6287_v29 = vld [vmem:[%s7650_s22 + $0x18] sm:$0xf] }
 0x7a1   : > { %v2617_v17 = vpack.c.bf16 %v2609_v5, %v2609_v5  ;;  %6849 = vmatprep.subr.bf16.mxu1 %v7537_v57  ;;  %v2905_v5 = vsel %vm1545_vm4, %v2159_v26, 0  ;;  %v3261_v24 = vsel %vm646_vm1, %v6287_v29, 0 }
 0x7a2   : > { %v7367_v28 = vpop.eup %7366 }
 0x7a3   : > { %v2612_v42 = vmul.f32 %v7367_v28, %v7351_v58  ;;  %6822 = vmatmul.mubr.msk.bf16.vlgmr.msra.gmra.mrb[72].mxu0 %vm1077_vm3, %v2617_v17  ;;  %v2585_v43 = vpop.xlane.xlu0 %2584  ;;  %v6292_v17 = vld [vmem:[%s7650_s22 + $0x28] sm:$0xf] }
 0x7a4   : > { %6832 = vmatpush3.bf16.msra.mxu0 %v2721_v35  ;;  %7370 = vrcp.f32 %v2585_v43  ;;  %6833 = vmatprep.mubr.msk.bf16.mxu0 %vm7538_vm2, %v7537_v57  ;;  %v7284_v35 = vld [vmem:[%s7641_s19 + $0x10] sm:$0xff]  }
 0x7a5   : > { %v2620_v49 = vpack.c.bf16 %v2612_v42, %v2612_v42  ;;  %6843 = vmatprep.subr.bf16.mxu0 %v7537_v57  ;;  %v3025_v7 = vsel %vm1077_vm3, %v7284_v35, 0  ;;  %v7285_v42 = vld [vmem:[%s7641_s19 + $0x18] sm:$0xff]  }
 0x7a6   : > { %v3028_v43 = vsel %vm1077_vm3, %v7285_v42, 0 }
 0x7a7   : > { %6840 = vmatmul.mubr.msk.bf16.vlgmr.msra.gmra.mrb[76].mxu1 %vm1077_vm3, %v2620_v49  ;;  %v2600_v58 = vpop.xlane.xlu1 %2599  ;;  %v7286_v49 = vld [vmem:[%s7641_s19] sm:$0xff]  }
 0x7a8   : > { %7372 = vrcp.f32 %v2600_v58  ;;  %6850 = vmatpush3.bf16.msra.mxu1 %v2859_v46  ;;  %6851 = vmatprep.mubr.msk.bf16.mxu1 %vm7538_vm2, %v7537_v57 }
 0x7a9   : > { %6861 = vmatprep.subr.bf16.mxu1 %v7537_v57 }
 0x7aa   : > { %v7369_v13 = vpop.eup %7368 }
 0x7ab   : > { %v2614_v41 = vmul.f32 %v7369_v13, %v8159_v8  ;;  %v2591_v23 = vpop.xlane.xlu0 %2590 }
 0x7ac   : > { %7374 = vrcp.f32 %v2591_v23 }
 0x7ad   : > { %v2622_v40 = vpack.c.bf16 %v2614_v41, %v2614_v41 }
 0x7ae   : > { %v7371_v25 = vpop.eup %7370 }
 0x7af   : > { %v2611_v36 = vmul.f32 %v7371_v25, %v8164_v16  ;;  %v2597_v51 = vpop.xlane.xlu1 %2596  ;;  %6852 = vmatmul.mubr.msk.bf16.vlgmr.msra.gmra.mrb[80].mxu1 %vm1077_vm3, %v2622_v40 }
 0x7b0   : > { %7376 = vrcp.f32 %v2597_v51  ;;  %6862 = vmatpush3.bf16.msra.mxu1 %v2951_v21  ;;  %6863 = vmatprep.mubr.msk.bf16.mxu1 %vm7538_vm2, %v7537_v57 }
 0x7b1   : > { %v2619_v32 = vpack.c.bf16 %v2611_v36, %v2611_v36  ;;  %7229 = vmatprep.subr.msk.bf16.mxu1 %vm646_vm1, %v6282_v33 }
 0x7b2   : > { %v7373_v8 = vpop.eup %7372 }
 0x7b3   : > { %v2616_v16 = vmul.f32 %v7373_v8, %v8168_v10  ;;  %6834 = vmatmul.mubr.msk.bf16.vlgmr.msra.gmra.mrb[76].mxu0 %vm1077_vm3, %v2619_v32 }
 0x7b4   : > { %6844 = vmatpush3.bf16.msra.mxu0 %v2813_v55  ;;  %6845 = vmatprep.mubr.msk.bf16.mxu0 %vm7538_vm2, %v7537_v57 }
 0x7b5   : > { %v2624_v39 = vpack.c.bf16 %v2616_v16, %v2616_v16  ;;  %6855 = vmatprep.subr.bf16.mxu0 %v7537_v57 }
 0x7b6   : > { %v7375_v62 = vpop.eup %7374 }
 0x7b7   : > { %v2613_v38 = vmul.f32 %v7375_v62, %v8172_v15  ;;  %6864 = vmatmul.mubr.msk.bf16.vlgmr.msra.gmra.mrb[84].mxu1 %vm1077_vm3, %v2624_v39  ;;  %v3118_v39 = vsel %vm1077_vm3, %v7286_v49, 0  ;;  %v7287_v62 = vld [vmem:[%s7641_s19 + $0x8] sm:$0xff]  }
 0x7b8   : > { %6893 = vmatprep.mubr.msk.bf16.mxu1 %vm646_vm1, %v7777_v53 }
 0x7b9   : > { %6892 = vmatpush3.bf16.xpose.msra.mxu1 %v3191_v44  ;;  %v2621_v10 = vpack.c.bf16 %v2613_v38, %v2613_v38 }
 0x7ba   : > { %v7377_v3 = vpop.eup %7376  ;;  %7230 = vmatprep.subr.msk.bf16.mxu1 %vm646_vm1, %v6287_v29 }
 0x7bb   : > { %6846 = vmatmul.mubr.msk.bf16.vlgmr.msra.gmra.mrb[80].mxu0 %vm1077_vm3, %v2621_v10  ;;  %v2615_v15 = vmul.f32 %v7377_v3, %v8176_v11  ;;  %v3331_v11 = vsel %vm646_vm1, %v6292_v17, 0 }
 0x7bc   : > { %6856 = vmatpush3.bf16.msra.mxu0 %v2905_v5  ;;  %6857 = vmatprep.mubr.msk.bf16.mxu0 %vm7538_vm2, %v7537_v57 }
 0x7bd   : > { %v2623_v28 = vpack.c.bf16 %v2615_v15, %v2615_v15  ;;  %7225 = vmatprep.subr.msk.bf16.mxu0 %vm1077_vm3, %v7284_v35 }
 0x7c0   : > { %6894 = vmatmul.mubr.msk.bf16.vlgmr.msra.gmra.mrb[88].mxu1 %vm646_vm1, %v7785_v61 }
 0x7c1   : > { %6897 = vmatprep.mubr.msk.bf16.mxu1 %vm646_vm1, %v7794_v56  ;;  %6902 = vmatpush3.bf16.xpose.msra.mxu1 %v3261_v24 }
 0x7c2   : > { %7231 = vmatprep.subr.msk.bf16.mxu1 %vm646_vm1, %v6292_v17  ;;  %v3121_v17 = vsel %vm1077_vm3, %v7287_v62, 0 }
 0x7c3   : > { %6858 = vmatmul.mubr.msk.bf16.vlgmr.msra.gmra.mrb[84].mxu0 %vm1077_vm3, %v2623_v28 }
 0x7c5   : > { %6868 = vmatpush3.bf16.xpose.msra.mxu0 %v3025_v7 }
 0x7c6   : > { %7226 = vmatprep.subr.msk.bf16.mxu0 %vm1077_vm3, %v7285_v42 }
 0x7c8   : > { %6898 = vmatmul.mubr.msk.bf16.gmra.mrb[92].mxu1 %vm646_vm1, %v7800_v4 }
 0x7c9   : > { %6903 = vmatprep.mubr.msk.bf16.mxu1 %vm646_vm1, %v7777_v53 }
 0x7cd   : > { %6870 = vmatpush3.bf16.xpose.msra.mxu0 %v3028_v43 }
 0x7ce   : > { %7227 = vmatprep.subr.msk.bf16.mxu0 %vm1077_vm3, %v7286_v49 }
 0x7d0   : > { %6904 = vmatmul.mubr.msk.bf16.vlgmr.msra.gmra.mrb[96].mxu1 %vm646_vm1, %v7785_v61 }
 0x7d1   : > { %6907 = vmatprep.mubr.msk.bf16.mxu1 %vm646_vm1, %v7794_v56  ;;  %6912 = vmatpush3.bf16.xpose.msra.mxu1 %v3331_v11 }
 0x7d2   : > { %6933 = vmatprep.subr.bf16.mxu1 %v7537_v57 }
 0x7d8   : > { %6908 = vmatmul.mubr.msk.bf16.gmra.mrb[100].mxu1 %vm646_vm1, %v7800_v4 }
 0x7d9   : > { %6913 = vmatprep.mubr.msk.bf16.mxu1 %vm646_vm1, %v7777_v53 }
 0x7e0   : > { %6914 = vmatmul.mubr.msk.bf16.vlgmr.msra.gmra.mrb[104].mxu1 %vm646_vm1, %v7785_v61 }
 0x7e1   : > { %6917 = vmatprep.mubr.msk.bf16.mxu1 %vm646_vm1, %v7794_v56 }
 0x7e8   : > { %6918 = vmatmul.mubr.msk.bf16.gmra.mrb[108].mxu1 %vm646_vm1, %v7800_v4 }
 0x7e9   : > { %6935 = vmatprep.mubr.msk.bf16.mxu1 %vm7538_vm2, %v7537_v57 }
 0x872   : > { %v2711_v6 = vpop.f32.mrb[72].mxu1 }
 0x873   : > { %v6829_v46 = vpop.f32.mrb[73].mxu1 }
 0x874   : > { %v2714_v58 = vpop.f32.mrb[74].mxu1 }
 0x875   : > { %v6830_v13 = vpop.f32.mrb[75].mxu1 }
 0x876   : > { %v2665_v63 = vpop.f32.mrb[72].mxu0 }
 0x877   : > { %v2993_v18 = vpack.c.bf16 %v2711_v6, %v2665_v63  ;;  %v6823_v41 = vpop.f32.mrb[73].mxu0 }
 0x878   : > { %v2668_v23 = vpop.f32.mrb[74].mxu0 }
 0x879   : > { %v6824_v40 = vpop.f32.mrb[75].mxu0  ;;  %6871 = vmatprep.mubr.msk.bf16.mxu0 %vm1077_vm3, %v2993_v18 }
 0x87a   : > { %v2803_v25 = vpop.f32.mrb[76].mxu1 }
 0x87b   : > { %v6841_v33 = vpop.f32.mrb[77].mxu1 }
 0x87c   : > { %v2806_v34 = vpop.f32.mrb[78].mxu1 }
 0x87d   : > { %v6842_v21 = vpop.f32.mrb[79].mxu1 }
 0x882   : > { %v2895_v36 = vpop.f32.mrb[80].mxu1 }
 0x883   : > { %v6853_v51 = vpop.f32.mrb[81].mxu1 }
 0x884   : > { %v2898_v32 = vpop.f32.mrb[82].mxu1 }
 0x885   : > { %v6854_v8 = vpop.f32.mrb[83].mxu1 }
 0x886   : > { %v2757_v52 = vpop.f32.mrb[76].mxu0 }
 0x887   : > { %v2994_v55 = vpack.c.bf16 %v2803_v25, %v2757_v52  ;;  %v6835_v16 = vpop.f32.mrb[77].mxu0 }
 0x888   : > { %v2760_v44 = vpop.f32.mrb[78].mxu0 }
 0x889   : > { %v6836_v26 = vpop.f32.mrb[79].mxu0  ;;  %6872 = vmatmul.mubr.msk.bf16.vlgmr.msra.gmra.mrb[88].mxu0 %vm1077_vm3, %v2994_v55 }
 0x88a   : > { %v2987_v38 = vpop.f32.mrb[84].mxu1  ;;  %6880 = vmatpush3.bf16.xpose.msra.mxu0 %v3118_v39 }
 0x88b   : > { %v6865_v29 = vpop.f32.mrb[85].mxu1  ;;  %7228 = vmatprep.subr.msk.bf16.mxu0 %vm1077_vm3, %v7287_v62 }
 0x88c   : > { %v2990_v10 = vpop.f32.mrb[86].mxu1 }
 0x88d   : > { %v6866_v3 = vpop.f32.mrb[87].mxu1 }
 0x88e   : > { %v2849_v5 = vpop.f32.mrb[80].mxu0 }
 0x88f   : > { %v2995_v15 = vpack.c.bf16 %v2895_v36, %v2849_v5  ;;  %v6847_v24 = vpop.f32.mrb[81].mxu0 }
 0x890   : > { %v2852_v28 = vpop.f32.mrb[82].mxu0 }
 0x891   : > { %v6848_v11 = vpop.f32.mrb[83].mxu0  ;;  %6875 = vmatprep.mubr.msk.bf16.mxu0 %vm1077_vm3, %v2995_v15 }
 0x892   : > { %6882 = vmatpush3.bf16.xpose.msra.mxu0 %v3121_v17 }
 0x893   : > { %v6895_v35 = vpop.f32.mrb[88].mxu1  ;;  %6921 = vmatprep.subr.bf16.mxu0 %v7537_v57 }
 0x894   : > { %v3227_v7 = vpop.f32.mrb[89].mxu1  ;;  %v3408_v9 = vpack.c.bf16 %v6895_v35, %v6895_v35 }
 0x895   : > { %v8279_v42 = vpop.f32.mrb[90].mxu1  ;;  %v3406_v51 = vpack.c.bf16 %v3227_v7, %v3227_v7 }
 0x896   : > { %v3230_v43 = vpop.f32.mrb[91].mxu1  ;;  %v2941_v49 = vpop.f32.mrb[84].mxu0  ;;  %v3409_v28 = vpack.c.bf16 %v8279_v42, %v8279_v42 }
 0x897   : > { %v2996_v6 = vpack.c.bf16 %v2987_v38, %v2941_v49  ;;  %v6859_v46 = vpop.f32.mrb[85].mxu0  ;;  %v3407_v62 = vpack.c.bf16 %v3230_v43, %v3230_v43 }
 0x898   : > { %v2944_v58 = vpop.f32.mrb[86].mxu0 }
 0x899   : > { %v6860_v13 = vpop.f32.mrb[87].mxu0  ;;  %6876 = vmatmul.mubr.msk.bf16.gmra.mrb[92].mxu0 %vm1077_vm3, %v2996_v6 }
 0x89a   : > { %6883 = vmatprep.mubr.msk.bf16.mxu0 %vm1077_vm3, %v1911_v47 }
 0x89b   : > { %v8286_v63 = vpop.f32.mrb[92].mxu1 }
 0x89c   : > { %v3243_v18 = vpop.f32.mrb[93].mxu1  ;;  %v3412_v5 = vpack.c.bf16 %v8286_v63, %v8286_v63 }
 0x89d   : > { %v8288_v41 = vpop.f32.mrb[94].mxu1  ;;  %v3410_v52 = vpack.c.bf16 %v3243_v18, %v3243_v18 }
 0x89e   : > { %v8290_v23 = vpop.f32.mrb[95].mxu1  ;;  %v3413_v46 = vpack.c.bf16 %v8288_v41, %v8288_v41 }
 0x89f   : > { %v3411_v42 = vpack.c.bf16 %v8290_v23, %v8290_v23 }
 0x8a1   : > { %6884 = vmatmul.mubr.msk.bf16.vlgmr.msra.gmra.mrb[88].mxu0 %vm1077_vm3, %v1912_v12 }
 0x8a2   : > { %6887 = vmatprep.mubr.msk.bf16.mxu0 %vm1077_vm3, %v1913_v22 }
 0x8a3   : > { %v6905_v37 = vpop.f32.mrb[96].mxu1 }
 0x8a4   : > { %v3416_v2 = vpack.c.bf16 %v6905_v37, %v6905_v37  ;;  %v3297_v47 = vpop.f32.mrb[97].mxu1 }
 0x8a5   : > { %v3414_v40 = vpack.c.bf16 %v3297_v47, %v3297_v47  ;;  %v6906_v25 = vpop.f32.mrb[98].mxu1 }
 0x8a6   : > { %v3526_v33 = vsel %vm1077_vm3, %v3416_v2, 0  ;;  %v3300_v34 = vpop.f32.mrb[99].mxu1  ;;  %v3417_v55 = vpack.c.bf16 %v6906_v25, %v6906_v25 }
 0x8a7   : > { %v3434_v21 = vsel %vm1077_vm3, %v3414_v40, 0  ;;  %6934 = vmatpush3.bf16.xpose.msra.mxu1 %v3526_v33  ;;  %v3415_v14 = vpack.c.bf16 %v3300_v34, %v3300_v34 }
 0x8a8   : > { %6922 = vmatpush3.bf16.xpose.msra.mxu0 %v3434_v21  ;;  %6945 = vmatprep.subr.bf16.mxu1 %v7537_v57  ;;  %v3572_v38 = vsel %vm1077_vm3, %v3417_v55, 0 }
 0x8a9   : > { %6888 = vmatmul.mubr.msk.bf16.gmra.mrb[92].mxu0 %vm1077_vm3, %v1914_v30  ;;  %6927 = vmatprep.subr.bf16.mxu0 %v7537_v57  ;;  %v3480_v50 = vsel %vm1077_vm3, %v3415_v14, 0 }
 0x8aa   : > { %6923 = vmatprep.mubr.msk.bf16.mxu0 %vm7538_vm2, %v7537_v57 }
 0x8ab   : > { %v6909_v0 = vpop.f32.mrb[100].mxu1 }
 0x8ac   : > { %v3313_v12 = vpop.f32.mrb[101].mxu1  ;;  %v3420_v27 = vpack.c.bf16 %v6909_v0, %v6909_v0 }
 0x8ad   : > { %v3418_v20 = vpack.c.bf16 %v3313_v12, %v3313_v12  ;;  %v6910_v22 = vpop.f32.mrb[102].mxu1 }
 0x8ae   : > { %v3316_v36 = vpop.f32.mrb[103].mxu1  ;;  %6936 = vmatmul.mubr.msk.bf16.vlgmr.msra.gmra.mrb[112].mxu1 %vm1077_vm3, %v3408_v9  ;;  %v3710_v44 = vsel %vm1077_vm3, %v3420_v27, 0  ;;  %v3421_v7 = vpack.c.bf16 %v6910_v22, %v6910_v22 }
 0x8af   : > { %v3618_v32 = vsel %vm1077_vm3, %v3418_v20, 0  ;;  %6947 = vmatprep.mubr.msk.bf16.mxu1 %vm7538_vm2, %v7537_v57  ;;  %v3419_v15 = vpack.c.bf16 %v3316_v36, %v3316_v36 }
 0x8b0   : > { %6946 = vmatpush3.bf16.xpose.msra.mxu1 %v3618_v32  ;;  %v3756_v43 = vsel %vm1077_vm3, %v3421_v7, 0 }
 0x8b1   : > { %6924 = vmatmul.mubr.msk.bf16.vlgmr.msra.gmra.mrb[96].mxu0 %vm1077_vm3, %v3406_v51  ;;  %6957 = vmatprep.subr.bf16.mxu1 %v7537_v57  ;;  %v3664_v35 = vsel %vm1077_vm3, %v3419_v15, 0 }
 0x8b2   : > { %6928 = vmatpush3.bf16.xpose.msra.mxu0 %v3480_v50  ;;  %6929 = vmatprep.mubr.msk.bf16.mxu0 %vm7538_vm2, %v7537_v57 }
 0x8b3   : > { %v8319_v30 = vpop.f32.mrb[104].mxu1  ;;  %6939 = vmatprep.subr.bf16.mxu0 %v7537_v57 }
 0x8b4   : > { %v3367_v8 = vpop.f32.mrb[105].mxu1 }
 0x8b5   : > { %v8322_v16 = vpop.f32.mrb[106].mxu1  ;;  %v3398_v26 = vmul.f32 %v3367_v8, %v7922_v19 }
 0x8b6   : > { %v3370_v39 = vpop.f32.mrb[107].mxu1 }
 0x8b7   : > { %6948 = vmatmul.mubr.msk.bf16.vlgmr.msra.gmra.mrb[116].mxu1 %vm1077_vm3, %v3410_v52  ;;  %v3422_v29 = vpack.c.bf16 %v3398_v26, %v3398_v26  ;;  %v3399_v49 = vmul.f32 %v3370_v39, %v7866_v59 }
 0x8b8   : > { %6958 = vmatpush3.bf16.xpose.msra.mxu1 %v3710_v44  ;;  %6959 = vmatprep.mubr.msk.bf16.mxu1 %vm7538_vm2, %v7537_v57 }
 0x8b9   : > { %6930 = vmatmul.mubr.msk.bf16.vlgmr.msra.gmra.mrb[100].mxu0 %vm1077_vm3, %v3407_v62  ;;  %6969 = vmatprep.subr.bf16.mxu1 %v7537_v57  ;;  %v3898_v11 = vsel %vm1545_vm4, %v3422_v29, 0  ;;  %v3423_v6 = vpack.c.bf16 %v3399_v49, %v3399_v49 }
 0x8ba   : > { %6940 = vmatpush3.bf16.xpose.msra.mxu0 %v3572_v38  ;;  %6941 = vmatprep.mubr.msk.bf16.mxu0 %vm7538_vm2, %v7537_v57 }
 0x8bb   : > { %v8334_v10 = vpop.f32.mrb[108].mxu1  ;;  %6951 = vmatprep.subr.bf16.mxu0 %v7537_v57  ;;  %v3944_v58 = vsel %vm1545_vm4, %v3423_v6, 0 }
 0x8bc   : > { %v8337_v3 = vpop.f32.mrb[109].mxu1 }
 0x8bd   : > { %v8341_v24 = vpop.f32.mrb[110].mxu1 }
 0x8be   : > { %v8343_v17 = vpop.f32.mrb[111].mxu1 }
 0x8bf   : > { %6960 = vmatmul.mubr.msk.bf16.vlgmr.msra.gmra.mrb[120].mxu1 %vm1077_vm3, %v3412_v5 }
 0x8c0   : > { %6970 = vmatpush3.bf16.msra.mxu1 %v3898_v11  ;;  %6971 = vmatprep.mubr.msk.bf16.mxu1 %vm7538_vm2, %v7537_v57 }
 0x8c1   : > { %6942 = vmatmul.mubr.msk.bf16.vlgmr.msra.gmra.mrb[104].mxu0 %vm1077_vm3, %v3409_v28  ;;  %6981 = vmatprep.subr.bf16.mxu1 %v7537_v57 }
 0x8c2   : > { %6952 = vmatpush3.bf16.xpose.msra.mxu0 %v3664_v35  ;;  %6953 = vmatprep.mubr.msk.bf16.mxu0 %vm7538_vm2, %v7537_v57 }
 0x8c3   : > { %6963 = vmatprep.subr.bf16.mxu0 %v7537_v57 }
 0x8c9   : > { %6954 = vmatmul.mubr.msk.bf16.vlgmr.msra.gmra.mrb[108].mxu0 %vm1077_vm3, %v3411_v42 }
 0x8ca   : > { %6964 = vmatpush3.bf16.xpose.msra.mxu0 %v3756_v43  ;;  %6965 = vmatprep.mubr.msk.bf16.mxu0 %vm7538_vm2, %v7537_v57 }
 0x8cb   : > { %6975 = vmatprep.subr.bf16.mxu0 %v7537_v57 }
 0x8d1   : > { %6966 = vmatmul.mubr.msk.bf16.vlgmr.msra.gmra.mrb[112].mxu0 %vm1077_vm3, %v3413_v46 }
 0x8d2   : > { %6976 = vmatpush3.bf16.msra.mxu0 %v3944_v58  ;;  %6977 = vmatprep.mubr.msk.bf16.mxu0 %vm7538_vm2, %v7537_v57 }
 0x8d3   : > { %6987 = vmatprep.subr.bf16.mxu0 %v7537_v57 }
 0x981   : > { %v3562_v13 = vpop.f32.mrb[112].mxu1 }
 0x982   : > { %v6937_v63 = vpop.f32.mrb[113].mxu1  ;;  %v3804_v18 = vsel %vm1077_vm3, %v3562_v13, -inf }
 0x983   : > { %3805 = vmax.xlane.f32.xlu1 %v3804_v18  ;;  %v3565_v23 = vpop.f32.mrb[114].mxu1 }
 0x984   : > { %v6938_v37 = vpop.f32.mrb[115].mxu1  ;;  %v3470_v2 = vpop.f32.mrb[96].mxu0 }
 0x985   : > { %v6925_v47 = vpop.f32.mrb[97].mxu0  ;;  %v3798_v41 = vsel %vm1077_vm3, %v3470_v2, -inf }
 0x986   : > { %3799 = vmax.xlane.f32.xlu0 %v3798_v41  ;;  %v3473_v40 = vpop.f32.mrb[98].mxu0 }
 0x987   : > { %v6926_v25 = vpop.f32.mrb[99].mxu0 }
 0x98a   : > { %v3654_v33 = vpop.f32.mrb[116].mxu1 }
 0x98b   : > { %v6949_v34 = vpop.f32.mrb[117].mxu1  ;;  %v3810_v21 = vsel %vm1077_vm3, %v3654_v33, -inf }
 0x98c   : > { %3811 = vmax.xlane.f32.xlu0 %v3810_v21  ;;  %v3657_v0 = vpop.f32.mrb[118].mxu1  ;;  %v3516_v9 = vpop.f32.mrb[100].mxu0 }
 0x98d   : > { %v6950_v12 = vpop.f32.mrb[119].mxu1  ;;  %v6931_v14 = vpop.f32.mrb[101].mxu0  ;;  %v3801_v20 = vsel %vm1077_vm3, %v3516_v9, -inf }
 0x98e   : > { %v3519_v22 = vpop.f32.mrb[102].mxu0 }
 0x98f   : > { %v6932_v36 = vpop.f32.mrb[103].mxu0 }
 0x990   : > { %3802 = vmax.xlane.f32.xlu0 %v3801_v20 }
 0x992   : > { %v3746_v51 = vpop.f32.mrb[120].mxu1 }
 0x993   : > { %v6961_v32 = vpop.f32.mrb[121].mxu1  ;;  %v3816_v50 = vsel %vm1077_vm3, %v3746_v51, -inf }
 0x994   : > { %3817 = vmax.xlane.f32.xlu1 %v3816_v50  ;;  %v3749_v27 = vpop.f32.mrb[122].mxu1  ;;  %v3608_v8 = vpop.f32.mrb[104].mxu0 }
 0x995   : > { %v6962_v52 = vpop.f32.mrb[123].mxu1  ;;  %v6943_v55 = vpop.f32.mrb[105].mxu0  ;;  %v3807_v39 = vsel %vm1077_vm3, %v3608_v8, -inf }
 0x996   : > { %v3611_v62 = vpop.f32.mrb[106].mxu0 }
 0x997   : > { %v6944_v44 = vpop.f32.mrb[107].mxu0 }
 0x998   : > { %3808 = vmax.xlane.f32.xlu1 %v3807_v39 }
 0x99c   : > { %v3700_v26 = vpop.f32.mrb[108].mxu0 }
 0x99d   : > { %v6955_v38 = vpop.f32.mrb[109].mxu0  ;;  %v3813_v29 = vsel %vm1077_vm3, %v3700_v26, -inf }
 0x99e   : > { %v3703_v5 = vpop.f32.mrb[110].mxu0  ;;  %3814 = vmax.xlane.f32.xlu0 %v3813_v29 }
 0x99f   : > { %v6956_v15 = vpop.f32.mrb[111].mxu0 }
 0x9a4   : > { %v3792_v28 = vpop.f32.mrb[112].mxu0 }
 0x9a5   : > { %v6967_v11 = vpop.f32.mrb[113].mxu0  ;;  %v3819_v35 = vsel %vm1077_vm3, %v3792_v28, -inf }
 0x9a6   : > { %v3795_v7 = vpop.f32.mrb[114].mxu0  ;;  %3820 = vmax.xlane.f32.xlu1 %v3819_v35 }
 0x9a7   : > { %v6968_v42 = vpop.f32.mrb[115].mxu0  ;;  %v3400_v7 = vmul.f32 %v8319_v30, %v7959_v60  ;;  %v3401_v30 = vmul.f32 %v8322_v16, %v7955_v45 }
 0xa10   : > { %v3806_v43 = vpop.xlane.xlu1 %3805 }
 0xa11   : > { %v3824_v49 = vsub.f32 %v3562_v13, %v3806_v43 }
 0xa13   : > { %v3834_v6 = vmul.f32 1.442695, %v3824_v49  ;;  %v3800_v46 = vpop.xlane.xlu0 %3799  ;;  %v3424_v49 = vpack.c.bf16 %v3400_v7, %v3400_v7 }
 0xa14   : > { %v3822_v58 = vsub.f32 %v3470_v2, %v3800_v46 }
 0xa15   : > { %7378 = vpow2.f32 %v3834_v6 }
 0xa16   : > { %v3830_v63 = vmul.f32 1.442695, %v3822_v58 }
 0xa18   : > { %7380 = vpow2.f32 %v3830_v63 }
 0xa19   : > { %v3812_v18 = vpop.xlane.xlu0 %3811 }
 0xa1a   : > { %v3826_v23 = vsub.f32 %v3654_v33, %v3812_v18  ;;  %v3990_v18 = vsel %vm1545_vm4, %v3424_v49, 0 }
 0xa1c   : > { %v3838_v37 = vmul.f32 1.442695, %v3826_v23  ;;  %v3402_v23 = vmul.f32 %v8337_v3, %v7983_v54 }
 0xa1d   : > { %v3803_v47 = vpop.xlane.xlu0 %3802 }
 0xa1e   : > { %7382 = vpow2.f32 %v3838_v37  ;;  %v3823_v41 = vsub.f32 %v3516_v9, %v3803_v47 }
 0xa1f   : > { %v8380_v40 = vpop.eup %7378 }
 0xa20   : > { %v3832_v25 = vmul.f32 1.442695, %v3823_v41  ;;  %v3852_v34 = vsel %vm1077_vm3, %v8380_v40, 0.0  ;;  %v3426_v41 = vpack.c.bf16 %v3402_v23, %v3402_v23 }
 0xa21   : > { %3853 = vadd.xlane.f32.xlu1 %v3852_v34  ;;  %v3818_v13 = vpop.xlane.xlu1 %3817  ;;  %v3425_v34 = vpack.c.bf16 %v3401_v30, %v3401_v30 }
 0xa22   : > { %v7381_v21 = vpop.eup %7380  ;;  %7384 = vpow2.f32 %v3832_v25  ;;  %v3828_v2 = vsub.f32 %v3746_v51, %v3818_v13 }
 0xa23   : > { %v3846_v0 = vsel %vm1077_vm3, %v7381_v21, 0.0 }
 0xa24   : > { %v3842_v12 = vmul.f32 1.442695, %v3828_v2  ;;  %3847 = vadd.xlane.f32.xlu0 %v3846_v0  ;;  %v3404_v2 = vmul.f32 %v8334_v10, %v8003_v31  ;;  %v4082_v0 = vsel %vm1545_vm4, %v3426_v41, 0 }
 0xa25   : > { %v3809_v33 = vpop.xlane.xlu1 %3808 }
 0xa26   : > { %7386 = vpow2.f32 %v3842_v12  ;;  %v3825_v14 = vsub.f32 %v3608_v8, %v3809_v33  ;;  %v3403_v33 = vmul.f32 %v8343_v17, %v7957_v48  ;;  %v3428_v10 = vpack.c.bf16 %v3404_v2, %v3404_v2  ;;  %v6323_v17 = vld [vmem:[%s7650_s22 + $0xc] sm:$0xf] }
 0xa28   : > { %v8385_v20 = vpop.eup %7382  ;;  %v3836_v9 = vmul.f32 1.442695, %v3825_v14 }
 0xa29   : > { %v3858_v22 = vsel %vm1077_vm3, %v8385_v20, 0.0 }
 0xa2a   : > { %7388 = vpow2.f32 %v3836_v9  ;;  %3859 = vadd.xlane.f32.xlu0 %v3858_v22  ;;  %v3427_v22 = vpack.c.bf16 %v3403_v33, %v3403_v33 }
 0xa2b   : > { %v3815_v36 = vpop.xlane.xlu0 %3814 }
 0xa2c   : > { %v7385_v32 = vpop.eup %7384  ;;  %v3827_v50 = vsub.f32 %v3700_v26, %v3815_v36 }
 0xa2d   : > { %v3849_v51 = vsel %vm1077_vm3, %v7385_v32, 0.0 }
 0xa2e   : > { %v3840_v27 = vmul.f32 1.442695, %v3827_v50  ;;  %3850 = vadd.xlane.f32.xlu0 %v3849_v51 }
 0xa30   : > { %v8390_v52 = vpop.eup %7386  ;;  %7390 = vpow2.f32 %v3840_v27 }
 0xa31   : > { %v3864_v8 = vsel %vm1077_vm3, %v8390_v52, 0.0 }
 0xa32   : > { %3865 = vadd.xlane.f32.xlu1 %v3864_v8  ;;  %v3405_v8 = vmul.f32 %v8341_v24, %v7975_v1 }
 0xa33   : > { %v3821_v55 = vpop.xlane.xlu1 %3820 }
 0xa34   : > { %v8394_v39 = vpop.eup %7388  ;;  %v3829_v62 = vsub.f32 %v3792_v28, %v3821_v55  ;;  %v4128_v55 = vsel %vm1545_vm4, %v3427_v22, 0 }
 0xa35   : > { %v3855_v44 = vsel %vm1077_vm3, %v8394_v39, 0.0 }
 0xa36   : > { %v3844_v38 = vmul.f32 1.442695, %v3829_v62  ;;  %3856 = vadd.xlane.f32.xlu1 %v3855_v44 }
 0xa38   : > { %7392 = vpow2.f32 %v3844_v38  ;;  %v3429_v38 = vpack.c.bf16 %v3405_v8, %v3405_v8 }
 0xa3a   : > { %v8398_v26 = vpop.eup %7390 }
 0xa3b   : > { %v3861_v29 = vsel %vm1077_vm3, %v8398_v26, 0.0 }
 0xa3c   : > { %3862 = vadd.xlane.f32.xlu0 %v3861_v29 }
 0xa42   : > { %v8402_v5 = vpop.eup %7392 }
 0xa43   : > { %v3867_v15 = vsel %vm1077_vm3, %v8402_v5, 0.0 }
 0xa44   : > { %3868 = vadd.xlane.f32.xlu1 %v3867_v15  ;;  %v4375_v15 = vsel %vm646_vm1, %v6323_v17, 0 }
 0xaae   : > { %v3854_v28 = vpop.xlane.xlu1 %3853 }
 0xab1   : > { %v3848_v11 = vpop.xlane.xlu0 %3847 }
 0xab2   : > { %7394 = vrcp.f32 %v3848_v11  ;;  %v4220_v11 = vsel %vm1545_vm4, %v3429_v38, 0 }
 0xab3   : > { %7396 = vrcp.f32 %v3854_v28 }
 0xab7   : > { %v3860_v35 = vpop.xlane.xlu0 %3859 }
 0xabb   : > { %v3851_v42 = vpop.xlane.xlu0 %3850 }
 0xabc   : > { %v7395_v43 = vpop.eup %7394  ;;  %7398 = vrcp.f32 %v3851_v42 }
 0xabd   : > { %v3878_v6 = vmul.f32 %v7395_v43, %v7381_v21  ;;  %7400 = vrcp.f32 %v3860_v35  ;;  %v7397_v63 = vpop.eup %7396  ;;  %v7289_v43 = vld [vmem:[%s7641_s19 + $0x28] sm:$0xff]  }
 0xabe   : > { %v3880_v37 = vmul.f32 %v7397_v63, %v8380_v40  ;;  %v4036_v40 = vsel %vm1545_vm4, %v3425_v34, 0  ;;  %v4297_v49 = vsel %vm1077_vm3, %v7289_v43, 0 }
 0xabf   : > { %v3866_v46 = vpop.xlane.xlu1 %3865  ;;  %v3886_v58 = vpack.c.bf16 %v3878_v6, %v3878_v6  ;;  %v6333_v6 = vld [vmem:[%s7650_s22 + $0x2c] sm:$0xf] }
 0xac0   : > { %v3888_v13 = vpack.c.bf16 %v3880_v37, %v3880_v37 }
 0xac1   : > { %6972 = vmatmul.mubr.msk.bf16.vlgmr.msra.gmra.mrb[124].mxu1 %vm1077_vm3, %v3886_v58 }
 0xac2   : > { %6982 = vmatpush3.bf16.msra.mxu1 %v3990_v18  ;;  %6983 = vmatprep.mubr.msk.bf16.mxu1 %vm7538_vm2, %v7537_v57 }
 0xac3   : > { %v3857_v47 = vpop.xlane.xlu1 %3856  ;;  %6993 = vmatprep.subr.bf16.mxu1 %v7537_v57 }
 0xac4   : > { %7402 = vrcp.f32 %v3857_v47 }
 0xac5   : > { %7404 = vrcp.f32 %v3866_v46 }
 0xac6   : > { %v7399_v25 = vpop.eup %7398 }
 0xac7   : > { %v3879_v3 = vmul.f32 %v7399_v25, %v7385_v32  ;;  %v7401_v21 = vpop.eup %7400 }
 0xac8   : > { %v3882_v14 = vmul.f32 %v7401_v21, %v8385_v20  ;;  %v4174_v20 = vsel %vm1545_vm4, %v3428_v10, 0 }
 0xac9   : > { %v3863_v12 = vpop.xlane.xlu0 %3862  ;;  %6984 = vmatmul.mubr.msk.bf16.vlgmr.msra.gmra.mrb[128].mxu1 %vm1077_vm3, %v3888_v13  ;;  %v3887_v16 = vpack.c.bf16 %v3879_v3, %v3879_v3 }
 0xaca   : > { %7406 = vrcp.f32 %v3863_v12  ;;  %6994 = vmatpush3.bf16.msra.mxu1 %v4082_v0  ;;  %6995 = vmatprep.mubr.msk.bf16.mxu1 %vm7538_vm2, %v7537_v57  ;;  %v3890_v32 = vpack.c.bf16 %v3882_v14, %v3882_v14  ;;  %v4515_v14 = vsel %vm646_vm1, %v6333_v6, 0 }
 0xacb   : > { %6978 = vmatmul.mubr.msk.bf16.vlgmr.msra.gmra.mrb[116].mxu0 %vm1077_vm3, %v3887_v16  ;;  %7005 = vmatprep.subr.bf16.mxu1 %v7537_v57 }
 0xacc   : > { %6988 = vmatpush3.bf16.msra.mxu0 %v4036_v40  ;;  %6989 = vmatprep.mubr.msk.bf16.mxu0 %vm7538_vm2, %v7537_v57 }
 0xacd   : > { %6999 = vmatprep.subr.bf16.mxu0 %v7537_v57 }
 0xace   : > { %v7403_v9 = vpop.eup %7402 }
 0xacf   : > { %v3881_v36 = vmul.f32 %v7403_v9, %v8394_v39  ;;  %v7405_v50 = vpop.eup %7404 }
 0xad0   : > { %v3884_v39 = vmul.f32 %v7405_v50, %v8390_v52  ;;  %v6328_v52 = vld [vmem:[%s7650_s22 + $0x1c] sm:$0xf] }
 0xad1   : > { %6996 = vmatmul.mubr.msk.bf16.vlgmr.msra.gmra.mrb[132].mxu1 %vm1077_vm3, %v3890_v32  ;;  %v3869_v51 = vpop.xlane.xlu1 %3868  ;;  %v3889_v27 = vpack.c.bf16 %v3881_v36, %v3881_v36  ;;  %v4445_v7 = vsel %vm646_vm1, %v6328_v52, 0 }
 0xad2   : > { %7006 = vmatpush3.bf16.msra.mxu1 %v4174_v20  ;;  %7408 = vrcp.f32 %v3869_v51  ;;  %7007 = vmatprep.mubr.msk.bf16.mxu1 %vm7538_vm2, %v7537_v57  ;;  %v3892_v24 = vpack.c.bf16 %v3884_v39, %v3884_v39 }
 0xad3   : > { %6990 = vmatmul.mubr.msk.bf16.vlgmr.msra.gmra.mrb[120].mxu0 %vm1077_vm3, %v3889_v27  ;;  %7234 = vmatprep.subr.msk.bf16.mxu1 %vm646_vm1, %v6323_v17 }
 0xad4   : > { %v7407_v62 = vpop.eup %7406  ;;  %7000 = vmatpush3.bf16.msra.mxu0 %v4128_v55  ;;  %7001 = vmatprep.mubr.msk.bf16.mxu0 %vm7538_vm2, %v7537_v57 }
 0xad5   : > { %v3883_v44 = vmul.f32 %v7407_v62, %v8398_v26  ;;  %7011 = vmatprep.subr.bf16.mxu0 %v7537_v57 }
 0xad7   : > { %v3891_v29 = vpack.c.bf16 %v3883_v44, %v3883_v44 }
 0xad9   : > { %7008 = vmatmul.mubr.msk.bf16.vlgmr.msra.gmra.mrb[136].mxu1 %vm1077_vm3, %v3892_v24 }
 0xada   : > { %7031 = vmatprep.mubr.msk.bf16.mxu1 %vm646_vm1, %v7777_v53 }
 0xadb   : > { %7002 = vmatmul.mubr.msk.bf16.vlgmr.msra.gmra.mrb[124].mxu0 %vm1077_vm3, %v3891_v29  ;;  %7030 = vmatpush3.bf16.xpose.msra.mxu1 %v4375_v15 }
 0xadc   : > { %v7409_v28 = vpop.eup %7408  ;;  %7012 = vmatpush3.bf16.msra.mxu0 %v4220_v11  ;;  %7013 = vmatprep.mubr.msk.bf16.mxu0 %vm7538_vm2, %v7537_v57 }
 0xadd   : > { %v3885_v26 = vmul.f32 %v7409_v28, %v8402_v5  ;;  %7235 = vmatprep.subr.msk.bf16.mxu1 %vm646_vm1, %v6328_v52  ;;  %v7288_v5 = vld [vmem:[%s7641_s19 + $0x20] sm:$0xff]  }
 0xade   : > { %7232 = vmatprep.subr.msk.bf16.mxu0 %vm1077_vm3, %v7288_v5  ;;  %v4294_v42 = vsel %vm1077_vm3, %v7288_v5, 0 }
 0xadf   : > { %v3893_v35 = vpack.c.bf16 %v3885_v26, %v3885_v26 }
 0xae2   : > { %7032 = vmatmul.mubr.msk.bf16.vlgmr.msra.gmra.mrb[140].mxu1 %vm646_vm1, %v7785_v61 }
 0xae3   : > { %7014 = vmatmul.mubr.msk.bf16.vlgmr.msra.gmra.mrb[128].mxu0 %vm1077_vm3, %v3893_v35  ;;  %7035 = vmatprep.mubr.msk.bf16.mxu1 %vm646_vm1, %v7794_v56 }
 0xae4   : > { %7040 = vmatpush3.bf16.xpose.msra.mxu1 %v4445_v7 }
 0xae5   : > { %7059 = vmatprep.subr.bf16.mxu1 %v7537_v57  ;;  %7018 = vmatpush3.bf16.xpose.msra.mxu0 %v4294_v42 }
 0xae6   : > { %7233 = vmatprep.subr.msk.bf16.mxu0 %vm1077_vm3, %v7289_v43 }
 0xaea   : > { %7036 = vmatmul.mubr.msk.bf16.gmra.mrb[144].mxu1 %vm646_vm1, %v7800_v4 }
 0xaeb   : > { %7041 = vmatprep.mubr.msk.bf16.mxu1 %vm646_vm1, %v7777_v53 }
 0xaed   : > { %7020 = vmatpush3.bf16.xpose.msra.mxu0 %v4297_v49 }
 0xaee   : > { %7236 = vmatprep.subr.msk.bf16.mxu0 %vm646_vm1, %v6333_v6 }
 0xaf2   : > { %7042 = vmatmul.mubr.msk.bf16.vlgmr.msra.gmra.mrb[148].mxu1 %vm646_vm1, %v7785_v61 }
 0xaf3   : > { %7045 = vmatprep.mubr.msk.bf16.mxu1 %vm646_vm1, %v7794_v56 }
 0xafa   : > { %7046 = vmatmul.mubr.msk.bf16.gmra.mrb[152].mxu1 %vm646_vm1, %v7800_v4 }
 0xafb   : > { %7061 = vmatprep.mubr.msk.bf16.mxu1 %vm7538_vm2, %v7537_v57 }
 0xb94   : > { %v3934_v46 = vpop.f32.mrb[124].mxu1 }
 0xb95   : > { %v6973_v58 = vpop.f32.mrb[125].mxu1 }
 0xb96   : > { %v3937_v63 = vpop.f32.mrb[126].mxu1 }
 0xb97   : > { %v6974_v18 = vpop.f32.mrb[127].mxu1 }
 0xb9c   : > { %v4026_v23 = vpop.f32.mrb[128].mxu1 }
 0xb9d   : > { %v6985_v30 = vpop.f32.mrb[129].mxu1 }
 0xb9e   : > { %v3980_v37 = vpop.f32.mrb[116].mxu0  ;;  %v4029_v47 = vpop.f32.mrb[130].mxu1 }
 0xb9f   : > { %v4262_v41 = vpack.c.bf16 %v3980_v37, %v3934_v46  ;;  %v6979_v25 = vpop.f32.mrb[117].mxu0  ;;  %v6986_v34 = vpop.f32.mrb[131].mxu1 }
 0xba0   : > { %v3983_v3 = vpop.f32.mrb[118].mxu0 }
 0xba1   : > { %v6980_v13 = vpop.f32.mrb[119].mxu0  ;;  %7021 = vmatprep.mubr.msk.bf16.mxu0 %vm1077_vm3, %v4262_v41 }
 0xba4   : > { %v4118_v21 = vpop.f32.mrb[132].mxu1 }
 0xba5   : > { %v6997_v2 = vpop.f32.mrb[133].mxu1 }
 0xba6   : > { %v4072_v0 = vpop.f32.mrb[120].mxu0  ;;  %v4121_v12 = vpop.f32.mrb[134].mxu1 }
 0xba7   : > { %v4263_v16 = vpack.c.bf16 %v4072_v0, %v4026_v23  ;;  %v6991_v40 = vpop.f32.mrb[121].mxu0  ;;  %v6998_v33 = vpop.f32.mrb[135].mxu1 }
 0xba8   : > { %v4075_v10 = vpop.f32.mrb[122].mxu0 }
 0xba9   : > { %v6992_v9 = vpop.f32.mrb[123].mxu0  ;;  %7022 = vmatmul.mubr.msk.bf16.vlgmr.msra.gmra.mrb[88].mxu0 %vm1077_vm3, %v4263_v16 }
 0xbaa   : > { %7050 = vmatpush3.bf16.xpose.msra.mxu0 %v4515_v14 }
 0xbab   : > { %7071 = vmatprep.subr.bf16.mxu0 %v7537_v57 }
 0xbac   : > { %v4210_v22 = vpop.f32.mrb[136].mxu1 }
 0xbad   : > { %v7009_v36 = vpop.f32.mrb[137].mxu1 }
 0xbae   : > { %v4164_v32 = vpop.f32.mrb[124].mxu0  ;;  %v4213_v50 = vpop.f32.mrb[138].mxu1 }
 0xbaf   : > { %v4264_v17 = vpack.c.bf16 %v4164_v32, %v4118_v21  ;;  %v7003_v20 = vpop.f32.mrb[125].mxu0  ;;  %v7010_v51 = vpop.f32.mrb[139].mxu1 }
 0xbb0   : > { %v4167_v27 = vpop.f32.mrb[126].mxu0 }
 0xbb1   : > { %v7004_v8 = vpop.f32.mrb[127].mxu0  ;;  %7025 = vmatprep.mubr.msk.bf16.mxu0 %vm1077_vm3, %v4264_v17 }
 0xbb5   : > { %v7033_v55 = vpop.f32.mrb[140].mxu1 }
 0xbb6   : > { %v4256_v39 = vpop.f32.mrb[128].mxu0  ;;  %v4411_v62 = vpop.f32.mrb[141].mxu1  ;;  %v4592_v63 = vpack.c.bf16 %v7033_v55, %v7033_v55 }
 0xbb7   : > { %v4265_v44 = vpack.c.bf16 %v4256_v39, %v4210_v22  ;;  %v7015_v38 = vpop.f32.mrb[129].mxu0  ;;  %v8492_v24 = vpop.f32.mrb[142].mxu1  ;;  %v4590_v18 = vpack.c.bf16 %v4411_v62, %v4411_v62 }
 0xbb8   : > { %v4259_v29 = vpop.f32.mrb[130].mxu0  ;;  %v4414_v15 = vpop.f32.mrb[143].mxu1  ;;  %v4593_v0 = vpack.c.bf16 %v8492_v24, %v8492_v24 }
 0xbb9   : > { %v7016_v52 = vpop.f32.mrb[131].mxu0  ;;  %7026 = vmatmul.mubr.msk.bf16.gmra.mrb[92].mxu0 %vm1077_vm3, %v4265_v44  ;;  %v4591_v34 = vpack.c.bf16 %v4414_v15, %v4414_v15 }
 0xbba   : > { %7051 = vmatprep.mubr.msk.bf16.mxu0 %vm646_vm1, %v7777_v53 }
 0xbbd   : > { %v7037_v11 = vpop.f32.mrb[144].mxu1 }
 0xbbe   : > { %v4427_v28 = vpop.f32.mrb[145].mxu1  ;;  %v4596_v12 = vpack.c.bf16 %v7037_v11, %v7037_v11 }
 0xbbf   : > { %v8497_v26 = vpop.f32.mrb[146].mxu1  ;;  %v4594_v3 = vpack.c.bf16 %v4427_v28, %v4427_v28 }
 0xbc0   : > { %v8499_v35 = vpop.f32.mrb[147].mxu1  ;;  %v4597_v10 = vpack.c.bf16 %v8497_v26, %v8497_v26 }
 0xbc1   : > { %7052 = vmatmul.mubr.msk.bf16.vlgmr.msra.gmra.mrb[132].mxu0 %vm646_vm1, %v7785_v61  ;;  %v4595_v33 = vpack.c.bf16 %v8499_v35, %v8499_v35 }
 0xbc2   : > { %7055 = vmatprep.mubr.msk.bf16.mxu0 %vm646_vm1, %v7794_v56 }
 0xbc5   : > { %v7043_v7 = vpop.f32.mrb[148].mxu1 }
 0xbc6   : > { %v4600_v5 = vpack.c.bf16 %v7043_v7, %v7043_v7  ;;  %v4481_v42 = vpop.f32.mrb[149].mxu1 }
 0xbc7   : > { %v4598_v43 = vpack.c.bf16 %v4481_v42, %v4481_v42  ;;  %v7044_v49 = vpop.f32.mrb[150].mxu1 }
 0xbc8   : > { %v4710_v6 = vsel %vm1077_vm3, %v4600_v5, 0  ;;  %v4484_v53 = vpop.f32.mrb[151].mxu1  ;;  %v4601_v41 = vpack.c.bf16 %v7044_v49, %v7044_v49 }
 0xbc9   : > { %v4618_v46 = vsel %vm1077_vm3, %v4598_v43, 0  ;;  %7056 = vmatmul.mubr.msk.bf16.gmra.mrb[136].mxu0 %vm646_vm1, %v7800_v4  ;;  %v4599_v61 = vpack.c.bf16 %v4484_v53, %v4484_v53 }
 0xbca   : > { %7072 = vmatpush3.bf16.xpose.msra.mxu0 %v4710_v6  ;;  %7060 = vmatpush3.bf16.xpose.msra.mxu1 %v4618_v46  ;;  %v4756_v13 = vsel %vm1077_vm3, %v4601_v41, 0 }
 0xbcb   : > { %7073 = vmatprep.mubr.msk.bf16.mxu0 %vm7538_vm2, %v7537_v57  ;;  %7065 = vmatprep.subr.bf16.mxu1 %v7537_v57  ;;  %v4664_v47 = vsel %vm1077_vm3, %v4599_v61, 0 }
 0xbcc   : > { %7083 = vmatprep.subr.bf16.mxu0 %v7537_v57 }
 0xbcd   : > { %v7047_v56 = vpop.f32.mrb[152].mxu1 }
 0xbce   : > { %v4497_v58 = vpop.f32.mrb[153].mxu1  ;;  %v4604_v25 = vpack.c.bf16 %v7047_v56, %v7047_v56 }
 0xbcf   : > { %v4602_v23 = vpack.c.bf16 %v4497_v58, %v4497_v58  ;;  %v7048_v30 = vpop.f32.mrb[154].mxu1 }
 0xbd0   : > { %v4500_v37 = vpop.f32.mrb[155].mxu1  ;;  %v4894_v21 = vsel %vm1077_vm3, %v4604_v25, 0  ;;  %v4605_v40 = vpack.c.bf16 %v7048_v30, %v7048_v30 }
 0xbd1   : > { %v4802_v4 = vsel %vm1077_vm3, %v4602_v23, 0  ;;  %7062 = vmatmul.mubr.msk.bf16.vlgmr.msra.gmra.mrb[156].mxu1 %vm1077_vm3, %v4590_v18  ;;  %7074 = vmatmul.mubr.msk.bf16.vlgmr.msra.gmra.mrb[140].mxu0 %vm1077_vm3, %v4592_v63  ;;  %v4603_v2 = vpack.c.bf16 %v4500_v37, %v4500_v37 }
 0xbd2   : > { %7066 = vmatpush3.bf16.xpose.msra.mxu1 %v4664_v47  ;;  %7084 = vmatpush3.bf16.xpose.msra.mxu0 %v4802_v4  ;;  %v4940_v14 = vsel %vm1077_vm3, %v4605_v40, 0 }
 0xbd3   : > { %7067 = vmatprep.mubr.msk.bf16.mxu1 %vm7538_vm2, %v7537_v57  ;;  %7085 = vmatprep.mubr.msk.bf16.mxu0 %vm7538_vm2, %v7537_v57  ;;  %v4848_v16 = vsel %vm1077_vm3, %v4603_v2, 0 }
 0xbd4   : > { %7077 = vmatprep.subr.bf16.mxu1 %v7537_v57  ;;  %7095 = vmatprep.subr.bf16.mxu0 %v7537_v57 }
 0xbd9   : > { %7068 = vmatmul.mubr.msk.bf16.vlgmr.msra.gmra.mrb[160].mxu1 %vm1077_vm3, %v4591_v34  ;;  %7086 = vmatmul.mubr.msk.bf16.vlgmr.msra.gmra.mrb[144].mxu0 %vm1077_vm3, %v4594_v3 }
 0xbda   : > { %7078 = vmatpush3.bf16.xpose.msra.mxu1 %v4756_v13  ;;  %7096 = vmatpush3.bf16.xpose.msra.mxu0 %v4894_v21 }
 0xbdb   : > { %7079 = vmatprep.mubr.msk.bf16.mxu1 %vm7538_vm2, %v7537_v57  ;;  %7097 = vmatprep.mubr.msk.bf16.mxu0 %vm7538_vm2, %v7537_v57 }
 0xbdc   : > { %7089 = vmatprep.subr.bf16.mxu1 %v7537_v57  ;;  %7107 = vmatprep.subr.bf16.mxu0 %v7537_v57 }
 0xbe1   : > { %7080 = vmatmul.mubr.msk.bf16.vlgmr.msra.gmra.mrb[164].mxu1 %vm1077_vm3, %v4593_v0  ;;  %7098 = vmatmul.mubr.msk.bf16.vlgmr.msra.gmra.mrb[148].mxu0 %vm1077_vm3, %v4596_v12 }
 0xbe2   : > { %7090 = vmatpush3.bf16.xpose.msra.mxu1 %v4848_v16  ;;  %7091 = vmatprep.mubr.msk.bf16.mxu1 %vm7538_vm2, %v7537_v57 }
 0xbe3   : > { %7101 = vmatprep.subr.bf16.mxu1 %v7537_v57  ;;  %7109 = vmatprep.mubr.msk.bf16.mxu0 %vm7538_vm2, %v7537_v57 }
 0xbe9   : > { %7092 = vmatmul.mubr.msk.bf16.vlgmr.msra.gmra.mrb[168].mxu1 %vm1077_vm3, %v4595_v33 }
 0xbea   : > { %7102 = vmatpush3.bf16.xpose.msra.mxu1 %v4940_v14  ;;  %7103 = vmatprep.mubr.msk.bf16.mxu1 %vm7538_vm2, %v7537_v57 }
 0xbeb   : > { %7113 = vmatprep.subr.bf16.mxu1 %v7537_v57 }
 0xbf1   : > { %7104 = vmatmul.mubr.msk.bf16.vlgmr.msra.gmra.mrb[172].mxu1 %vm1077_vm3, %v4597_v10 }
 0xbf2   : > { %7115 = vmatprep.mubr.msk.bf16.mxu1 %vm7538_vm2, %v7537_v57 }
 0xc94   : > { %v8555_v9 = vpop.f32.mrb[132].mxu0 }
 0xc95   : > { %v4551_v22 = vpop.f32.mrb[133].mxu0 }
 0xc96   : > { %v4582_v36 = vmul.f32 %v4551_v22, %v7922_v19  ;;  %v8558_v32 = vpop.f32.mrb[134].mxu0 }
 0xc97   : > { %v4554_v50 = vpop.f32.mrb[135].mxu0 }
 0xc98   : > { %v4606_v17 = vpack.c.bf16 %v4582_v36, %v4582_v36  ;;  %v4583_v20 = vmul.f32 %v4554_v50, %v7866_v59 }
 0xc9a   : > { %v5082_v51 = vsel %vm1545_vm4, %v4606_v17, 0  ;;  %v4607_v27 = vpack.c.bf16 %v4583_v20, %v4583_v20 }
 0xc9b   : > { %7108 = vmatpush3.bf16.msra.mxu0 %v5082_v51 }
 0xc9c   : > { %v5128_v8 = vsel %vm1545_vm4, %v4607_v27, 0  ;;  %v8563_v55 = vpop.f32.mrb[136].mxu0  ;;  %7119 = vmatprep.subr.bf16.mxu0 %v7537_v57 }
 0xc9d   : > { %v8566_v39 = vpop.f32.mrb[137].mxu0  ;;  %7114 = vmatpush3.bf16.msra.mxu1 %v5128_v8 }
 0xc9e   : > { %v8568_v19 = vpop.f32.mrb[138].mxu0  ;;  %7125 = vmatprep.subr.bf16.mxu1 %v7537_v57 }
 0xc9f   : > { %v8571_v62 = vpop.f32.mrb[139].mxu0 }
 0xca4   : > { %v4654_v59 = vpop.f32.mrb[156].mxu1  ;;  %v4746_v44 = vpop.f32.mrb[140].mxu0 }
 0xca5   : > { %v7063_v38 = vpop.f32.mrb[157].mxu1  ;;  %v7075_v24 = vpop.f32.mrb[141].mxu0  ;;  %v4982_v29 = vsel %vm1077_vm3, %v4654_v59, -inf  ;;  %v4988_v26 = vsel %vm1077_vm3, %v4746_v44, -inf }
 0xca6   : > { %4983 = vmax.xlane.f32.xlu0 %v4982_v29  ;;  %v4657_v15 = vpop.f32.mrb[158].mxu1  ;;  %v4749_v52 = vpop.f32.mrb[142].mxu0 }
 0xca7   : > { %v7064_v11 = vpop.f32.mrb[159].mxu1  ;;  %v7076_v28 = vpop.f32.mrb[143].mxu0 }
 0xcaa   : > { %4989 = vmax.xlane.f32.xlu0 %v4988_v26 }
 0xcac   : > { %v4700_v35 = vpop.f32.mrb[160].mxu1  ;;  %v4838_v7 = vpop.f32.mrb[144].mxu0 }
 0xcad   : > { %v7069_v5 = vpop.f32.mrb[161].mxu1  ;;  %v7087_v42 = vpop.f32.mrb[145].mxu0  ;;  %v4985_v43 = vsel %vm1077_vm3, %v4700_v35, -inf  ;;  %v4994_v49 = vsel %vm1077_vm3, %v4838_v7, -inf }
 0xcae   : > { %4986 = vmax.xlane.f32.xlu1 %v4985_v43  ;;  %v4703_v6 = vpop.f32.mrb[162].mxu1  ;;  %4995 = vmax.xlane.f32.xlu0 %v4994_v49  ;;  %v4841_v53 = vpop.f32.mrb[146].mxu0 }
 0xcaf   : > { %v7070_v46 = vpop.f32.mrb[163].mxu1  ;;  %v7088_v61 = vpop.f32.mrb[147].mxu0 }
 0xcb4   : > { %v4792_v56 = vpop.f32.mrb[164].mxu1  ;;  %v4930_v58 = vpop.f32.mrb[148].mxu0 }
 0xcb5   : > { %v7081_v63 = vpop.f32.mrb[165].mxu1  ;;  %v7099_v18 = vpop.f32.mrb[149].mxu0  ;;  %v4991_v23 = vsel %vm1077_vm3, %v4792_v56, -inf  ;;  %v5000_v30 = vsel %vm1077_vm3, %v4930_v58, -inf }
 0xcb6   : > { %4992 = vmax.xlane.f32.xlu1 %v4991_v23  ;;  %v4795_v37 = vpop.f32.mrb[166].mxu1  ;;  %5001 = vmax.xlane.f32.xlu0 %v5000_v30  ;;  %v4933_v47 = vpop.f32.mrb[150].mxu0 }
 0xcb7   : > { %v7082_v4 = vpop.f32.mrb[167].mxu1  ;;  %v7100_v41 = vpop.f32.mrb[151].mxu0 }
 0xcbc   : > { %v4884_v25 = vpop.f32.mrb[168].mxu1 }
 0xcbd   : > { %v7093_v34 = vpop.f32.mrb[169].mxu1  ;;  %v4997_v3 = vsel %vm1077_vm3, %v4884_v25, -inf }
 0xcbe   : > { %4998 = vmax.xlane.f32.xlu1 %v4997_v3  ;;  %v4887_v13 = vpop.f32.mrb[170].mxu1  ;;  %v4584_v34 = vmul.f32 %v8555_v9, %v7959_v60 }
 0xcbf   : > { %v7094_v21 = vpop.f32.mrb[171].mxu1 }
 0xcc4   : > { %v4976_v2 = vpop.f32.mrb[172].mxu1 }
 0xcc5   : > { %v7105_v0 = vpop.f32.mrb[173].mxu1  ;;  %v5003_v12 = vsel %vm1077_vm3, %v4976_v2, -inf }
 0xcc6   : > { %5004 = vmax.xlane.f32.xlu1 %v5003_v12  ;;  %v4979_v16 = vpop.f32.mrb[174].mxu1 }
 0xcc7   : > { %v7106_v40 = vpop.f32.mrb[175].mxu1 }
 0xd33   : > { %v4984_v33 = vpop.xlane.xlu0 %4983 }
 0xd34   : > { %v5006_v14 = vsub.f32 %v4654_v59, %v4984_v33  ;;  %v4585_v33 = vmul.f32 %v8558_v32, %v7955_v45 }
 0xd36   : > { %v5014_v10 = vmul.f32 1.442695, %v5006_v14  ;;  %v4586_v14 = vmul.f32 %v8566_v39, %v7983_v54 }
 0xd37   : > { %v4990_v22 = vpop.xlane.xlu0 %4989 }
 0xd38   : > { %7410 = vpow2.f32 %v5014_v10  ;;  %v5008_v36 = vsub.f32 %v4746_v44, %v4990_v22 }
 0xd3a   : > { %v5018_v50 = vmul.f32 1.442695, %v5008_v36  ;;  %v4609_v36 = vpack.c.bf16 %v4585_v33, %v4585_v33 }
 0xd3b   : > { %v4987_v17 = vpop.xlane.xlu1 %4986  ;;  %v4996_v20 = vpop.xlane.xlu0 %4995 }
 0xd3c   : > { %7412 = vpow2.f32 %v5018_v50  ;;  %v5007_v51 = vsub.f32 %v4700_v35, %v4987_v17  ;;  %v5010_v27 = vsub.f32 %v4838_v7, %v4996_v20  ;;  %v4610_v50 = vpack.c.bf16 %v4586_v14, %v4586_v14 }
 0xd3d   : > { %v5220_v39 = vsel %vm1545_vm4, %v4609_v36, 0  ;;  %v4588_v20 = vmul.f32 %v8563_v55, %v8003_v31 }
 0xd3e   : > { %v5016_v8 = vmul.f32 1.442695, %v5007_v51  ;;  %v5022_v38 = vmul.f32 1.442695, %v5010_v27  ;;  %v5266_v51 = vsel %vm1545_vm4, %v4610_v50, 0  ;;  %v4587_v27 = vmul.f32 %v8571_v62, %v7957_v48 }
 0xd3f   : > { %v4612_v48 = vpack.c.bf16 %v4588_v20, %v4588_v20 }
 0xd40   : > { %7414 = vpow2.f32 %v5016_v8  ;;  %v4611_v55 = vpack.c.bf16 %v4587_v27, %v4587_v27 }
 0xd41   : > { %7416 = vpow2.f32 %v5022_v38 }
 0xd42   : > { %v7411_v24 = vpop.eup %7410 }
 0xd43   : > { %v4993_v29 = vpop.xlane.xlu1 %4992  ;;  %v5002_v15 = vpop.xlane.xlu0 %5001  ;;  %v5030_v52 = vsel %vm1077_vm3, %v7411_v24, 0.0 }
 0xd44   : > { %v5009_v59 = vsub.f32 %v4792_v56, %v4993_v29  ;;  %v5012_v11 = vsub.f32 %v4930_v58, %v5002_v15  ;;  %5031 = vadd.xlane.f32.xlu0 %v5030_v52  ;;  %v5358_v52 = vsel %vm1545_vm4, %v4612_v48, 0  ;;  %v7475_v48 = vld [vmem:[#allocation2] sm:$0xff] }
 0xd46   : > { %v7413_v28 = vpop.eup %7412  ;;  %v5020_v44 = vmul.f32 1.442695, %v5009_v59  ;;  %v5026_v26 = vmul.f32 1.442695, %v5012_v11  ;;  %v4589_v59 = vmul.f32 %v8568_v19, %v7975_v1  ;;  %v5312_v11 = vsel %vm1545_vm4, %v4611_v55, 0 }
 0xd47   : > { %v5036_v5 = vsel %vm1077_vm3, %v7413_v28, 0.0 }
 0xd48   : > { %7418 = vpow2.f32 %v5020_v44  ;;  %5037 = vadd.xlane.f32.xlu0 %v5036_v5  ;;  %v4613_v19 = vpack.c.bf16 %v4589_v59, %v4589_v59  ;;  %v7477_v59 = vld [vmem:[#allocation2 + $0x8] sm:$0xff] }
 0xd49   : > { %7420 = vpow2.f32 %v5026_v26 }
 0xd4a   : > { %v7415_v35 = vpop.eup %7414 }
 0xd4b   : > { %v8583_v7 = vpop.eup %7416  ;;  %v4999_v42 = vpop.xlane.xlu1 %4998  ;;  %v5033_v43 = vsel %vm1077_vm3, %v7415_v35, 0.0 }
 0xd4c   : > { %v5011_v49 = vsub.f32 %v4884_v25, %v4999_v42  ;;  %5034 = vadd.xlane.f32.xlu1 %v5033_v43  ;;  %v5042_v6 = vsel %vm1077_vm3, %v8583_v7, 0.0 }
 0xd4d   : > { %5043 = vadd.xlane.f32.xlu0 %v5042_v6  ;;  %v7290_v6 = vld [vmem:[%s7641_s19 + $0x30] sm:$0xff]  }
 0xd4e   : > { %v5024_v53 = vmul.f32 1.442695, %v5011_v49 }
 0xd50   : > { %7422 = vpow2.f32 %v5024_v53  ;;  %v5478_v53 = vsel %vm1077_vm3, %v7290_v6, 0 }
 0xd52   : > { %v8588_v46 = vpop.eup %7418 }
 0xd53   : > { %v8590_v61 = vpop.eup %7420  ;;  %v5005_v56 = vpop.xlane.xlu1 %5004  ;;  %v5039_v58 = vsel %vm1077_vm3, %v8588_v46, 0.0 }
 0xd54   : > { %v5013_v63 = vsub.f32 %v4976_v2, %v5005_v56  ;;  %5040 = vadd.xlane.f32.xlu1 %v5039_v58  ;;  %v5048_v18 = vsel %vm1077_vm3, %v8590_v61, 0.0  ;;  %v4608_v2 = vpack.c.bf16 %v4584_v34, %v4584_v34 }
 0xd55   : > { %5049 = vadd.xlane.f32.xlu0 %v5048_v18 }
 0xd56   : > { %v5028_v23 = vmul.f32 1.442695, %v5013_v63  ;;  %v5174_v40 = vsel %vm1545_vm4, %v4608_v2, 0 }
 0xd58   : > { %7424 = vpow2.f32 %v5028_v23 }
 0xd5a   : > { %v8596_v30 = vpop.eup %7422 }
 0xd5b   : > { %v5045_v37 = vsel %vm1077_vm3, %v8596_v30, 0.0 }
 0xd5c   : > { %5046 = vadd.xlane.f32.xlu1 %v5045_v37 }
 0xd62   : > { %v8600_v47 = vpop.eup %7424 }
 0xd63   : > { %v5051_v4 = vsel %vm1077_vm3, %v8600_v47, 0.0 }
 0xd64   : > { %5052 = vadd.xlane.f32.xlu1 %v5051_v4 }
 0xdd1   : > { %v5032_v41 = vpop.xlane.xlu0 %5031 }
 0xdd2   : > { %7426 = vrcp.f32 %v5032_v41 }
 0xdd5   : > { %v5038_v25 = vpop.xlane.xlu0 %5037 }
 0xdd6   : > { %7428 = vrcp.f32 %v5038_v25 }
 0xdd9   : > { %v5035_v3 = vpop.xlane.xlu1 %5034 }
 0xdda   : > { %7430 = vrcp.f32 %v5035_v3  ;;  %v5044_v13 = vpop.xlane.xlu0 %5043 }
 0xddb   : > { %7432 = vrcp.f32 %v5044_v13 }
 0xddc   : > { %v7427_v21 = vpop.eup %7426 }
 0xddd   : > { %v5062_v0 = vmul.f32 %v7427_v21, %v7411_v24 }
 0xddf   : > { %v5070_v12 = vpack.c.bf16 %v5062_v0, %v5062_v0 }
 0xde0   : > { %v7429_v16 = vpop.eup %7428 }
 0xde1   : > { %v5041_v10 = vpop.xlane.xlu1 %5040  ;;  %7110 = vmatmul.mubr.msk.bf16.vlgmr.msra.gmra.mrb[152].mxu0 %vm1077_vm3, %v5070_v12  ;;  %v5064_v60 = vmul.f32 %v7429_v16, %v7413_v28 }
 0xde2   : > { %7434 = vrcp.f32 %v5041_v10  ;;  %7120 = vmatpush3.bf16.msra.mxu0 %v5174_v40  ;;  %7121 = vmatprep.mubr.msk.bf16.mxu0 %vm7538_vm2, %v7537_v57  ;;  %v5050_v9 = vpop.xlane.xlu0 %5049 }
 0xde3   : > { %7131 = vmatprep.subr.bf16.mxu0 %v7537_v57  ;;  %7436 = vrcp.f32 %v5050_v9  ;;  %v5072_v32 = vpack.c.bf16 %v5064_v60, %v5064_v60 }
 0xde4   : > { %v7431_v22 = vpop.eup %7430 }
 0xde5   : > { %v5063_v17 = vmul.f32 %v7431_v22, %v7415_v35  ;;  %v7433_v54 = vpop.eup %7432 }
 0xde6   : > { %v5066_v38 = vmul.f32 %v7433_v54, %v8583_v7  ;;  %v5404_v7 = vsel %vm1545_vm4, %v4613_v19, 0 }
 0xde7   : > { %v5071_v45 = vpack.c.bf16 %v5063_v17, %v5063_v17 }
 0xde8   : > { %v5074_v29 = vpack.c.bf16 %v5066_v38, %v5066_v38  ;;  %v7474_v38 = vld [vmem:[#allocation2 + $0x10] sm:$0xff] }
 0xde9   : > { %v5047_v8 = vpop.xlane.xlu1 %5046  ;;  %7116 = vmatmul.mubr.msk.bf16.vlgmr.msra.gmra.mrb[176].mxu1 %vm1077_vm3, %v5071_v45  ;;  %7122 = vmatmul.mubr.msk.bf16.vlgmr.msra.gmra.mrb[156].mxu0 %vm1077_vm3, %v5072_v32 }
 0xdea   : > { %7438 = vrcp.f32 %v5047_v8  ;;  %7126 = vmatpush3.bf16.msra.mxu1 %v5220_v39  ;;  %7132 = vmatpush3.bf16.msra.mxu0 %v5266_v51 }
 0xdeb   : > { %7127 = vmatprep.mubr.msk.bf16.mxu1 %vm7538_vm2, %v7537_v57  ;;  %7133 = vmatprep.mubr.msk.bf16.mxu0 %vm7538_vm2, %v7537_v57 }
 0xdec   : > { %v7435_v31 = vpop.eup %7434  ;;  %7137 = vmatprep.subr.bf16.mxu1 %v7537_v57  ;;  %7143 = vmatprep.subr.bf16.mxu0 %v7537_v57 }
 0xded   : > { %v5065_v62 = vmul.f32 %v7435_v31, %v8588_v46  ;;  %v7437_v15 = vpop.eup %7436  ;;  %v7291_v46 = vld [vmem:[%s7641_s19 + $0x38] sm:$0xff]   ;;  %s8872_s19 = scalar_lea.vmem %s8854_s6, %s7626_s26  ;;  %s8873_s26 = sld [smem:[#allocation6_spill]] }
 0xdee   : > { %v5068_v44 = vmul.f32 %v7437_v15, %v8590_v61  ;;  %v5481_v61 = vsel %vm1077_vm3, %v7291_v46, 0  ;;  %v7476_v15 = vld [vmem:[#allocation2 + $0x18] sm:$0xff] }
 0xdef   : > { %v5073_v24 = vpack.c.bf16 %v5065_v62, %v5065_v62 }
 0xdf0   : > { %v5076_v35 = vpack.c.bf16 %v5068_v44, %v5068_v44 }
 0xdf1   : > { %v5053_v28 = vpop.xlane.xlu1 %5052  ;;  %7128 = vmatmul.mubr.msk.bf16.vlgmr.msra.gmra.mrb[180].mxu1 %vm1077_vm3, %v5073_v24  ;;  %7134 = vmatmul.mubr.msk.bf16.vlgmr.msra.gmra.mrb[160].mxu0 %vm1077_vm3, %v5074_v29 }
 0xdf2   : > { %7440 = vrcp.f32 %v5053_v28  ;;  %7138 = vmatpush3.bf16.msra.mxu1 %v5312_v11  ;;  %7144 = vmatpush3.bf16.msra.mxu0 %v5358_v52 }
 0xdf3   : > { %7139 = vmatprep.mubr.msk.bf16.mxu1 %vm7538_vm2, %v7537_v57  ;;  %7145 = vmatprep.mubr.msk.bf16.mxu0 %vm7538_vm2, %v7537_v57  ;;  %s8874_s28 = sadd.s32 4294967295, %s8873_s26  }
 0xdf4   : > { %v7439_v1 = vpop.eup %7438  ;;  %7149 = vmatprep.subr.bf16.mxu1 %v7537_v57  ;;  %7237 = vmatprep.subr.msk.bf16.mxu0 %vm1077_vm3, %v7290_v6  ;;  %v7479_v6 = vld [vmem:[#allocation2 + $0x20] sm:$0xff]  ;;  %p8810_p6 = scmp.eq.s32.totalorder %s8874_s28, 1 }
 0xdf5   : > { %v5067_v26 = vmul.f32 %v7439_v1, %v8596_v30 }
 0xdf7   : > { %v5075_v5 = vpack.c.bf16 %v5067_v26, %v5067_v26 }
 0xdf9   : > { %7140 = vmatmul.mubr.msk.bf16.vlgmr.msra.gmra.mrb[184].mxu1 %vm1077_vm3, %v5075_v5  ;;  %7146 = vmatmul.mubr.msk.bf16.vlgmr.msra.gmra.mrb[164].mxu0 %vm1077_vm3, %v5076_v35 }
 0xdfa   : > { %7150 = vmatpush3.bf16.msra.mxu1 %v5404_v7  ;;  %7151 = vmatprep.mubr.msk.bf16.mxu1 %vm7538_vm2, %v7537_v57 }
 0xdfb   : > { %7156 = vmatpush3.bf16.xpose.msra.mxu0 %v5478_v53 }
 0xdfc   : > { %v7441_v42 = vpop.eup %7440  ;;  %7238 = vmatprep.subr.msk.bf16.mxu0 %vm1077_vm3, %v7291_v46 }
 0xdfd   : > { %v5069_v43 = vmul.f32 %v7441_v42, %v8600_v47 }
 0xdff   : > { %v5077_v49 = vpack.c.bf16 %v5069_v43, %v5069_v43  ;;  %v7478_v43 = vld [vmem:[#allocation2 + $0x30] sm:$0xff] }
 0xe01   : > { %7152 = vmatmul.mubr.msk.bf16.vlgmr.msra.gmra.mrb[188].mxu1 %vm1077_vm3, %v5077_v49 }
 0xe03   : > { %7158 = vmatpush3.bf16.xpose.msra.mxu0 %v5481_v61 }
 0xeb4   : > { %v5118_v56 = vpop.f32.mrb[152].mxu0 }
 0xeb5   : > { %v7111_v57 = vpop.f32.mrb[153].mxu0 }
 0xeb6   : > { %v5121_v58 = vpop.f32.mrb[154].mxu0  ;;  %v7480_v57 = vld [vmem:[#allocation2 + $0x38] sm:$0xff] }
 0xeb7   : > { %v7112_v63 = vpop.f32.mrb[155].mxu0 }
 0xeb8   : > { %v7481_v63 = vld [vmem:[#allocation2 + $0x28] sm:$0xff] }
 0xebc   : > { %v5164_v18 = vpop.f32.mrb[176].mxu1  ;;  %v5210_v23 = vpop.f32.mrb[156].mxu0 }
 0xebd   : > { %v5446_v30 = vpack.c.bf16 %v5164_v18, %v5118_v56  ;;  %v7117_v37 = vpop.f32.mrb[177].mxu1  ;;  %v7123_v47 = vpop.f32.mrb[157].mxu0 }
 0xebe   : > { %v5167_v4 = vpop.f32.mrb[178].mxu1  ;;  %v5213_v41 = vpop.f32.mrb[158].mxu0 }
 0xebf   : > { %v7118_v25 = vpop.f32.mrb[179].mxu1  ;;  %v7124_v34 = vpop.f32.mrb[159].mxu0  ;;  %7159 = vmatprep.mubr.msk.bf16.mxu0 %vm1077_vm3, %v5446_v30 }
 0xec0   : > { %v7292_v34 = vld [vmem:[%s7664_s5] sm:$0xff]  }
 0xec1   : > { %7239 = vmatprep.subr.msk.bf16.mxu1 %vm646_vm1, %v7292_v34 }
 0xec4   : > { %v5256_v3 = vpop.f32.mrb[180].mxu1  ;;  %v5302_v13 = vpop.f32.mrb[160].mxu0 }
 0xec5   : > { %v5447_v21 = vpack.c.bf16 %v5256_v3, %v5210_v23  ;;  %v7129_v2 = vpop.f32.mrb[181].mxu1  ;;  %v7135_v0 = vpop.f32.mrb[161].mxu0  ;;  %v5758_v3 = vsel %vm646_vm1, %v7292_v34, 0 }
 0xec6   : > { %v5259_v12 = vpop.f32.mrb[182].mxu1  ;;  %v5305_v16 = vpop.f32.mrb[162].mxu0  ;;  %7168 = vmatpush3.bf16.xpose.msra.mxu1 %v5758_v3 }
 0xec7   : > { %v7130_v40 = vpop.f32.mrb[183].mxu1  ;;  %v7136_v33 = vpop.f32.mrb[163].mxu0  ;;  %7160 = vmatmul.mubr.msk.bf16.vlgmr.msra.gmra.mrb[88].mxu0 %vm1077_vm3, %v5447_v21 }
 0xecc   : > { %v5348_v14 = vpop.f32.mrb[184].mxu1  ;;  %v5394_v10 = vpop.f32.mrb[164].mxu0 }
 0xecd   : > { %v5448_v60 = vpack.c.bf16 %v5348_v14, %v5302_v13  ;;  %v7141_v9 = vpop.f32.mrb[185].mxu1  ;;  %v7147_v22 = vpop.f32.mrb[165].mxu0 }
 0xece   : > { %v5351_v36 = vpop.f32.mrb[186].mxu1  ;;  %v5397_v50 = vpop.f32.mrb[166].mxu0 }
 0xecf   : > { %v7142_v17 = vpop.f32.mrb[187].mxu1  ;;  %v7148_v45 = vpop.f32.mrb[167].mxu0  ;;  %7163 = vmatprep.mubr.msk.bf16.mxu0 %vm1077_vm3, %v5448_v60 }
 0xed4   : > { %v5440_v32 = vpop.f32.mrb[188].mxu1 }
 0xed5   : > { %v5449_v54 = vpack.c.bf16 %v5440_v32, %v5394_v10  ;;  %v7153_v39 = vpop.f32.mrb[189].mxu1 }
 0xed6   : > { %v5443_v20 = vpop.f32.mrb[190].mxu1 }
 0xed7   : > { %v7154_v51 = vpop.f32.mrb[191].mxu1  ;;  %7164 = vmatmul.mubr.msk.bf16.gmra.mrb[92].mxu0 %vm1077_vm3, %v5449_v54 }
 0xf9a   : > { %v7161_v27 = vpop.f32.mrb[88].mxu0 }
 0xf9b   : > { %v5517_v8 = vpop.f32.mrb[89].mxu0  ;;  %v5558_v31 = vadd.f32 %v7474_v38, %v7161_v27 }
 0xf9c   : > { %v5556_v55 = vadd.f32 %v7475_v48, %v5517_v8  ;;  %v7162_v62 = vpop.f32.mrb[90].mxu0 }
 0xf9d   : > { %v5520_v24 = vpop.f32.mrb[91].mxu0  ;;  %v5559_v52 = vadd.f32 %v7476_v15, %v7162_v62  ;;  %v8663_v28 = vmul.f32 0.70710677, %v5558_v31 }
 0xf9e   : > { %v8661_v29 = vmul.f32 0.70710677, %v5556_v55  ;;  %v5557_v11 = vadd.f32 %v7477_v59, %v5520_v24 }
 0xf9f   : > { %v8669_v19 = vmul.f32 0.70710677, %v5559_v52  ;;  %v5580_v5 = vsel %vm646_vm1, %v8663_v28, 0.0 }
 0xfa0   : > { %v8665_v44 = vmul.f32 0.70710677, %v5557_v11  ;;  %v5574_v1 = vsel %vm646_vm1, %v8661_v29, 0.0 }
 0xfa1   : > { %5575 = vadd.xlane.f32.xlu0 %v5574_v1  ;;  %v5583_v35 = vsel %vm646_vm1, %v8669_v19, 0.0 }
 0xfa2   : > { %v5577_v26 = vsel %vm646_vm1, %v8665_v44, 0.0 }
 0xfa3   : > { %5578 = vadd.xlane.f32.xlu1 %v5577_v26 }
 0xfa5   : > { %5581 = vadd.xlane.f32.xlu0 %v5580_v5 }
 0xfa7   : > { %5584 = vadd.xlane.f32.xlu1 %v5583_v35  ;;  %v7293_v35 = vld [vmem:[%s7664_s5 + $0x8] sm:$0xff]  }
 0xfa8   : > { %7240 = vmatprep.subr.msk.bf16.mxu1 %vm646_vm1, %v7293_v35 }
 0xfaa   : > { %v7165_v7 = vpop.f32.mrb[92].mxu0 }
 0xfab   : > { %v5533_v42 = vpop.f32.mrb[93].mxu0  ;;  %v5562_v49 = vadd.f32 %v7478_v43, %v7165_v7  ;;  %v5761_v43 = vsel %vm646_vm1, %v7293_v35, 0 }
 0xfac   : > { %v5560_v53 = vadd.f32 %v7479_v6, %v5533_v42  ;;  %v7166_v46 = vpop.f32.mrb[94].mxu0  ;;  %7170 = vmatpush3.bf16.xpose.msra.mxu1 %v5761_v43  ;;  %v7294_v6 = vld [vmem:[%s7664_s5 + $0x10] sm:$0xff]  }
 0xfad   : > { %v5536_v61 = vpop.f32.mrb[95].mxu0  ;;  %v5563_v58 = vadd.f32 %v7480_v57, %v7166_v46  ;;  %v8679_v23 = vmul.f32 0.70710677, %v5562_v49  ;;  %7241 = vmatprep.subr.msk.bf16.mxu1 %vm646_vm1, %v7294_v6  ;;  %v7295_v46 = vld [vmem:[%s7664_s5 + $0x18] sm:$0xff]  }
 0xfae   : > { %v8677_v56 = vmul.f32 0.70710677, %v5560_v53  ;;  %v5561_v18 = vadd.f32 %v7481_v63, %v5536_v61  ;;  %v5764_v53 = vsel %vm646_vm1, %v7294_v6, 0  ;;  %v5767_v61 = vsel %vm646_vm1, %v7295_v46, 0 }
 0xfaf   : > { %v8685_v47 = vmul.f32 0.70710677, %v5563_v58  ;;  %v5592_v41 = vsel %vm646_vm1, %v8679_v23, 0.0 }
 0xfb0   : > { %v8681_v30 = vmul.f32 0.70710677, %v5561_v18  ;;  %v5586_v37 = vsel %vm646_vm1, %v8677_v56, 0.0 }
 0xfb1   : > { %5587 = vadd.xlane.f32.xlu0 %v5586_v37  ;;  %v5595_v25 = vsel %vm646_vm1, %v8685_v47, 0.0 }
 0xfb2   : > { %v5589_v4 = vsel %vm646_vm1, %v8681_v30, 0.0 }
 0xfb3   : > { %5590 = vadd.xlane.f32.xlu1 %v5589_v4 }
 0xfb4   : > { %7172 = vmatpush3.bf16.xpose.msra.mxu1 %v5764_v53 }
 0xfb5   : > { %5593 = vadd.xlane.f32.xlu0 %v5592_v41  ;;  %7242 = vmatprep.subr.msk.bf16.mxu1 %vm646_vm1, %v7295_v46 }
 0xfb7   : > { %5596 = vadd.xlane.f32.xlu1 %v5595_v25 }
 0xfbc   : > { %7174 = vmatpush3.bf16.xpose.msra.mxu1 %v5767_v61 }
0x102e   : > { %v5576_v13 = vpop.xlane.xlu0 %5575 }
0x102f   : > { %v5598_v21 = vmul.f32 0.03125, %v5576_v13 }
0x1030   : > { %v5579_v2 = vpop.xlane.xlu1 %5578 }
0x1031   : > { %v8697_v0 = vsub.f32 %v8661_v29, %v5598_v21  ;;  %v5599_v12 = vmul.f32 0.03125, %v5579_v2 }
0x1032   : > { %v5582_v16 = vpop.xlane.xlu0 %5581 }
0x1033   : > { %v8700_v40 = vsub.f32 %v8665_v44, %v5599_v12  ;;  %v5600_v33 = vmul.f32 0.03125, %v5582_v16  ;;  %v5614_v14 = vmul.f32 %v8697_v0, %v8697_v0  ;;  %v6364_v12 = vld [vmem:[%s8872_s19] ss:$0 sm:$0xff] }
0x1034   : > { %v5585_v10 = vpop.xlane.xlu1 %5584 }
0x1035   : > { %v8705_v60 = vsub.f32 %v8663_v28, %v5600_v33  ;;  %v5601_v9 = vmul.f32 0.03125, %v5585_v10  ;;  %v5622_v22 = vsel %vm646_vm1, %v5614_v14, 0.0  ;;  %v5615_v36 = vmul.f32 %v8700_v40, %v8700_v40 }
0x1036   : > { %5623 = vadd.xlane.f32.xlu0 %v5622_v22 }
0x1037   : > { %v8711_v50 = vsub.f32 %v8669_v19, %v5601_v9  ;;  %v5625_v17 = vsel %vm646_vm1, %v5615_v36, 0.0  ;;  %v5616_v45 = vmul.f32 %v8705_v60, %v8705_v60 }
0x1038   : > { %5626 = vadd.xlane.f32.xlu1 %v5625_v17 }
0x1039   : > { %v5628_v32 = vsel %vm646_vm1, %v5616_v45, 0.0  ;;  %v5617_v54 = vmul.f32 %v8711_v50, %v8711_v50 }
0x103a   : > { %5629 = vadd.xlane.f32.xlu0 %v5628_v32 }
0x103b   : > { %v5631_v39 = vsel %vm646_vm1, %v5617_v54, 0.0  ;;  %v6365_v54 = vld [vmem:[%s588_s30] ss:$0 sm:$0xff] }
0x103c   : > { %5632 = vadd.xlane.f32.xlu1 %v5631_v39 }
0x103e   : > { %v5588_v20 = vpop.xlane.xlu0 %5587 }
0x103f   : > { %v5602_v51 = vmul.f32 0.03125, %v5588_v20 }
0x1040   : > { %v5591_v27 = vpop.xlane.xlu1 %5590 }
0x1041   : > { %v8721_v8 = vsub.f32 %v8677_v56, %v5602_v51  ;;  %v5603_v38 = vmul.f32 0.03125, %v5591_v27 }
0x1042   : > { %v5594_v31 = vpop.xlane.xlu0 %5593 }
0x1043   : > { %v8724_v48 = vsub.f32 %v8681_v30, %v5603_v38  ;;  %v5604_v55 = vmul.f32 0.03125, %v5594_v31  ;;  %v5618_v62 = vmul.f32 %v8721_v8, %v8721_v8 }
0x1044   : > { %v5597_v24 = vpop.xlane.xlu1 %5596 }
0x1045   : > { %v8729_v15 = vsub.f32 %v8679_v23, %v5604_v55  ;;  %v5605_v52 = vmul.f32 0.03125, %v5597_v24  ;;  %v5634_v59 = vsel %vm646_vm1, %v5618_v62, 0.0  ;;  %v5619_v11 = vmul.f32 %v8724_v48, %v8724_v48 }
0x1046   : > { %5635 = vadd.xlane.f32.xlu0 %v5634_v59 }
0x1047   : > { %v8735_v1 = vsub.f32 %v8685_v47, %v5605_v52  ;;  %v5637_v26 = vsel %vm646_vm1, %v5619_v11, 0.0  ;;  %v5620_v5 = vmul.f32 %v8729_v15, %v8729_v15 }
0x1048   : > { %5638 = vadd.xlane.f32.xlu1 %v5637_v26 }
0x1049   : > { %v5640_v7 = vsel %vm646_vm1, %v5620_v5, 0.0  ;;  %v5621_v42 = vmul.f32 %v8735_v1, %v8735_v1 }
0x104a   : > { %5641 = vadd.xlane.f32.xlu0 %v5640_v7 }
0x104b   : > { %v5643_v49 = vsel %vm646_vm1, %v5621_v42, 0.0 }
0x104c   : > { %5644 = vadd.xlane.f32.xlu1 %v5643_v49 }
0x10c3   : > { %v5624_v57 = vpop.xlane.xlu0 %5623 }
0x10c4   : > { %v5646_v58 = vmul.f32 0.03125, %v5624_v57 }
0x10c5   : > { %v5627_v63 = vpop.xlane.xlu1 %5626 }
0x10c6   : > { %v5654_v18 = vadd.f32 1e-05, %v5646_v58  ;;  %v5647_v37 = vmul.f32 0.03125, %v5627_v63 }
0x10c7   : > { %v5630_v4 = vpop.xlane.xlu0 %5629 }
0x10c8   : > { %7442 = vrsqrt.f32 %v5654_v18  ;;  %v5655_v41 = vadd.f32 1e-05, %v5647_v37  ;;  %v5648_v25 = vmul.f32 0.03125, %v5630_v4 }
0x10c9   : > { %v5633_v34 = vpop.xlane.xlu1 %5632 }
0x10ca   : > { %7444 = vrsqrt.f32 %v5655_v41  ;;  %v5656_v3 = vadd.f32 1e-05, %v5648_v25  ;;  %v5649_v13 = vmul.f32 0.03125, %v5633_v34  ;;  %v7296_v34 = vld [vmem:[%s7670_s24] sm:$0xff]  }
0x10cb   : > { %7243 = vmatprep.subr.msk.bf16.mxu0 %vm5899_vm5, %v7296_v34 }
0x10cc   : > { %7446 = vrsqrt.f32 %v5656_v3  ;;  %v5657_v21 = vadd.f32 1e-05, %v5649_v13  ;;  %v6366_v13 = vld [vmem:[%s596_s17] ss:$0 sm:$0xff] }
0x10ce   : > { %7448 = vrsqrt.f32 %v5657_v21 }
0x10d2   : > { %v7443_v2 = vpop.eup %7442 }
0x10d3   : > { %v5670_v16 = vmul.f32 %v7443_v2, %v8697_v0  ;;  %v5636_v33 = vpop.xlane.xlu0 %5635 }
0x10d4   : > { %v7445_v14 = vpop.eup %7444  ;;  %v5650_v10 = vmul.f32 0.03125, %v5636_v33 }
0x10d5   : > { %v5671_v9 = vmul.f32 %v7445_v14, %v8700_v40  ;;  %v5639_v22 = vpop.xlane.xlu1 %5638  ;;  %v5684_v36 = vmul.f32 %v6364_v12, %v5670_v16 }
0x10d6   : > { %v7447_v17 = vpop.eup %7446  ;;  %v5658_v45 = vadd.f32 1e-05, %v5650_v10  ;;  %v5651_v32 = vmul.f32 0.03125, %v5639_v22 }
0x10d7   : > { %v5672_v39 = vmul.f32 %v7447_v17, %v8705_v60  ;;  %v5642_v20 = vpop.xlane.xlu0 %5641  ;;  %v5685_v51 = vmul.f32 %v6364_v12, %v5671_v9  ;;  %v5698_v62 = vadd.f32 %v6365_v54, %v5684_v36 }
0x10d8   : > { %v7449_v0 = vpop.eup %7448  ;;  %7450 = vrsqrt.f32 %v5658_v45  ;;  %v5659_v27 = vadd.f32 1e-05, %v5651_v32  ;;  %v5652_v38 = vmul.f32 0.03125, %v5642_v20 }
0x10d9   : > { %v5686_v31 = vmul.f32 %v6364_v12, %v5672_v39  ;;  %v5673_v40 = vmul.f32 %v7449_v0, %v8711_v50  ;;  %v5645_v55 = vpop.xlane.xlu1 %5644  ;;  %v5699_v24 = vadd.f32 %v6365_v54, %v5685_v51 }
0x10da   : > { %7452 = vrsqrt.f32 %v5659_v27  ;;  %v5660_v52 = vadd.f32 1e-05, %v5652_v38  ;;  %v5653_v59 = vmul.f32 0.03125, %v5645_v55 }
0x10db   : > { %v5687_v11 = vmul.f32 %v6364_v12, %v5673_v40  ;;  %v5706_v26 = vpack.c.bf16 %v5699_v24, %v5698_v62  ;;  %v5700_v60 = vadd.f32 %v6365_v54, %v5686_v31 }
0x10dc   : > { %7454 = vrsqrt.f32 %v5660_v52  ;;  %v5661_v5 = vadd.f32 1e-05, %v5653_v59 }
0x10dd   : > { %7175 = vmatprep.mubr.msk.bf16.mxu1 %vm646_vm1, %v5706_v26  ;;  %v5701_v35 = vadd.f32 %v6365_v54, %v5687_v11 }
0x10de   : > { %7456 = vrsqrt.f32 %v5661_v5 }
0x10df   : > { %v5707_v7 = vpack.c.bf16 %v5701_v35, %v5700_v60 }
0x10e1   : > { %7176 = vmatmul.mubr.msk.bf16.vlgmr.msra.gmra.mrb[192].mxu1 %vm646_vm1, %v5707_v7 }
0x10e2   : > { %v7451_v42 = vpop.eup %7450 }
0x10e3   : > { %v5674_v50 = vmul.f32 %v7451_v42, %v8721_v8 }
0x10e4   : > { %v7453_v43 = vpop.eup %7452 }
0x10e5   : > { %v5675_v49 = vmul.f32 %v7453_v43, %v8724_v48  ;;  %v5688_v6 = vmul.f32 %v6364_v12, %v5674_v50 }
0x10e6   : > { %v7455_v53 = vpop.eup %7454 }
0x10e7   : > { %v5676_v46 = vmul.f32 %v7455_v53, %v8729_v15  ;;  %v5689_v61 = vmul.f32 %v6364_v12, %v5675_v49  ;;  %v5702_v63 = vadd.f32 %v6365_v54, %v5688_v6  ;;  %v5913_v15 = vsel %vm5899_vm5, %v7296_v34, 0 }
0x10e8   : > { %v7457_v57 = vpop.eup %7456  ;;  %7184 = vmatpush3.bf16.xpose.msra.mxu0 %v5913_v15 }
0x10e9   : > { %v5677_v58 = vmul.f32 %v7457_v57, %v8735_v1  ;;  %v5703_v18 = vadd.f32 %v6365_v54, %v5689_v61  ;;  %v5690_v37 = vmul.f32 %v6364_v12, %v5676_v46  ;;  %v7297_v1 = vld [vmem:[%s7670_s24 + $0x8] sm:$0xff]  }
0x10ea   : > { %7244 = vmatprep.subr.msk.bf16.mxu0 %vm5899_vm5, %v7297_v1  ;;  %v5916_v3 = vsel %vm5899_vm5, %v7297_v1, 0 }
0x10eb   : > { %v5708_v4 = vpack.c.bf16 %v5703_v18, %v5702_v63  ;;  %v5691_v41 = vmul.f32 %v6364_v12, %v5677_v58  ;;  %v5704_v8 = vadd.f32 %v6365_v54, %v5690_v37 }
0x10ed   : > { %7179 = vmatprep.mubr.msk.bf16.mxu1 %vm646_vm1, %v5708_v4  ;;  %v5705_v48 = vadd.f32 %v6365_v54, %v5691_v41 }
0x10ef   : > { %v5709_v25 = vpack.c.bf16 %v5705_v48, %v5704_v8 }
0x10f0   : > { %7186 = vmatpush3.bf16.xpose.msra.mxu0 %v5916_v3 }
0x10f1   : > { %7180 = vmatmul.mubr.msk.bf16.gmra.mrb[196].mxu1 %vm646_vm1, %v5709_v25 }
0x11b4   : > { %v7177_v21 = vpop.f32.mrb[192].mxu1 }
0x11b5   : > { %v5812_v2 = vadd.f32 %v7177_v21, %v6366_v13  ;;  %v5803_v12 = vpop.f32.mrb[193].mxu1 }
0x11b6   : > { %v5804_v16 = vadd.f32 %v6366_v13, %v5803_v12  ;;  %v7178_v33 = vpop.f32.mrb[194].mxu1 }
0x11b7   : > { %v5844_v14 = vmul.f32 0.70710677, %v5812_v2  ;;  %v5815_v10 = vadd.f32 %v7178_v33, %v6366_v13  ;;  %v5806_v9 = vpop.f32.mrb[195].mxu1  ;;  %v5836_v40 = vmul.f32 0.5, %v5812_v2  ;;  %v6375_v33 = vld [vmem:[%s604_s12] ss:$0 sm:$0xff] }
0x11b8   : > { %v5842_v22 = vmul.f32 0.70710677, %v5804_v16  ;;  %v5807_v36 = vadd.f32 %v6366_v13, %v5806_v9  ;;  %v5834_v59 = vmul.f32 0.5, %v5804_v16  ;;  %s7539_s12 = smov [#allocation2]  }
0x11b9   : > { %7458 = verf.f32 %v5844_v14  ;;  %v5845_v17 = vmul.f32 0.70710677, %v5815_v10  ;;  %v5837_v55 = vmul.f32 0.5, %v5815_v10  ;;  %s6016_s18 = sshll.u32 %s7539_s12, 4  ;;  %s6017_s18 = int_to_ptr.vmem [resolvable:$true] %s6016_s18 }
0x11ba   : > { %7460 = verf.f32 %v5842_v22  ;;  %v5843_v45 = vmul.f32 0.70710677, %v5807_v36  ;;  %v5835_v11 = vmul.f32 0.5, %v5807_v36  ;;  %s7482_s21 = scalar_lea.vmem %s6017_s18, 1024  ;;  %p7489_p10 = scmp.lt.s32.totalorder %s6017_s18, %s6017_s18 }
0x11bb   : > { %7462 = verf.f32 %v5845_v17  ;;  %p7483_p7 = scmp.ne.s32.totalorder %s6017_s18, %s7482_s21  ;;  %p7490_p11 = scmp.lt.s32.totalorder %s7482_s21, %s7482_s21 }
0x11bc   : > { %7464 = verf.f32 %v5843_v45 }
0x11bd   : > { %p7484_p8 = pnand %p7483_p7, %p8810_p6  ;;  %p7491_p12 = por %p7490_p11, %p7489_p10 }
0x11bf   : > { %p7485_p9 = pneg %p7484_p8 }
0x11c1   : > { %p7492_p13 = pnand %p7491_p12, %p7485_p9 }
0x11c3   : > { %v7459_v32 = vpop.eup %7458 }
0x11c4   : > { %v7461_v54 = vpop.eup %7460  ;;  %v5860_v39 = vadd.f32 1.0, %v7459_v32  ;;  %v7181_v20 = vpop.f32.mrb[196].mxu1 }
0x11c5   : > { %v7463_v51 = vpop.eup %7462  ;;  %v5858_v0 = vadd.f32 1.0, %v7461_v54  ;;  %v5828_v27 = vadd.f32 %v7181_v20, %v6366_v13  ;;  %v5819_v38 = vpop.f32.mrb[197].mxu1 }
0x11c6   : > { %v7465_v31 = vpop.eup %7464  ;;  %v5861_v62 = vadd.f32 1.0, %v7463_v51  ;;  %v5820_v24 = vadd.f32 %v6366_v13, %v5819_v38  ;;  %v7182_v52 = vpop.f32.mrb[198].mxu1  ;;  %v5868_v35 = vmul.f32 %v5860_v39, %v5836_v40 }
0x11c7   : > { %v5859_v26 = vadd.f32 1.0, %v7465_v31  ;;  %v5848_v5 = vmul.f32 0.70710677, %v5828_v27  ;;  %v5822_v60 = vpop.f32.mrb[199].mxu1  ;;  %v5831_v50 = vadd.f32 %v7182_v52, %v6366_v13  ;;  %v5866_v43 = vmul.f32 %v5858_v0, %v5834_v59 }
0x11c8   : > { %v5869_v7 = vmul.f32 %v5861_v62, %v5837_v55  ;;  %v5846_v42 = vmul.f32 0.70710677, %v5820_v24  ;;  %v5823_v6 = vadd.f32 %v6366_v13, %v5822_v60  ;;  %v5840_v8 = vmul.f32 0.5, %v5828_v27 }
0x11c9   : > { %v5867_v49 = vmul.f32 %v5859_v26, %v5835_v11  ;;  %7466 = verf.f32 %v5848_v5  ;;  %v5849_v46 = vmul.f32 0.70710677, %v5831_v50  ;;  %v5841_v48 = vmul.f32 0.5, %v5831_v50 }
0x11ca   : > { %v5875_v53 = vpack.c.bf16 %v5869_v7, %v5868_v35  ;;  %7468 = verf.f32 %v5846_v42  ;;  %v5847_v57 = vmul.f32 0.70710677, %v5823_v6  ;;  %v5838_v34 = vmul.f32 0.5, %v5820_v24 }
0x11cb   : > { %v5874_v61 = vpack.c.bf16 %v5867_v49, %v5866_v43  ;;  %7470 = verf.f32 %v5849_v46  ;;  %v5839_v15 = vmul.f32 0.5, %v5823_v6 }
0x11cc   : > { %7472 = verf.f32 %v5847_v57 }
0x11cd   : > { %7187 = vmatprep.mubr.msk.bf16.mxu0 %vm5899_vm5, %v5874_v61 }
0x11ce   : > { %7188 = vmatmul.mubr.msk.bf16.vlgmr.msra.gmra.mrb[168].mxu0 %vm5899_vm5, %v5875_v53 }
0x11d3   : > { %v7467_v58 = vpop.eup %7466 }
0x11d4   : > { %v7469_v63 = vpop.eup %7468  ;;  %v5864_v18 = vadd.f32 1.0, %v7467_v58 }
0x11d5   : > { %v7471_v37 = vpop.eup %7470  ;;  %v5862_v4 = vadd.f32 1.0, %v7469_v63 }
0x11d6   : > { %v7473_v41 = vpop.eup %7472  ;;  %v5865_v25 = vadd.f32 1.0, %v7471_v37  ;;  %v5872_v3 = vmul.f32 %v5864_v18, %v5840_v8 }
0x11d7   : > { %v5863_v1 = vadd.f32 1.0, %v7473_v41  ;;  %v5870_v21 = vmul.f32 %v5862_v4, %v5838_v34 }
0x11d8   : > { %v5873_v13 = vmul.f32 %v5865_v25, %v5841_v48 }
0x11d9   : > { %v5871_v2 = vmul.f32 %v5863_v1, %v5839_v15 }
0x11da   : > { %v5877_v12 = vpack.c.bf16 %v5873_v13, %v5872_v3 }
0x11db   : > { %v5876_v16 = vpack.c.bf16 %v5871_v2, %v5870_v21 }
0x11dd   : > { %7191 = vmatprep.mubr.msk.bf16.mxu0 %vm5899_vm5, %v5876_v16 }
0x11de   : > { %7192 = vmatmul.mubr.msk.bf16.gmra.mrb[172].mxu0 %vm5899_vm5, %v5877_v12 }
0x12a1   : > { %v7189_v14 = vpop.f32.mrb[168].mxu0 }
0x12a2   : > { %v5961_v10 = vadd.f32 %v7189_v14, %v6375_v33  ;;  %v5952_v9 = vpop.f32.mrb[169].mxu0 }
0x12a3   : > { %v5953_v22 = vadd.f32 %v6375_v33, %v5952_v9  ;;  %v7190_v36 = vpop.f32.mrb[170].mxu0 }
0x12a4   : > { %v5985_v17 = vadd.f32 %v5961_v10, %v8663_v28  ;;  %v5964_v45 = vadd.f32 %v7190_v36, %v6375_v33  ;;  %v5955_v32 = vpop.f32.mrb[171].mxu0 }
0x12a5   : > { %v5983_v54 = vadd.f32 %v5953_v22, %v8661_v29  ;;  %v5956_v39 = vadd.f32 %v6375_v33, %v5955_v32 }
0x12a6   : > { %v5993_v20 = vmul.f32 0.70710677, %v5985_v17  ;;  %v5986_v51 = vadd.f32 %v5964_v45, %v8669_v19 }
0x12a7   : > { %v5991_v0 = vmul.f32 0.70710677, %v5983_v54  ;;  %v5984_v27 = vadd.f32 %v5956_v39, %v8665_v44 }
0x12a8   : > { %6001 = vst.msk [vmem:[#allocation2 + $0x10] sm:$0xff] %vm646_vm1, %v5993_v20  ;;  %v5994_v38 = vmul.f32 0.70710677, %v5986_v51 }
0x12a9   : > { %5999 = vst.msk [vmem:[#allocation2] sm:$0xff] %vm646_vm1, %v5991_v0  ;;  %v5992_v31 = vmul.f32 0.70710677, %v5984_v27 }
0x12aa   : > { %6002 = vst.msk [vmem:[#allocation2 + $0x18] sm:$0xff] %vm646_vm1, %v5994_v38 }
0x12ab   : > { %6000 = vst.msk [vmem:[#allocation2 + $0x8] sm:$0xff] %vm646_vm1, %v5992_v31 }
0x12b1   : > { %v7193_v28 = vpop.f32.mrb[172].mxu0 }
0x12b2   : > { %v5977_v40 = vadd.f32 %v7193_v28, %v6375_v33  ;;  %v5968_v29 = vpop.f32.mrb[173].mxu0 }
0x12b3   : > { %v5969_v55 = vadd.f32 %v6375_v33, %v5968_v29  ;;  %v7194_v62 = vpop.f32.mrb[174].mxu0 }
0x12b4   : > { %v5989_v19 = vadd.f32 %v5977_v40, %v8679_v23  ;;  %v5980_v24 = vadd.f32 %v7194_v62, %v6375_v33  ;;  %v5971_v44 = vpop.f32.mrb[175].mxu0 }
0x12b5   : > { %v5987_v52 = vadd.f32 %v5969_v55, %v8677_v56  ;;  %v5972_v59 = vadd.f32 %v6375_v33, %v5971_v44 }
0x12b6   : > { %v5997_v11 = vmul.f32 0.70710677, %v5989_v19  ;;  %v5990_v26 = vadd.f32 %v5980_v24, %v8685_v47 }
0x12b7   : > { %v5995_v5 = vmul.f32 0.70710677, %v5987_v52  ;;  %v5988_v60 = vadd.f32 %v5972_v59, %v8681_v30 }
0x12b8   : > { %6005 = vst.msk [vmem:[#allocation2 + $0x30] sm:$0xff] %vm646_vm1, %v5997_v11  ;;  %v5998_v35 = vmul.f32 0.70710677, %v5990_v26 }
0x12b9   : > { %6003 = vst.msk [vmem:[#allocation2 + $0x20] sm:$0xff] %vm646_vm1, %v5995_v5  ;;  %v5996_v56 = vmul.f32 0.70710677, %v5988_v60 }
0x12ba   : > { %6006 = vst.msk [vmem:[#allocation2 + $0x38] sm:$0xff] %vm646_vm1, %v5998_v35 }
0x12bb   : > { %6004 = vst.msk [vmem:[#allocation2 + $0x28] sm:$0xff] %vm646_vm1, %v5996_v56 }
0x12bc   : > { %7495 = shalt.err (!%p7492_p13)
}
0x12bd   : > { %s8876_s15 = sld [smem:[#allocation9_spill]] }
0x12c3   : > { %s7496_s29 = scalar_lea.hbm %s8876_s15, 1024 }
0x12c4   : > { %p7497_p0 = scmp.ne.s32.totalorder %s8876_s15, %s7496_s29  ;;  %p7502_p3 = scmp.lt.u32.totalorder %s7496_s29, %s8876_s15 }
0x12c6   : > { %p7498_p1 = pnand %p7497_p0, %p8810_p6 }
0x12c8   : > { %p7499_p2 = pneg %p7498_p1 }
0x12ca   : > { %p7504_p4 = pnand %p7502_p3, %p7499_p2 }
0x12cc   : > { %7507 = shalt.err (!%p7504_p4)
}
0x12cd   : > { %s7540_s14 = smov 128   ;;  %s7541_s13 = smov 8  }
0x12ce   : > { %7247 = dma.vmem_to_hbm [thread:$0]  (%p8810_p6), %s6017_s18, 1024, %s8876_s15, [#allocation3], %s7540_s14, %s7540_s14, %s7541_s13  }
0x12cf   : > { %7521 = dma.done.wait (%p8810_p6), [#allocation3], 1024  }
0x12d0   : > { %7523 = vsyncadd (%p8810_p6), [#allocation3], 4294966272 }
0x12d1 PF: > { %s8877_s17 = sld [smem:[#allocation6_spill]]  ;;  %s8878_s21 = sld [smem:[#allocation5_spill]] }
0x12d2   : > { %s8879_s22 = sld [smem:[#allocation7_spill]] }
0x12d7   : > { %s23_s23 = sadd.s32 1, %s8877_s17  }
0x12d8   : > { %p20_p5 = scmp.ge.s32.totalorder %s23_s23, 4  }
0x12da   :  { %22 = sbr.rel (!%p20_p5) target bundleno = 5 (0x5), region = 147 }
0x12e1   :  { %6032 = vsyncpa [#allocation3], 1 }
0x12e2   :  { %6034 = vsyncpa [#allocation3 + $0x1], 1 }

</bundles_post_ra>
